<compile_context>
chip_gen: v7x
topology: tpu7x:2x2x1
jax: 0.10.0
libtpu: 0.0.40
codegen_flags: <defaults>
</compile_context>

<pallas_src>
import functools

import jax
import jax.numpy as jnp
from jax import lax
from jax.experimental import pallas as pl
from jax.experimental.pallas import tpu as pltpu


# ----------------------------------------------------------------------------
# Helpers
# ----------------------------------------------------------------------------
def _vmem_capacity_bytes():
    """Physical VMEM per TensorCore (fallback: 64 MiB, the v7x value)."""
    try:
        info = pltpu.get_tpu_info()
        cap = getattr(info, "vmem_capacity_bytes", None)
        if cap:
            return int(cap)
    except Exception:
        pass
    return 64 * 1024 * 1024


def _largest_divisor_leq(n, cap):
    cap = max(1, min(n, cap))
    return max(d for d in range(1, n + 1) if n % d == 0 and d <= cap)


# ----------------------------------------------------------------------------
# Kernel 1: plain nearest-neighbour 2x upsample (use_conv=False path).
#   out[n, i, dh, j, d*C + c] = x[n, i, j, c]   for dh, d in {0, 1}
# which reshapes (row-major, zero cost) to the usual (N, 2H, 2W, C).
# ----------------------------------------------------------------------------
def _upsample2x_kernel(x_ref, o_ref):
    x = x_ref[0]                              # (TH, W, C)
    xw = jnp.concatenate([x, x], axis=-1)     # (TH, W, 2C): width duplication
    # Height duplication: broadcast over the size-2 leading block dim.
    o_ref[0] = jnp.broadcast_to(xw[:, None, :, :], o_ref.shape[1:])


def upsample_nearest_2x(x_nhwc):
    n, h, w, c = x_nhwc.shape
    itemsize = jnp.dtype(x_nhwc.dtype).itemsize
    # ~8 MiB output block (double-buffered by the pipeline); keep the grid
    # >= 2 steps via the batch axis so megacore still has parallel work.
    out_row_bytes = 4 * w * c * itemsize
    th_max = (8 * 1024 * 1024) // max(1, out_row_bytes)
    tile_h = _largest_divisor_leq(h, th_max)
    grid = (n, h // tile_h)

    # TODO(synk): for 2*C < 128 a fully lane-flattened output (N, H, 2*W*2C)
    # would avoid masked vst on the store path; skipped here (relayout cost vs
    # masked stores is a wash at these sizes and this path is pure mem-copy).
    out5 = pl.pallas_call(
        _upsample2x_kernel,
        out_shape=jax.ShapeDtypeStruct((n, h, 2, w, 2 * c), x_nhwc.dtype),
        grid=grid,
        in_specs=[pl.BlockSpec((1, tile_h, w, c), lambda i, j: (i, j, 0, 0))],
        out_specs=pl.BlockSpec((1, tile_h, 2, w, 2 * c),
                               lambda i, j: (i, j, 0, 0, 0)),
        compiler_params=pltpu.CompilerParams(
            dimension_semantics=("parallel", "parallel"),
            vmem_limit_bytes=48 * 1024 * 1024),
    )(x_nhwc)
    # Free row-major reshape: (N, H, 2, W, 2C) -> (N, 2H, 2W, C).
    return out5.reshape(n, 2 * h, 2 * w, c)


# ----------------------------------------------------------------------------
# Kernel 2: fused nearest-2x upsample + 3x3 "same" conv.
#
# For output pixel (2i+py, 2j+px) of conv(upsample2x(X)):
#   out = bias + sum_{a,b in {0,1}} Xpad[i + a + py - 1, j + b + px - 1] @
#                 Wph[py, px, a, b]
# where Xpad is the zero-padded ORIGINAL image and the phase weights Wph
# combine the 3x3 taps:  Sy(0,*) = ({0}, {1,2}),  Sy(1,*) = ({0,1}, {2})
# (same sets along x).  So each grid step only needs its TH original rows
# plus a 1-row halo above/below (fetched as two extra 1-row BlockSpec inputs
# and zeroed in-kernel at the image borders).
# ----------------------------------------------------------------------------
_TAP_SETS = (((0,), (1, 2)), ((0, 1), (2,)))   # [parity][a] -> 3x3 taps summed


def _phase_weights(w_hwio):
    """(3, 3, Cin, Cout) -> (2, 2, 2, 2, Cin, Cout) phase/tap weights."""
    py_list = []
    for py in range(2):
        px_list = []
        for px in range(2):
            a_list = []
            for a in range(2):
                b_list = []
                for b in range(2):
                    acc = 0.0
                    for ky in _TAP_SETS[py][a]:
                        for kx in _TAP_SETS[px][b]:
                            acc = acc + w_hwio[ky, kx]
                    b_list.append(acc)
                a_list.append(jnp.stack(b_list))
            px_list.append(jnp.stack(a_list))
        py_list.append(jnp.stack(px_list))
    return jnp.stack(py_list)


def _fused_up_conv_kernel(xa_ref, xc_ref, xb_ref, w_ref, b_ref, o_ref,
                          *, th, width, cin, cout, op_dtype):
    t = pl.program_id(1)
    nt = pl.num_programs(1)

    # Assemble the (TH+2, W, C) row window; zero the halo rows at the borders.
    xc = xc_ref[0]                                                  # (TH, W, C)
    xa = jnp.where(t > 0, xa_ref[0], jnp.zeros_like(xa_ref[0]))     # (1, W, C)
    xb = jnp.where(t + 1 < nt, xb_ref[0], jnp.zeros_like(xb_ref[0]))
    xf = jnp.concatenate([xa, xc, xb], axis=0)                      # (TH+2, W, C)

    # Three column-shifted views (zero-padded width): X cols j-1, j, j+1.
    zcol = jnp.zeros((th + 2, 1, cin), dtype=xf.dtype)
    cols = (jnp.concatenate([zcol, xf[:, :width - 1, :]], axis=1),
            xf,
            jnp.concatenate([xf[:, 1:, :], zcol], axis=1))

    f32 = jnp.float32
    acc = [[jnp.zeros((th * width, cout), f32) for _ in range(2)]
           for _ in range(2)]
    # Build each of the 9 unique tap slabs once and accumulate it into every
    # phase that uses it (<= 4), so only one slab is live at a time.  16 dots
    # total, each (TH*W, Cin) @ (Cin, Cout) with f32 MXU accumulation.
    for dr in range(3):            # padded-row offset of the slab
        for dc in range(3):        # padded-col offset of the slab
            slab = cols[dc][dr:dr + th].reshape(th * width, cin)
            slab = slab.astype(op_dtype)
            for py in range(2):
                a = dr - py
                if a < 0 or a > 1:
                    continue
                for px in range(2):
                    b = dc - px
                    if b < 0 or b > 1:
                        continue
                    acc[py][px] += jnp.dot(slab, w_ref[py, px, a, b],
                                           preferred_element_type=f32)

    bias = b_ref[...].astype(f32)                                   # (1, Cout)
    for py in range(2):
        # Lane concat of the px=0 / px=1 phases -> last dim ordered px*Co + co,
        # so the wrapper's reshape to (N, 2H, 2W, Co) is free.
        row = jnp.concatenate([acc[py][0] + bias, acc[py][1] + bias], axis=-1)
        o_ref[0, :, py] = row.reshape(th, width, 2 * cout).astype(o_ref.dtype)


def _fused_call(x_nhwc, wph, bias2, *, op_dtype, budget, vmem_cap):
    n, h, width, cin = x_nhwc.shape
    cout = wph.shape[-1]
    itm = jnp.dtype(x_nhwc.dtype).itemsize
    op_itm = jnp.dtype(op_dtype).itemsize

    # Row-tile size from the VMEM budget: double-buffered in/out blocks plus
    # in-kernel temporaries (window, col shifts, one slab, 4 f32 accumulators).
    per_row = width * (cin * (5 * itm + op_itm) + cout * (24 + 8 * itm))
    fixed = (2 * int(wph.size) * op_itm            # weight slab (double-buffered)
             + 4 * width * cin * itm               # halo row blocks
             + 4 * width * cout * 4)               # bias / small temps, slack
    avail = max(per_row, budget - fixed)
    th = _largest_divisor_leq(h, avail // per_row)
    grid = (n, h // th)

    kernel = functools.partial(_fused_up_conv_kernel, th=th, width=width,
                               cin=cin, cout=cout, op_dtype=op_dtype)
    return pl.pallas_call(
        kernel,
        out_shape=jax.ShapeDtypeStruct((n, h, 2, width, 2 * cout),
                                       x_nhwc.dtype),
        grid=grid,
        in_specs=[
            # 1-row halo above (clamped; zeroed in-kernel when t == 0).
            pl.BlockSpec((1, 1, width, cin),
                         lambda i, j: (i, jnp.maximum(j * th - 1, 0), 0, 0)),
            # TH centre rows.
            pl.BlockSpec((1, th, width, cin), lambda i, j: (i, j, 0, 0)),
            # 1-row halo below (clamped; zeroed in-kernel when t == last).
            pl.BlockSpec((1, 1, width, cin),
                         lambda i, j: (i, jnp.minimum(j * th + th, h - 1), 0, 0)),
            # Phase weights / bias: resident across the grid.
            pl.BlockSpec(wph.shape, lambda i, j: (0, 0, 0, 0, 0, 0)),
            pl.BlockSpec(bias2.shape, lambda i, j: (0, 0)),
        ],
        out_specs=pl.BlockSpec((1, th, 2, width, 2 * cout),
                               lambda i, j: (i, j, 0, 0, 0)),
        compiler_params=pltpu.CompilerParams(
            dimension_semantics=("parallel", "parallel"),
            vmem_limit_bytes=int(min(0.8 * vmem_cap, 112 * 1024 * 1024))),
    )(x_nhwc, x_nhwc, x_nhwc, wph, bias2)


def upsample_conv2x(x_nhwc, w_hwio, bias, *, matmul_dtype=None, co_chunk=None):
    """Fused nearest-2x upsample + 3x3 'same' conv.  NHWC in / NHWC out."""
    n, h, width, cin = x_nhwc.shape
    cout = w_hwio.shape[-1]
    op_dtype = jnp.dtype(matmul_dtype) if matmul_dtype is not None \
        else jnp.dtype(x_nhwc.dtype)
    op_itm = jnp.dtype(op_dtype).itemsize

    # Combine the 3x3 taps into per-phase 2x2 weights (tiny, pure JAX).
    wph = _phase_weights(w_hwio.astype(jnp.float32)).astype(op_dtype)
    bias_f32 = bias.astype(jnp.float32)

    vmem_cap = _vmem_capacity_bytes()
    budget = int(vmem_cap * 0.4)

    # Chunk Cout so the (double-buffered) weight slab stays within ~1/3 of the
    # budget -- keeps v7x (64 MiB VMEM) safe at large UNet channel counts.
    if co_chunk is None:
        max_w_bytes = budget // 3
        co_chunk = min(cout, max(1, max_w_bytes // (2 * 16 * cin * op_itm)))

    pieces = []
    for c0 in range(0, cout, co_chunk):
        cc = min(co_chunk, cout - c0)
        pieces.append(_fused_call(
            x_nhwc,
            wph[..., c0:c0 + cc],
            bias_f32[c0:c0 + cc].reshape(1, cc),
            op_dtype=op_dtype, budget=budget, vmem_cap=vmem_cap))

    if len(pieces) == 1:
        # Free row-major reshape: (N, H, 2, W, 2*Co) -> (N, 2H, 2W, Co).
        return pieces[0].reshape(n, 2 * h, 2 * width, cout)

    # Stitch Cout chunks: (N, H, 2, W, 2*cc) -> (N, H, 2, W, 2, cc), concat on
    # the channel axis (chunks are consecutive channel ranges), then reshape.
    pieces = [p.reshape(n, h, 2, width, 2, p.shape[-1] // 2) for p in pieces]
    out6 = jnp.concatenate(pieces, axis=-1)
    return out6.reshape(n, 2 * h, 2 * width, cout)


# ----------------------------------------------------------------------------
# Module-level wrapper (matches PyTorch Upsample.forward, NCHW in / NCHW out)
# ----------------------------------------------------------------------------
def upsample_module(x_nchw, w_oihw=None, bias=None, *, use_conv,
                    matmul_dtype=None, co_chunk=None):
    x = jnp.transpose(x_nchw, (0, 2, 3, 1))            # NCHW -> NHWC (glue)
    if use_conv:
        w_hwio = jnp.transpose(w_oihw, (2, 3, 1, 0))   # OIHW -> HWIO (glue)
        y = upsample_conv2x(x, w_hwio, bias,
                            matmul_dtype=matmul_dtype, co_chunk=co_chunk)
    else:
        y = upsample_nearest_2x(x)
    return jnp.transpose(y, (0, 3, 1, 2))              # NHWC -> NCHW (glue)


if __name__ == "__main__":
    key = jax.random.PRNGKey(0)
    k1, k2, k3 = jax.random.split(key, 3)

    N, C, H, W = 2, 4, 16, 16
    x = jax.random.normal(k1, (N, C, H, W), dtype=jnp.float32)
    # Deterministic synthetic parameters (Conv2d(C, C, 3, padding=1) shapes).
    w_oihw = jax.random.normal(k2, (C, C, 3, 3), dtype=jnp.float32) * 0.1
    bias = jax.random.normal(k3, (C,), dtype=jnp.float32) * 0.1

    # Pure-JAX reference.
    ref_up = jnp.repeat(jnp.repeat(x, 2, axis=2), 2, axis=3)
    ref = lax.conv_general_dilated(
        ref_up, w_oihw, window_strides=(1, 1), padding="SAME",
        dimension_numbers=("NCHW", "OIHW", "NCHW"),
    ) + bias[None, :, None, None]

    # use_conv=True path (fused kernel, f32 operands).
    out = jax.block_until_ready(upsample_module(x, w_oihw, bias, use_conv=True))
    assert out.shape == (N, C, 2 * H, 2 * W)
    assert jnp.allclose(out, ref, atol=1e-4, rtol=1e-4), "conv path mismatch"

    # Forced (uneven) Cout chunking path.
    out_ck = jax.block_until_ready(
        upsample_module(x, w_oihw, bias, use_conv=True, co_chunk=3))
    assert jnp.allclose(out_ck, ref, atol=1e-4, rtol=1e-4), "chunked mismatch"

    # bf16-operand MXU path (v6e/v7x fast path), f32 accumulation.
    out_bf = jax.block_until_ready(
        upsample_module(x, w_oihw, bias, use_conv=True,
                        matmul_dtype=jnp.bfloat16))
    assert jnp.allclose(out_bf, ref, atol=0.15, rtol=0.05), "bf16 mismatch"

    # use_conv=False path.
    out2 = jax.block_until_ready(upsample_module(x, use_conv=False))
    assert jnp.allclose(out2, ref_up), "upsample path mismatch"

    print("KERNEL_OK")
</pallas_src>

<mosaic_0001>
module attributes {stable_mosaic.version = 11 : i64} {
  func.func @_fused_up_conv_kernel(%arg0: i32, %arg1: i32, %arg2: memref<1x1x16x4xf32, #tpu.memory_space<vmem>>, %arg3: memref<1x16x16x4xf32, #tpu.memory_space<vmem>>, %arg4: memref<1x1x16x4xf32, #tpu.memory_space<vmem>>, %arg5: memref<2x2x2x2x4x4xf32, #tpu.memory_space<vmem>>, %arg6: memref<1x4xf32, #tpu.memory_space<vmem>>, %arg7: memref<1x16x2x16x8xf32, #tpu.memory_space<vmem>>) attributes {dimension_semantics = [#tpu.dimension_semantics<parallel>, #tpu.dimension_semantics<parallel>], iteration_bounds = array<i64: 2, 1>, scalar_prefetch = 0 : i64, scratch_operands = 0 : i64, tpu.core_type = #tpu.core_type<tc>, window_params = [{transform_indices = @transform_0, window_bounds = array<i64: 1, 1, 16, 4>}, {transform_indices = @transform_1, window_bounds = array<i64: 1, 16, 16, 4>}, {transform_indices = @transform_2, window_bounds = array<i64: 1, 1, 16, 4>}, {pipeline_mode = #tpu.pipeline_mode<synchronous>, transform_indices = @transform_3, window_bounds = array<i64: 2, 2, 2, 2, 4, 4>}, {pipeline_mode = #tpu.pipeline_mode<synchronous>, transform_indices = @transform_4, window_bounds = array<i64: 1, 4>}, {transform_indices = @transform_5, window_bounds = array<i64: 1, 16, 2, 16, 8>}]} {
    %c0 = arith.constant 0 : index
    %c0_0 = arith.constant 0 : index
    %c0_1 = arith.constant 0 : index
    %c0_2 = arith.constant 0 : index
    %0 = vector.load %arg3[%c0, %c0_0, %c0_1, %c0_2] : memref<1x16x16x4xf32, #tpu.memory_space<vmem>>, vector<1x16x16x4xf32>
    %1 = vector.shape_cast %0 : vector<1x16x16x4xf32> to vector<16x16x4xf32>
    %c0_i32 = arith.constant 0 : i32
    %2 = arith.cmpi sgt, %arg1, %c0_i32 : i32
    %c0_3 = arith.constant 0 : index
    %c0_4 = arith.constant 0 : index
    %c0_5 = arith.constant 0 : index
    %c0_6 = arith.constant 0 : index
    %3 = vector.load %arg2[%c0_3, %c0_4, %c0_5, %c0_6] : memref<1x1x16x4xf32, #tpu.memory_space<vmem>>, vector<1x1x16x4xf32>
    %4 = vector.shape_cast %3 : vector<1x1x16x4xf32> to vector<1x16x4xf32>
    %cst = arith.constant 0.000000e+00 : f32
    %5 = vector.broadcast %cst : f32 to vector<1x16x4xf32>
    %6 = arith.select %2, %4, %5 : vector<1x16x4xf32>
    %c1_i32 = arith.constant 1 : i32
    %7 = arith.addi %arg1, %c1_i32 : i32
    %c1_i32_7 = arith.constant 1 : i32
    %8 = arith.cmpi slt, %7, %c1_i32_7 : i32
    %c0_8 = arith.constant 0 : index
    %c0_9 = arith.constant 0 : index
    %c0_10 = arith.constant 0 : index
    %c0_11 = arith.constant 0 : index
    %9 = vector.load %arg4[%c0_8, %c0_9, %c0_10, %c0_11] : memref<1x1x16x4xf32, #tpu.memory_space<vmem>>, vector<1x1x16x4xf32>
    %10 = vector.shape_cast %9 : vector<1x1x16x4xf32> to vector<1x16x4xf32>
    %cst_12 = arith.constant 0.000000e+00 : f32
    %11 = vector.broadcast %cst_12 : f32 to vector<1x16x4xf32>
    %12 = arith.select %8, %10, %11 : vector<1x16x4xf32>
    %13 = tpu.concatenate %6, %1, %12 in 0 : vector<1x16x4xf32>, vector<16x16x4xf32>, vector<1x16x4xf32> -> vector<18x16x4xf32>
    %cst_13 = arith.constant 0.000000e+00 : f32
    %14 = vector.broadcast %cst_13 : f32 to vector<18x1x4xf32>
    %15 = vector.extract_strided_slice %13 {offsets = [0, 0, 0], sizes = [18, 15, 4], strides = [1, 1, 1]} : vector<18x16x4xf32> to vector<18x15x4xf32>
    %16 = tpu.concatenate %14, %15 in 1 : vector<18x1x4xf32>, vector<18x15x4xf32> -> vector<18x16x4xf32>
    %17 = vector.extract_strided_slice %13 {offsets = [0, 1, 0], sizes = [18, 15, 4], strides = [1, 1, 1]} : vector<18x16x4xf32> to vector<18x15x4xf32>
    %18 = tpu.concatenate %17, %14 in 1 : vector<18x15x4xf32>, vector<18x1x4xf32> -> vector<18x16x4xf32>
    %cst_14 = arith.constant 0.000000e+00 : f32
    %19 = vector.broadcast %cst_14 : f32 to vector<256x4xf32>
    %cst_15 = arith.constant 0.000000e+00 : f32
    %20 = vector.broadcast %cst_15 : f32 to vector<256x4xf32>
    %cst_16 = arith.constant 0.000000e+00 : f32
    %21 = vector.broadcast %cst_16 : f32 to vector<256x4xf32>
    %cst_17 = arith.constant 0.000000e+00 : f32
    %22 = vector.broadcast %cst_17 : f32 to vector<256x4xf32>
    %23 = vector.extract_strided_slice %16 {offsets = [0, 0, 0], sizes = [16, 16, 4], strides = [1, 1, 1]} : vector<18x16x4xf32> to vector<16x16x4xf32>
    %24 = vector.shape_cast %23 : vector<16x16x4xf32> to vector<256x4xf32>
    %c0_18 = arith.constant 0 : index
    %c0_19 = arith.constant 0 : index
    %c0_20 = arith.constant 0 : index
    %c0_21 = arith.constant 0 : index
    %c0_22 = arith.constant 0 : index
    %c0_23 = arith.constant 0 : index
    %25 = vector.load %arg5[%c0_18, %c0_19, %c0_20, %c0_21, %c0_22, %c0_23] : memref<2x2x2x2x4x4xf32, #tpu.memory_space<vmem>>, vector<1x1x1x1x4x4xf32>
    %26 = vector.shape_cast %25 : vector<1x1x1x1x4x4xf32> to vector<4x4xf32>
    %cst_24 = arith.constant dense<0.000000e+00> : vector<256x4xf32>
    %27 = tpu.matmul %24, %26, %cst_24 {dimension_numbers = #tpu.dot_dimension_numbers<[1], [0], [0], [1], [0, 0, 1, 1], [], []>} : vector<256x4xf32>, vector<4x4xf32>, vector<256x4xf32> -> vector<256x4xf32>
    %28 = arith.addf %19, %27 : vector<256x4xf32>
    %29 = vector.extract_strided_slice %13 {offsets = [0, 0, 0], sizes = [16, 16, 4], strides = [1, 1, 1]} : vector<18x16x4xf32> to vector<16x16x4xf32>
    %30 = vector.shape_cast %29 : vector<16x16x4xf32> to vector<256x4xf32>
    %c0_25 = arith.constant 0 : index
    %c0_26 = arith.constant 0 : index
    %c0_27 = arith.constant 0 : index
    %c1 = arith.constant 1 : index
    %c0_28 = arith.constant 0 : index
    %c0_29 = arith.constant 0 : index
    %31 = vector.load %arg5[%c0_25, %c0_26, %c0_27, %c1, %c0_28, %c0_29] : memref<2x2x2x2x4x4xf32, #tpu.memory_space<vmem>>, vector<1x1x1x1x4x4xf32>
    %32 = vector.shape_cast %31 : vector<1x1x1x1x4x4xf32> to vector<4x4xf32>
    %cst_30 = arith.constant dense<0.000000e+00> : vector<256x4xf32>
    %33 = tpu.matmul %30, %32, %cst_30 {dimension_numbers = #tpu.dot_dimension_numbers<[1], [0], [0], [1], [0, 0, 1, 1], [], []>} : vector<256x4xf32>, vector<4x4xf32>, vector<256x4xf32> -> vector<256x4xf32>
    %34 = arith.addf %28, %33 : vector<256x4xf32>
    %c0_31 = arith.constant 0 : index
    %c1_32 = arith.constant 1 : index
    %c0_33 = arith.constant 0 : index
    %c0_34 = arith.constant 0 : index
    %c0_35 = arith.constant 0 : index
    %c0_36 = arith.constant 0 : index
    %35 = vector.load %arg5[%c0_31, %c1_32, %c0_33, %c0_34, %c0_35, %c0_36] : memref<2x2x2x2x4x4xf32, #tpu.memory_space<vmem>>, vector<1x1x1x1x4x4xf32>
    %36 = vector.shape_cast %35 : vector<1x1x1x1x4x4xf32> to vector<4x4xf32>
    %cst_37 = arith.constant dense<0.000000e+00> : vector<256x4xf32>
    %37 = tpu.matmul %30, %36, %cst_37 {dimension_numbers = #tpu.dot_dimension_numbers<[1], [0], [0], [1], [0, 0, 1, 1], [], []>} : vector<256x4xf32>, vector<4x4xf32>, vector<256x4xf32> -> vector<256x4xf32>
    %38 = arith.addf %20, %37 : vector<256x4xf32>
    %39 = vector.extract_strided_slice %18 {offsets = [0, 0, 0], sizes = [16, 16, 4], strides = [1, 1, 1]} : vector<18x16x4xf32> to vector<16x16x4xf32>
    %40 = vector.shape_cast %39 : vector<16x16x4xf32> to vector<256x4xf32>
    %c0_38 = arith.constant 0 : index
    %c1_39 = arith.constant 1 : index
    %c0_40 = arith.constant 0 : index
    %c1_41 = arith.constant 1 : index
    %c0_42 = arith.constant 0 : index
    %c0_43 = arith.constant 0 : index
    %41 = vector.load %arg5[%c0_38, %c1_39, %c0_40, %c1_41, %c0_42, %c0_43] : memref<2x2x2x2x4x4xf32, #tpu.memory_space<vmem>>, vector<1x1x1x1x4x4xf32>
    %42 = vector.shape_cast %41 : vector<1x1x1x1x4x4xf32> to vector<4x4xf32>
    %cst_44 = arith.constant dense<0.000000e+00> : vector<256x4xf32>
    %43 = tpu.matmul %40, %42, %cst_44 {dimension_numbers = #tpu.dot_dimension_numbers<[1], [0], [0], [1], [0, 0, 1, 1], [], []>} : vector<256x4xf32>, vector<4x4xf32>, vector<256x4xf32> -> vector<256x4xf32>
    %44 = arith.addf %38, %43 : vector<256x4xf32>
    %45 = vector.extract_strided_slice %16 {offsets = [1, 0, 0], sizes = [16, 16, 4], strides = [1, 1, 1]} : vector<18x16x4xf32> to vector<16x16x4xf32>
    %46 = vector.shape_cast %45 : vector<16x16x4xf32> to vector<256x4xf32>
    %c0_45 = arith.constant 0 : index
    %c0_46 = arith.constant 0 : index
    %c1_47 = arith.constant 1 : index
    %c0_48 = arith.constant 0 : index
    %c0_49 = arith.constant 0 : index
    %c0_50 = arith.constant 0 : index
    %47 = vector.load %arg5[%c0_45, %c0_46, %c1_47, %c0_48, %c0_49, %c0_50] : memref<2x2x2x2x4x4xf32, #tpu.memory_space<vmem>>, vector<1x1x1x1x4x4xf32>
    %48 = vector.shape_cast %47 : vector<1x1x1x1x4x4xf32> to vector<4x4xf32>
    %cst_51 = arith.constant dense<0.000000e+00> : vector<256x4xf32>
    %49 = tpu.matmul %46, %48, %cst_51 {dimension_numbers = #tpu.dot_dimension_numbers<[1], [0], [0], [1], [0, 0, 1, 1], [], []>} : vector<256x4xf32>, vector<4x4xf32>, vector<256x4xf32> -> vector<256x4xf32>
    %50 = arith.addf %34, %49 : vector<256x4xf32>
    %c1_52 = arith.constant 1 : index
    %c0_53 = arith.constant 0 : index
    %c0_54 = arith.constant 0 : index
    %c0_55 = arith.constant 0 : index
    %c0_56 = arith.constant 0 : index
    %c0_57 = arith.constant 0 : index
    %51 = vector.load %arg5[%c1_52, %c0_53, %c0_54, %c0_55, %c0_56, %c0_57] : memref<2x2x2x2x4x4xf32, #tpu.memory_space<vmem>>, vector<1x1x1x1x4x4xf32>
    %52 = vector.shape_cast %51 : vector<1x1x1x1x4x4xf32> to vector<4x4xf32>
    %cst_58 = arith.constant dense<0.000000e+00> : vector<256x4xf32>
    %53 = tpu.matmul %46, %52, %cst_58 {dimension_numbers = #tpu.dot_dimension_numbers<[1], [0], [0], [1], [0, 0, 1, 1], [], []>} : vector<256x4xf32>, vector<4x4xf32>, vector<256x4xf32> -> vector<256x4xf32>
    %54 = arith.addf %21, %53 : vector<256x4xf32>
    %55 = vector.extract_strided_slice %13 {offsets = [1, 0, 0], sizes = [16, 16, 4], strides = [1, 1, 1]} : vector<18x16x4xf32> to vector<16x16x4xf32>
    %56 = vector.shape_cast %55 : vector<16x16x4xf32> to vector<256x4xf32>
    %c0_59 = arith.constant 0 : index
    %c0_60 = arith.constant 0 : index
    %c1_61 = arith.constant 1 : index
    %c1_62 = arith.constant 1 : index
    %c0_63 = arith.constant 0 : index
    %c0_64 = arith.constant 0 : index
    %57 = vector.load %arg5[%c0_59, %c0_60, %c1_61, %c1_62, %c0_63, %c0_64] : memref<2x2x2x2x4x4xf32, #tpu.memory_space<vmem>>, vector<1x1x1x1x4x4xf32>
    %58 = vector.shape_cast %57 : vector<1x1x1x1x4x4xf32> to vector<4x4xf32>
    %cst_65 = arith.constant dense<0.000000e+00> : vector<256x4xf32>
    %59 = tpu.matmul %56, %58, %cst_65 {dimension_numbers = #tpu.dot_dimension_numbers<[1], [0], [0], [1], [0, 0, 1, 1], [], []>} : vector<256x4xf32>, vector<4x4xf32>, vector<256x4xf32> -> vector<256x4xf32>
    %60 = arith.addf %50, %59 : vector<256x4xf32>
    %c0_66 = arith.constant 0 : index
    %c1_67 = arith.constant 1 : index
    %c1_68 = arith.constant 1 : index
    %c0_69 = arith.constant 0 : index
    %c0_70 = arith.constant 0 : index
    %c0_71 = arith.constant 0 : index
    %61 = vector.load %arg5[%c0_66, %c1_67, %c1_68, %c0_69, %c0_70, %c0_71] : memref<2x2x2x2x4x4xf32, #tpu.memory_space<vmem>>, vector<1x1x1x1x4x4xf32>
    %62 = vector.shape_cast %61 : vector<1x1x1x1x4x4xf32> to vector<4x4xf32>
    %cst_72 = arith.constant dense<0.000000e+00> : vector<256x4xf32>
    %63 = tpu.matmul %56, %62, %cst_72 {dimension_numbers = #tpu.dot_dimension_numbers<[1], [0], [0], [1], [0, 0, 1, 1], [], []>} : vector<256x4xf32>, vector<4x4xf32>, vector<256x4xf32> -> vector<256x4xf32>
    %64 = arith.addf %44, %63 : vector<256x4xf32>
    %c1_73 = arith.constant 1 : index
    %c0_74 = arith.constant 0 : index
    %c0_75 = arith.constant 0 : index
    %c1_76 = arith.constant 1 : index
    %c0_77 = arith.constant 0 : index
    %c0_78 = arith.constant 0 : index
    %65 = vector.load %arg5[%c1_73, %c0_74, %c0_75, %c1_76, %c0_77, %c0_78] : memref<2x2x2x2x4x4xf32, #tpu.memory_space<vmem>>, vector<1x1x1x1x4x4xf32>
    %66 = vector.shape_cast %65 : vector<1x1x1x1x4x4xf32> to vector<4x4xf32>
    %cst_79 = arith.constant dense<0.000000e+00> : vector<256x4xf32>
    %67 = tpu.matmul %56, %66, %cst_79 {dimension_numbers = #tpu.dot_dimension_numbers<[1], [0], [0], [1], [0, 0, 1, 1], [], []>} : vector<256x4xf32>, vector<4x4xf32>, vector<256x4xf32> -> vector<256x4xf32>
    %68 = arith.addf %54, %67 : vector<256x4xf32>
    %c1_80 = arith.constant 1 : index
    %c1_81 = arith.constant 1 : index
    %c0_82 = arith.constant 0 : index
    %c0_83 = arith.constant 0 : index
    %c0_84 = arith.constant 0 : index
    %c0_85 = arith.constant 0 : index
    %69 = vector.load %arg5[%c1_80, %c1_81, %c0_82, %c0_83, %c0_84, %c0_85] : memref<2x2x2x2x4x4xf32, #tpu.memory_space<vmem>>, vector<1x1x1x1x4x4xf32>
    %70 = vector.shape_cast %69 : vector<1x1x1x1x4x4xf32> to vector<4x4xf32>
    %cst_86 = arith.constant dense<0.000000e+00> : vector<256x4xf32>
    %71 = tpu.matmul %56, %70, %cst_86 {dimension_numbers = #tpu.dot_dimension_numbers<[1], [0], [0], [1], [0, 0, 1, 1], [], []>} : vector<256x4xf32>, vector<4x4xf32>, vector<256x4xf32> -> vector<256x4xf32>
    %72 = arith.addf %22, %71 : vector<256x4xf32>
    %73 = vector.extract_strided_slice %18 {offsets = [1, 0, 0], sizes = [16, 16, 4], strides = [1, 1, 1]} : vector<18x16x4xf32> to vector<16x16x4xf32>
    %74 = vector.shape_cast %73 : vector<16x16x4xf32> to vector<256x4xf32>
    %c0_87 = arith.constant 0 : index
    %c1_88 = arith.constant 1 : index
    %c1_89 = arith.constant 1 : index
    %c1_90 = arith.constant 1 : index
    %c0_91 = arith.constant 0 : index
    %c0_92 = arith.constant 0 : index
    %75 = vector.load %arg5[%c0_87, %c1_88, %c1_89, %c1_90, %c0_91, %c0_92] : memref<2x2x2x2x4x4xf32, #tpu.memory_space<vmem>>, vector<1x1x1x1x4x4xf32>
    %76 = vector.shape_cast %75 : vector<1x1x1x1x4x4xf32> to vector<4x4xf32>
    %cst_93 = arith.constant dense<0.000000e+00> : vector<256x4xf32>
    %77 = tpu.matmul %74, %76, %cst_93 {dimension_numbers = #tpu.dot_dimension_numbers<[1], [0], [0], [1], [0, 0, 1, 1], [], []>} : vector<256x4xf32>, vector<4x4xf32>, vector<256x4xf32> -> vector<256x4xf32>
    %78 = arith.addf %64, %77 : vector<256x4xf32>
    %c1_94 = arith.constant 1 : index
    %c1_95 = arith.constant 1 : index
    %c0_96 = arith.constant 0 : index
    %c1_97 = arith.constant 1 : index
    %c0_98 = arith.constant 0 : index
    %c0_99 = arith.constant 0 : index
    %79 = vector.load %arg5[%c1_94, %c1_95, %c0_96, %c1_97, %c0_98, %c0_99] : memref<2x2x2x2x4x4xf32, #tpu.memory_space<vmem>>, vector<1x1x1x1x4x4xf32>
    %80 = vector.shape_cast %79 : vector<1x1x1x1x4x4xf32> to vector<4x4xf32>
    %cst_100 = arith.constant dense<0.000000e+00> : vector<256x4xf32>
    %81 = tpu.matmul %74, %80, %cst_100 {dimension_numbers = #tpu.dot_dimension_numbers<[1], [0], [0], [1], [0, 0, 1, 1], [], []>} : vector<256x4xf32>, vector<4x4xf32>, vector<256x4xf32> -> vector<256x4xf32>
    %82 = arith.addf %72, %81 : vector<256x4xf32>
    %83 = vector.extract_strided_slice %16 {offsets = [2, 0, 0], sizes = [16, 16, 4], strides = [1, 1, 1]} : vector<18x16x4xf32> to vector<16x16x4xf32>
    %84 = vector.shape_cast %83 : vector<16x16x4xf32> to vector<256x4xf32>
    %c1_101 = arith.constant 1 : index
    %c0_102 = arith.constant 0 : index
    %c1_103 = arith.constant 1 : index
    %c0_104 = arith.constant 0 : index
    %c0_105 = arith.constant 0 : index
    %c0_106 = arith.constant 0 : index
    %85 = vector.load %arg5[%c1_101, %c0_102, %c1_103, %c0_104, %c0_105, %c0_106] : memref<2x2x2x2x4x4xf32, #tpu.memory_space<vmem>>, vector<1x1x1x1x4x4xf32>
    %86 = vector.shape_cast %85 : vector<1x1x1x1x4x4xf32> to vector<4x4xf32>
    %cst_107 = arith.constant dense<0.000000e+00> : vector<256x4xf32>
    %87 = tpu.matmul %84, %86, %cst_107 {dimension_numbers = #tpu.dot_dimension_numbers<[1], [0], [0], [1], [0, 0, 1, 1], [], []>} : vector<256x4xf32>, vector<4x4xf32>, vector<256x4xf32> -> vector<256x4xf32>
    %88 = arith.addf %68, %87 : vector<256x4xf32>
    %89 = vector.extract_strided_slice %13 {offsets = [2, 0, 0], sizes = [16, 16, 4], strides = [1, 1, 1]} : vector<18x16x4xf32> to vector<16x16x4xf32>
    %90 = vector.shape_cast %89 : vector<16x16x4xf32> to vector<256x4xf32>
    %c1_108 = arith.constant 1 : index
    %c0_109 = arith.constant 0 : index
    %c1_110 = arith.constant 1 : index
    %c1_111 = arith.constant 1 : index
    %c0_112 = arith.constant 0 : index
    %c0_113 = arith.constant 0 : index
    %91 = vector.load %arg5[%c1_108, %c0_109, %c1_110, %c1_111, %c0_112, %c0_113] : memref<2x2x2x2x4x4xf32, #tpu.memory_space<vmem>>, vector<1x1x1x1x4x4xf32>
    %92 = vector.shape_cast %91 : vector<1x1x1x1x4x4xf32> to vector<4x4xf32>
    %cst_114 = arith.constant dense<0.000000e+00> : vector<256x4xf32>
    %93 = tpu.matmul %90, %92, %cst_114 {dimension_numbers = #tpu.dot_dimension_numbers<[1], [0], [0], [1], [0, 0, 1, 1], [], []>} : vector<256x4xf32>, vector<4x4xf32>, vector<256x4xf32> -> vector<256x4xf32>
    %94 = arith.addf %88, %93 : vector<256x4xf32>
    %c1_115 = arith.constant 1 : index
    %c1_116 = arith.constant 1 : index
    %c1_117 = arith.constant 1 : index
    %c0_118 = arith.constant 0 : index
    %c0_119 = arith.constant 0 : index
    %c0_120 = arith.constant 0 : index
    %95 = vector.load %arg5[%c1_115, %c1_116, %c1_117, %c0_118, %c0_119, %c0_120] : memref<2x2x2x2x4x4xf32, #tpu.memory_space<vmem>>, vector<1x1x1x1x4x4xf32>
    %96 = vector.shape_cast %95 : vector<1x1x1x1x4x4xf32> to vector<4x4xf32>
    %cst_121 = arith.constant dense<0.000000e+00> : vector<256x4xf32>
    %97 = tpu.matmul %90, %96, %cst_121 {dimension_numbers = #tpu.dot_dimension_numbers<[1], [0], [0], [1], [0, 0, 1, 1], [], []>} : vector<256x4xf32>, vector<4x4xf32>, vector<256x4xf32> -> vector<256x4xf32>
    %98 = arith.addf %82, %97 : vector<256x4xf32>
    %99 = vector.extract_strided_slice %18 {offsets = [2, 0, 0], sizes = [16, 16, 4], strides = [1, 1, 1]} : vector<18x16x4xf32> to vector<16x16x4xf32>
    %100 = vector.shape_cast %99 : vector<16x16x4xf32> to vector<256x4xf32>
    %c1_122 = arith.constant 1 : index
    %c1_123 = arith.constant 1 : index
    %c1_124 = arith.constant 1 : index
    %c1_125 = arith.constant 1 : index
    %c0_126 = arith.constant 0 : index
    %c0_127 = arith.constant 0 : index
    %101 = vector.load %arg5[%c1_122, %c1_123, %c1_124, %c1_125, %c0_126, %c0_127] : memref<2x2x2x2x4x4xf32, #tpu.memory_space<vmem>>, vector<1x1x1x1x4x4xf32>
    %102 = vector.shape_cast %101 : vector<1x1x1x1x4x4xf32> to vector<4x4xf32>
    %cst_128 = arith.constant dense<0.000000e+00> : vector<256x4xf32>
    %103 = tpu.matmul %100, %102, %cst_128 {dimension_numbers = #tpu.dot_dimension_numbers<[1], [0], [0], [1], [0, 0, 1, 1], [], []>} : vector<256x4xf32>, vector<4x4xf32>, vector<256x4xf32> -> vector<256x4xf32>
    %104 = arith.addf %98, %103 : vector<256x4xf32>
    %c0_129 = arith.constant 0 : index
    %c0_130 = arith.constant 0 : index
    %105 = vector.load %arg6[%c0_129, %c0_130] : memref<1x4xf32, #tpu.memory_space<vmem>>, vector<1x4xf32>
    %106 = vector.broadcast %105 : vector<1x4xf32> to vector<256x4xf32>
    %107 = arith.addf %60, %106 : vector<256x4xf32>
    %108 = vector.broadcast %105 : vector<1x4xf32> to vector<256x4xf32>
    %109 = arith.addf %78, %108 : vector<256x4xf32>
    %110 = tpu.concatenate %107, %109 in 1 : vector<256x4xf32>, vector<256x4xf32> -> vector<256x8xf32>
    %111 = vector.shape_cast %110 : vector<256x8xf32> to vector<16x16x8xf32>
    %c0_131 = arith.constant 0 : index
    %c0_132 = arith.constant 0 : index
    %c0_133 = arith.constant 0 : index
    %c0_134 = arith.constant 0 : index
    %c0_135 = arith.constant 0 : index
    %112 = vector.load %arg7[%c0_131, %c0_132, %c0_133, %c0_134, %c0_135] : memref<1x16x2x16x8xf32, #tpu.memory_space<vmem>>, vector<1x16x1x16x8xf32>
    %113 = vector.shape_cast %112 : vector<1x16x1x16x8xf32> to vector<16x16x8xf32>
    %114 = vector.shape_cast %111 : vector<16x16x8xf32> to vector<1x16x1x16x8xf32>
    tpu.vector_store %arg7[%c0_131, %c0_132, %c0_133, %c0_134, %c0_135], %114 {strides = array<i32>} : memref<1x16x2x16x8xf32, #tpu.memory_space<vmem>>, vector<1x16x1x16x8xf32>,
    %115 = vector.broadcast %105 : vector<1x4xf32> to vector<256x4xf32>
    %116 = arith.addf %94, %115 : vector<256x4xf32>
    %117 = vector.broadcast %105 : vector<1x4xf32> to vector<256x4xf32>
    %118 = arith.addf %104, %117 : vector<256x4xf32>
    %119 = tpu.concatenate %116, %118 in 1 : vector<256x4xf32>, vector<256x4xf32> -> vector<256x8xf32>
    %120 = vector.shape_cast %119 : vector<256x8xf32> to vector<16x16x8xf32>
    %c0_136 = arith.constant 0 : index
    %c0_137 = arith.constant 0 : index
    %c1_138 = arith.constant 1 : index
    %c0_139 = arith.constant 0 : index
    %c0_140 = arith.constant 0 : index
    %121 = vector.load %arg7[%c0_136, %c0_137, %c1_138, %c0_139, %c0_140] : memref<1x16x2x16x8xf32, #tpu.memory_space<vmem>>, vector<1x16x1x16x8xf32>
    %122 = vector.shape_cast %121 : vector<1x16x1x16x8xf32> to vector<16x16x8xf32>
    %123 = vector.shape_cast %120 : vector<16x16x8xf32> to vector<1x16x1x16x8xf32>
    tpu.vector_store %arg7[%c0_136, %c0_137, %c1_138, %c0_139, %c0_140], %123 {strides = array<i32>} : memref<1x16x2x16x8xf32, #tpu.memory_space<vmem>>, vector<1x16x1x16x8xf32>,
    return
  }
  func.func @transform_0(%arg0: i32, %arg1: i32) -> (i32, i32, i32, i32) {
    %c16_i32 = arith.constant 16 : i32
    %0 = arith.muli %arg1, %c16_i32 : i32
    %c1_i32 = arith.constant 1 : i32
    %1 = arith.subi %0, %c1_i32 : i32
    %c0_i32 = arith.constant 0 : i32
    %2 = arith.maxsi %1, %c0_i32 : i32
    %c0_i32_0 = arith.constant 0 : i32
    %c0_i32_1 = arith.constant 0 : i32
    %c0_i32_2 = arith.constant 0 : i32
    return %arg0, %2, %c0_i32_0, %c0_i32_1 : i32, i32, i32, i32
  }
  func.func @transform_1(%arg0: i32, %arg1: i32) -> (i32, i32, i32, i32) {
    %c0_i32 = arith.constant 0 : i32
    %c0_i32_0 = arith.constant 0 : i32
    %c0_i32_1 = arith.constant 0 : i32
    return %arg0, %arg1, %c0_i32, %c0_i32_0 : i32, i32, i32, i32
  }
  func.func @transform_2(%arg0: i32, %arg1: i32) -> (i32, i32, i32, i32) {
    %c16_i32 = arith.constant 16 : i32
    %0 = arith.muli %arg1, %c16_i32 : i32
    %c16_i32_0 = arith.constant 16 : i32
    %1 = arith.addi %0, %c16_i32_0 : i32
    %c15_i32 = arith.constant 15 : i32
    %2 = arith.minsi %1, %c15_i32 : i32
    %c0_i32 = arith.constant 0 : i32
    %c0_i32_1 = arith.constant 0 : i32
    %c0_i32_2 = arith.constant 0 : i32
    return %arg0, %2, %c0_i32, %c0_i32_1 : i32, i32, i32, i32
  }
  func.func @transform_3(%arg0: i32, %arg1: i32) -> (i32, i32, i32, i32, i32, i32) {
    %c0_i32 = arith.constant 0 : i32
    %c0_i32_0 = arith.constant 0 : i32
    %c0_i32_1 = arith.constant 0 : i32
    %c0_i32_2 = arith.constant 0 : i32
    %c0_i32_3 = arith.constant 0 : i32
    %c0_i32_4 = arith.constant 0 : i32
    %c0_i32_5 = arith.constant 0 : i32
    return %c0_i32, %c0_i32_0, %c0_i32_1, %c0_i32_2, %c0_i32_3, %c0_i32_4 : i32, i32, i32, i32, i32, i32
  }
  func.func @transform_4(%arg0: i32, %arg1: i32) -> (i32, i32) {
    %c0_i32 = arith.constant 0 : i32
    %c0_i32_0 = arith.constant 0 : i32
    %c0_i32_1 = arith.constant 0 : i32
    return %c0_i32, %c0_i32_0 : i32, i32
  }
  func.func @transform_5(%arg0: i32, %arg1: i32) -> (i32, i32, i32, i32, i32) {
    %c0_i32 = arith.constant 0 : i32
    %c0_i32_0 = arith.constant 0 : i32
    %c0_i32_1 = arith.constant 0 : i32
    %c0_i32_2 = arith.constant 0 : i32
    return %arg0, %arg1, %c0_i32, %c0_i32_0, %c0_i32_1 : i32, i32, i32, i32, i32
  }
}

</mosaic_0001>

<bundles_post_ra>
// kernel: tpu_custom_call.1
= control target key start
LH: loop header
LB: loop body
LE: loop exit
PB: predicated region body
PF: predicated region fallthrough
CT: control target
= control target key end

     0   :  { %s7918_s18 = smov 0   ;;  %s7920_s19 = smov 0   ;;  %s10134_s0 = inlined_call_operand.vmem [shape: f32[2,16,16,4], index: 0, kind: input, shape index: {}]   ;;  %s10135_s1 = inlined_call_operand.vmem [shape: f32[2,16,16,4], index: 1, kind: input, shape index: {}]   ;;  %s10136_s2 = inlined_call_operand.vmem [shape: f32[2,16,16,4], index: 2, kind: input, shape index: {}]   ;;  %s10137_s3 = inlined_call_operand.vmem [shape: f32[2,2,2,2,4,4], index: 3, kind: input, shape index: {}]   ;;  %s10138_s4 = inlined_call_operand.vmem [shape: f32[1,4], index: 4, kind: input, shape index: {}]   ;;  %s10139_s5 = inlined_call_operand.vmem [shape: f32[2,16,2,16,8], index: 5, kind: output, shape index: {}]  }
   0x1   :  { %s7922_s0 = smov 0  }
   0x2 LB: > { %s27_s2 = sadd.s32 1, %s7880_s19  ;;  %p5512_p0 = scmp.ge.s32.totalorder %s7884_s0, 1  ;;  %s7884_s0 = sphi %s7922_s0, %s15_s0   ;;  %s7880_s19 = sphi %s7920_s19, %s10439_s19   ;;  %s7876_s18 = sphi %s7918_s18, %s10438_s18  }
   0x3   : > { %p29_p1 = scmp.ge.s32.totalorder %s27_s2, 2  ;;  %p273_p2 = scmp.lt.s32.totalorder %s7884_s0, 3 }
   0x5   : > { %s10441_s2 = smov (%p29_p1, %s27_s2), 0  ;;  %p274_p3 = pnand %p5512_p0, %p273_p2 }
   0x7   : > { %277 = sbr.rel (%p274_p3) target bundleno = 859 (0x35b), region = 40 }
   0xe   : > { %v5521_v0 = vld [vmem:[%s10137_s3 + $0x4] sm:$0xf]  ;;  %vm728_vm0 = vcmask 1043456   ;;  %v660_v1 = vld [vmem:[%s10137_s3] sm:$0xf]  ;;  %v10140_v2 = vmov 0.0  }
   0xf   : > { %6624 = vmatprep.subr.msk.mxu0 %vm728_vm0, %v5521_v0  ;;  %6626 = vmatprep.mubr.f32.mxu0 %v10140_v2  ;;  %v5587_v3 = vld [vmem:[%s10137_s3 + $0x14] sm:$0xf]  ;;  %v7948_v4 = vrot.slane %v10140_v2, 1  ;;  %p355_p4 = scmp.lt.s32.totalorder %s7876_s18, 1  ;;  %vm569_vm1 = vcmask 1046528   ;;  %vm663_vm2 = vcmask 31744  }
  0x10   : > { %6625 = vmatpush3.msk.msra.mxu0 %vm728_vm0, %v5521_v0  ;;  %6724 = vmatprep.subr.msk.mxu1 %vm728_vm0, %v5587_v3  ;;  %v5586_v5 = vld [vmem:[%s10137_s3 + $0x10] sm:$0xf]  ;;  %v7966_v7 = vld [vmem:[%s10137_s3 + $0x8] sm:$0xf]  ;;  %v7977_v8 = vld [vmem:[%s10137_s3 + $0x18] sm:$0xf] }
  0x11   : > { %10251 = vst [vmem:[#allocation2_spill] sm:$0xff] %v7948_v4  ;;  %6674 = vmatprep.subr.msk.mxu0 %vm728_vm0, %v660_v1  ;;  %6627 = vmatmul.mubr.f32.vlgmr.msra.gmra.mrb[0].mxu0 %v10140_v2  ;;  %s10443_s18 = smov (!%p355_p4, %s7876_s18), 1  ;;  %v7961_v6 = vsel %vm569_vm1, %v7948_v4, 0.0  ;;  %vm478_vm3 = vcmask 1040384   ;;  %vm5080_vm4 = vcmask 64512  }
  0x12   : > { %10252 = vst [vmem:[#allocation3_spill] sm:$0xff] %v7961_v6  ;;  %6675 = vmatpush3.msk.msra.mxu0 %vm728_vm0, %v660_v1  ;;  %6725 = vmatpush3.msk.msra.mxu1 %vm728_vm0, %v5587_v3  ;;  %s6092_s30 = sshll.u32 %s10443_s18, 8  ;;  %s6095_s11 = sshll.u32 %s10443_s18, 9 }
  0x13   : > { %6726 = vmatprep.mubr.msk.f32.mxu1 %vm663_vm2, %v7948_v4  ;;  %6774 = vmatprep.subr.msk.mxu1 %vm728_vm0, %v5586_v5  ;;  %s7982_s10 = scalar_lea.vmem %s10135_s1, %s6092_s30  ;;  %s9675_s14 = scalar_lea.vmem %s10139_s5, %s6095_s11 }
  0x14   : > { %6727 = vmatmul.mubr.msk.f32.vlgmr.msra.gmra.mrb[0].mxu1 %vm663_vm2, %v7961_v6  ;;  %6824 = vmatprep.subr.msk.mxu0 %vm728_vm0, %v7966_v7  ;;  %v7989_v9 = vld [vmem:[%s7982_s10] sm:$0xff]  ;;  %v7992_v10 = vld [vmem:[%s7982_s10 + $0x8] sm:$0xff]  ;;  %v7995_v11 = vld [vmem:[%s7982_s10 + $0x10] sm:$0xff] }
  0x15   : > { %6775 = vmatpush3.msk.msra.mxu1 %vm728_vm0, %v5586_v5  ;;  %6629 = vmatprep.mubr.msk.f32.mxu0 %vm663_vm2, %v7989_v9  ;;  %v573_v12 = vrot.slane %v7989_v9, 1  ;;  %v574_v13 = vrot.slane %v7992_v10, 1  ;;  %v8003_v14 = vld [vmem:[%s7982_s10 + $0x18] sm:$0xff]  ;;  %v576_v15 = vrot.slane %v7995_v11, 1  ;;  %v8007_v16 = vld [vmem:[%s7982_s10 + $0x20] sm:$0xff]  ;;  %v8010_v17 = vld [vmem:[%s7982_s10 + $0x28] sm:$0xff] }
  0x16   : > { %6924 = vmatprep.subr.msk.mxu1 %vm728_vm0, %v7977_v8  ;;  %6630 = vmatmul.mubr.msk.f32.gmra.mrb[2].mxu0 %vm663_vm2, %v7992_v10  ;;  %v577_v18 = vrot.slane %v8003_v14, 1  ;;  %v579_v21 = vrot.slane %v8007_v16, 1  ;;  %v580_v22 = vrot.slane %v8010_v17, 1  ;;  %v8033_v24 = vld [vmem:[%s7982_s10 + $0x30] sm:$0xff]  ;;  %v8036_v25 = vld [vmem:[%s7982_s10 + $0x38] sm:$0xff]  ;;  %v8055_v30 = vld [vmem:[%s7982_s10 + $0x40] sm:$0xff] }
  0x17   : > { %v8018_v19 = vsel %vm569_vm1, %v573_v12, %v574_v13  ;;  %6632 = vmatprep.mubr.msk.f32.mxu0 %vm663_vm2, %v7995_v11  ;;  %v8023_v20 = vsel %vm569_vm1, %v574_v13, 0.0  ;;  %v582_v28 = vrot.slane %v8033_v24, 1  ;;  %v583_v29 = vrot.slane %v8036_v25, 1  ;;  %v8058_v31 = vld [vmem:[%s7982_s10 + $0x48] sm:$0xff]  ;;  %v8077_v36 = vld [vmem:[%s7982_s10 + $0x50] sm:$0xff]  ;;  %v8080_v37 = vld [vmem:[%s7982_s10 + $0x58] sm:$0xff] }
  0x18   : > { %10253 = vst [vmem:[#allocation4_spill] sm:$0xff] %v8018_v19  ;;  %10254 = vst [vmem:[#allocation5_spill] sm:$0xff] %v8023_v20  ;;  %6729 = vmatprep.mubr.msk.f32.mxu1 %vm663_vm2, %v8018_v19  ;;  %v8030_v23 = vsel %vm569_vm1, %v576_v15, %v577_v18  ;;  %v8045_v26 = vsel %vm569_vm1, %v577_v18, 0.0  ;;  %v8050_v27 = vsel %vm569_vm1, %v579_v21, %v580_v22  ;;  %v8067_v32 = vsel %vm569_vm1, %v580_v22, 0.0  ;;  %v8099_v42 = vld [vmem:[%s7982_s10 + $0x60] sm:$0xff]  ;;  %v8102_v43 = vld [vmem:[%s7982_s10 + $0x68] sm:$0xff] }
  0x19   : > { %10255 = vst [vmem:[#allocation6_spill] sm:$0xff] %v8030_v23  ;;  %6730 = vmatmul.mubr.msk.f32.gmra.mrb[2].mxu1 %vm663_vm2, %v8023_v20  ;;  %10256 = vst [vmem:[#allocation7_spill] sm:$0xff] %v8045_v26  ;;  %v8072_v33 = vsel %vm569_vm1, %v582_v28, %v583_v29  ;;  %v585_v34 = vrot.slane %v8055_v30, 1  ;;  %v586_v35 = vrot.slane %v8058_v31, 1  ;;  %v8089_v38 = vsel %vm569_vm1, %v583_v29, 0.0  ;;  %v8121_v48 = vld [vmem:[%s7982_s10 + $0x70] sm:$0xff] }
  0x1a   : > { %6633 = vmatmul.mubr.msk.f32.gmra.mrb[4].mxu0 %vm663_vm2, %v8003_v14  ;;  %6732 = vmatprep.mubr.msk.f32.mxu1 %vm663_vm2, %v8030_v23  ;;  %10257 = vst [vmem:[#allocation8_spill] sm:$0xff] %v8050_v27  ;;  %10258 = vst [vmem:[#allocation9_spill] sm:$0xff] %v8067_v32  ;;  %v588_v40 = vrot.slane %v8077_v36, 1  ;;  %v589_v41 = vrot.slane %v8080_v37, 1  ;;  %v591_v46 = vrot.slane %v8099_v42, 1  ;;  %v592_v47 = vrot.slane %v8102_v43, 1 }
  0x1b   : > { %6635 = vmatprep.mubr.msk.f32.mxu0 %vm663_vm2, %v8007_v16  ;;  %10259 = vst [vmem:[#allocation10_spill] sm:$0xff] %v8072_v33  ;;  %10260 = vst [vmem:[#allocation11_spill] sm:$0xff] %v8089_v38  ;;  %v8094_v39 = vsel %vm569_vm1, %v585_v34, %v586_v35  ;;  %v8111_v44 = vsel %vm569_vm1, %v586_v35, 0.0  ;;  %v8124_v49 = vld [vmem:[%s7982_s10 + $0x78] sm:$0xff]  ;;  %v594_v52 = vrot.slane %v8121_v48, 1  ;;  %v8143_v54 = vld [vmem:[%s7982_s10 + $0x80] sm:$0xff] }
  0x1c   : > { %10261 = vst [vmem:[#allocation12_spill] sm:$0xff] %v8094_v39  ;;  %10262 = vst [vmem:[#allocation13_spill] sm:$0xff] %v8111_v44  ;;  %v8116_v45 = vsel %vm569_vm1, %v588_v40, %v589_v41  ;;  %v8133_v50 = vsel %vm569_vm1, %v589_v41, 0.0  ;;  %v8138_v51 = vsel %vm569_vm1, %v591_v46, %v592_v47  ;;  %v595_v53 = vrot.slane %v8124_v49, 1  ;;  %v8146_v55 = vld [vmem:[%s7982_s10 + $0x88] sm:$0xff]  ;;  %v8165_v60 = vld [vmem:[%s7982_s10 + $0x90] sm:$0xff] }
  0x1d   : > { %6733 = vmatmul.mubr.msk.f32.gmra.mrb[4].mxu1 %vm663_vm2, %v8045_v26  ;;  %10263 = vst [vmem:[#allocation14_spill] sm:$0xff] %v8116_v45  ;;  %10264 = vst [vmem:[#allocation15_spill] sm:$0xff] %v8133_v50  ;;  %v8155_v56 = vsel %vm569_vm1, %v592_v47, 0.0  ;;  %v597_v58 = vrot.slane %v8143_v54, 1  ;;  %v598_v59 = vrot.slane %v8146_v55, 1  ;;  %v8168_v61 = vld [vmem:[%s7982_s10 + $0x98] sm:$0xff] }
  0x1e   : > { %6636 = vmatmul.mubr.msk.f32.gmra.mrb[6].mxu0 %vm663_vm2, %v8010_v17  ;;  %6735 = vmatprep.mubr.msk.f32.mxu1 %vm663_vm2, %v8050_v27  ;;  %10265 = vst [vmem:[#allocation16_spill] sm:$0xff] %v8138_v51  ;;  %10266 = vst [vmem:[#allocation17_spill] sm:$0xff] %v8155_v56  ;;  %v8160_v57 = vsel %vm569_vm1, %v594_v52, %v595_v53  ;;  %v8177_v62 = vsel %vm569_vm1, %v595_v53, 0.0  ;;  %v600_v0 = vrot.slane %v8165_v60, 1  ;;  %v601_v1 = vrot.slane %v8168_v61, 1  ;;  %v8187_v3 = vld [vmem:[%s7982_s10 + $0xa0] sm:$0xff] }
  0x1f   : > { %6638 = vmatprep.mubr.msk.f32.mxu0 %vm663_vm2, %v8033_v24  ;;  %10267 = vst [vmem:[#allocation18_spill] sm:$0xff] %v8160_v57  ;;  %10268 = vst [vmem:[#allocation19_spill] sm:$0xff] %v8177_v62  ;;  %v8182_v63 = vsel %vm569_vm1, %v597_v58, %v598_v59  ;;  %v8190_v5 = vld [vmem:[%s7982_s10 + $0xa8] sm:$0xff]  ;;  %v8199_v12 = vsel %vm569_vm1, %v598_v59, 0.0  ;;  %v603_v15 = vrot.slane %v8187_v3, 1  ;;  %v8209_v21 = vld [vmem:[%s7982_s10 + $0xb0] sm:$0xff] }
  0x20   : > { %10269 = vst [vmem:[#allocation20_spill] sm:$0xff] %v8182_v63  ;;  %10270 = vst [vmem:[#allocation21_spill] sm:$0xff] %v8199_v12  ;;  %v8204_v13 = vsel %vm569_vm1, %v600_v0, %v601_v1  ;;  %v604_v18 = vrot.slane %v8190_v5, 1  ;;  %v8212_v22 = vld [vmem:[%s7982_s10 + $0xb8] sm:$0xff]  ;;  %v8221_v28 = vsel %vm569_vm1, %v601_v1, 0.0  ;;  %v606_v34 = vrot.slane %v8209_v21, 1 }
  0x21   : > { %6736 = vmatmul.mubr.msk.f32.gmra.mrb[6].mxu1 %vm663_vm2, %v8067_v32  ;;  %10271 = vst [vmem:[#allocation22_spill] sm:$0xff] %v8204_v13  ;;  %10272 = vst [vmem:[#allocation23_spill] sm:$0xff] %v8221_v28  ;;  %v607_v35 = vrot.slane %v8212_v22, 1  ;;  %v8231_v40 = vld [vmem:[%s7982_s10 + $0xc0] sm:$0xff]  ;;  %v8234_v41 = vld [vmem:[%s7982_s10 + $0xc8] sm:$0xff] }
  0x22   : > { %6639 = vmatmul.mubr.msk.f32.gmra.mrb[8].mxu0 %vm663_vm2, %v8036_v25  ;;  %6738 = vmatprep.mubr.msk.f32.mxu1 %vm663_vm2, %v8072_v33  ;;  %v8226_v29 = vsel %vm569_vm1, %v603_v15, %v604_v18  ;;  %10274 = vst [vmem:[#allocation25_spill] sm:$0xff] %v8234_v41  ;;  %v8243_v46 = vsel %vm569_vm1, %v604_v18, 0.0  ;;  %v609_v52 = vrot.slane %v8231_v40, 1  ;;  %v610_v53 = vrot.slane %v8234_v41, 1  ;;  %v8253_v58 = vld [vmem:[%s7982_s10 + $0xd0] sm:$0xff]  ;;  %v8256_v59 = vld [vmem:[%s7982_s10 + $0xd8] sm:$0xff] }
  0x23   : > { %6641 = vmatprep.mubr.msk.f32.mxu0 %vm663_vm2, %v8055_v30  ;;  %10273 = vst [vmem:[#allocation24_spill] sm:$0xff] %v8226_v29  ;;  %10275 = vst [vmem:[#allocation26_spill] sm:$0xff] %v8243_v46  ;;  %v8248_v47 = vsel %vm569_vm1, %v606_v34, %v607_v35  ;;  %v8265_v0 = vsel %vm569_vm1, %v607_v35, 0.0  ;;  %v612_v15 = vrot.slane %v8253_v58, 1  ;;  %v613_v18 = vrot.slane %v8256_v59, 1  ;;  %v8275_v34 = vld [vmem:[%s7982_s10 + $0xe0] sm:$0xff] }
  0x24   : > { %10276 = vst [vmem:[#allocation27_spill] sm:$0xff] %v8248_v47  ;;  %10277 = vst [vmem:[#allocation28_spill] sm:$0xff] %v8253_v58  ;;  %v8270_v1 = vsel %vm569_vm1, %v609_v52, %v610_v53  ;;  %v8278_v2 = vld [vmem:[%s7982_s10 + $0xe8] sm:$0xff]  ;;  %v8287_v35 = vsel %vm569_vm1, %v610_v53, 0.0  ;;  %v615_v6 = vrot.slane %v8275_v34, 1  ;;  %v515_v33 = vrot.slane %v8209_v21, 7 }
  0x25   : > { %6739 = vmatmul.mubr.msk.f32.gmra.mrb[8].mxu1 %vm663_vm2, %v8089_v38  ;;  %10278 = vst [vmem:[#allocation29_spill] sm:$0xff] %v8256_v59  ;;  %10279 = vst [vmem:[#allocation30_spill] sm:$0xff] %v8265_v0  ;;  %v8292_v52 = vsel %vm569_vm1, %v612_v15, %v613_v18  ;;  %v616_v4 = vrot.slane %v8278_v2, 1  ;;  %v8306_v53 = vsel %vm569_vm1, %v613_v18, 0.0  ;;  %v518_v27 = vrot.slane %v8231_v40, 7 }
  0x26   : > { %6642 = vmatmul.mubr.msk.f32.gmra.mrb[10].mxu0 %vm663_vm2, %v8058_v31  ;;  %6741 = vmatprep.mubr.msk.f32.mxu1 %vm663_vm2, %v8094_v39  ;;  %10280 = vst [vmem:[#allocation31_spill] sm:$0xff] %v8270_v1  ;;  %10281 = vst [vmem:[#allocation32_spill] sm:$0xff] %v8275_v34  ;;  %v512_v39 = vrot.slane %v8187_v3, 7  ;;  %v8523_v32 = vsel %vm478_vm3, 0.0, %v515_v33  ;;  %v521_v23 = vrot.slane %v8253_v58, 7  ;;  %v524_v19 = vrot.slane %v8275_v34, 7 }
  0x27   : > { %6644 = vmatprep.mubr.msk.f32.mxu0 %vm663_vm2, %v8077_v36  ;;  %10282 = vst [vmem:[#allocation33_spill] sm:$0xff] %v8278_v2  ;;  %10283 = vst [vmem:[#allocation34_spill] sm:$0xff] %v8287_v35  ;;  %v8311_v15 = vsel %vm569_vm1, %v615_v6, %v616_v4  ;;  %v8325_v18 = vsel %vm569_vm1, %v616_v4, 0.0  ;;  %v483_v6 = vrot.slane %v7992_v10, 7  ;;  %v8539_v26 = vsel %vm478_vm3, 0.0, %v518_v27 }
  0x28   : > { %10284 = vst [vmem:[#allocation35_spill] sm:$0xff] %v8292_v52  ;;  %10287 = vst [vmem:[#allocation37_spill] sm:$0xff] %v8306_v53  ;;  %v8507_v38 = vsel %vm478_vm3, 0.0, %v512_v39  ;;  %v8555_v20 = vsel %vm478_vm3, 0.0, %v521_v23 }
  0x29   : > { %6742 = vmatmul.mubr.msk.f32.gmra.mrb[10].mxu1 %vm663_vm2, %v8111_v44  ;;  %10288 = vst [vmem:[#allocation38_spill] sm:$0xff] %v8311_v15  ;;  %10290 = vst [vmem:[#allocation40_spill] sm:$0xff] %v8325_v18 }
  0x2a   : > { %6645 = vmatmul.mubr.msk.f32.gmra.mrb[12].mxu0 %vm663_vm2, %v8080_v37  ;;  %6744 = vmatprep.mubr.msk.f32.mxu1 %vm663_vm2, %v8116_v45  ;;  %v509_v45 = vrot.slane %v8165_v60, 7  ;;  %10309 = vst [vmem:[#allocation59_spill] sm:$0xff] %v8507_v38  ;;  %10311 = vst [vmem:[#allocation61_spill] sm:$0xff] %v8523_v32 }
  0x2b   : > { %6647 = vmatprep.mubr.msk.f32.mxu0 %vm663_vm2, %v8099_v42  ;;  %10313 = vst [vmem:[#allocation63_spill] sm:$0xff] %v8539_v26  ;;  %10315 = vst [vmem:[#allocation65_spill] sm:$0xff] %v8555_v20 }
  0x2c   : > { %v8491_v44 = vsel %vm478_vm3, 0.0, %v509_v45 }
  0x2d   : > { %6745 = vmatmul.mubr.msk.f32.gmra.mrb[12].mxu1 %vm663_vm2, %v8133_v50  ;;  %10307 = vst [vmem:[#allocation57_spill] sm:$0xff] %v8491_v44 }
  0x2e   : > { %6648 = vmatmul.mubr.msk.f32.gmra.mrb[14].mxu0 %vm663_vm2, %v8102_v43  ;;  %6747 = vmatprep.mubr.msk.f32.mxu1 %vm663_vm2, %v8138_v51  ;;  %v506_v51 = vrot.slane %v8143_v54, 7 }
  0x2f   : > { %6650 = vmatprep.mubr.msk.f32.mxu0 %vm663_vm2, %v8121_v48 }
  0x30   : > { %v8475_v50 = vsel %vm478_vm3, 0.0, %v506_v51 }
  0x31   : > { %6748 = vmatmul.mubr.msk.f32.gmra.mrb[14].mxu1 %vm663_vm2, %v8155_v56  ;;  %10305 = vst [vmem:[#allocation55_spill] sm:$0xff] %v8475_v50 }
  0x32   : > { %6651 = vmatmul.mubr.msk.f32.gmra.mrb[16].mxu0 %vm663_vm2, %v8124_v49  ;;  %6750 = vmatprep.mubr.msk.f32.mxu1 %vm663_vm2, %v8160_v57  ;;  %v503_v57 = vrot.slane %v8121_v48, 7 }
  0x33   : > { %6653 = vmatprep.mubr.msk.f32.mxu0 %vm663_vm2, %v8143_v54 }
  0x34   : > { %v8459_v56 = vsel %vm478_vm3, 0.0, %v503_v57 }
  0x35   : > { %6751 = vmatmul.mubr.msk.f32.gmra.mrb[16].mxu1 %vm663_vm2, %v8177_v62  ;;  %10303 = vst [vmem:[#allocation53_spill] sm:$0xff] %v8459_v56 }
  0x36   : > { %6654 = vmatmul.mubr.msk.f32.gmra.mrb[18].mxu0 %vm663_vm2, %v8146_v55  ;;  %6753 = vmatprep.mubr.msk.f32.mxu1 %vm663_vm2, %v8182_v63  ;;  %v500_v63 = vrot.slane %v8099_v42, 7 }
  0x37   : > { %6656 = vmatprep.mubr.msk.f32.mxu0 %vm663_vm2, %v8165_v60 }
  0x38   : > { %v8443_v62 = vsel %vm478_vm3, 0.0, %v500_v63 }
  0x39   : > { %6754 = vmatmul.mubr.msk.f32.gmra.mrb[18].mxu1 %vm663_vm2, %v8199_v12  ;;  %10301 = vst [vmem:[#allocation51_spill] sm:$0xff] %v8443_v62 }
  0x3a   : > { %6657 = vmatmul.mubr.msk.f32.gmra.mrb[20].mxu0 %vm663_vm2, %v8168_v61  ;;  %6756 = vmatprep.mubr.msk.f32.mxu1 %vm663_vm2, %v8204_v13  ;;  %v497_v13 = vrot.slane %v8077_v36, 7 }
  0x3b   : > { %6659 = vmatprep.mubr.msk.f32.mxu0 %vm663_vm2, %v8187_v3 }
  0x3c   : > { %v8427_v12 = vsel %vm478_vm3, 0.0, %v497_v13 }
  0x3d   : > { %6757 = vmatmul.mubr.msk.f32.gmra.mrb[20].mxu1 %vm663_vm2, %v8221_v28  ;;  %10299 = vst [vmem:[#allocation49_spill] sm:$0xff] %v8427_v12 }
  0x3e   : > { %6660 = vmatmul.mubr.msk.f32.gmra.mrb[22].mxu0 %vm663_vm2, %v8190_v5  ;;  %6759 = vmatprep.mubr.msk.f32.mxu1 %vm663_vm2, %v8226_v29  ;;  %v494_v29 = vrot.slane %v8055_v30, 7 }
  0x3f   : > { %6662 = vmatprep.mubr.msk.f32.mxu0 %vm663_vm2, %v8209_v21 }
  0x40   : > { %v8411_v28 = vsel %vm478_vm3, 0.0, %v494_v29 }
  0x41   : > { %6760 = vmatmul.mubr.msk.f32.gmra.mrb[22].mxu1 %vm663_vm2, %v8243_v46  ;;  %v485_v46 = vrot.slane %v7995_v11, 7  ;;  %10297 = vst [vmem:[#allocation47_spill] sm:$0xff] %v8411_v28 }
  0x42   : > { %6663 = vmatmul.mubr.msk.f32.gmra.mrb[24].mxu0 %vm663_vm2, %v8212_v22  ;;  %6762 = vmatprep.mubr.msk.f32.mxu1 %vm663_vm2, %v8248_v47 }
  0x43   : > { %6665 = vmatprep.mubr.msk.f32.mxu0 %vm663_vm2, %v8231_v40 }
  0x45   : > { %6763 = vmatmul.mubr.msk.f32.gmra.mrb[24].mxu1 %vm663_vm2, %v8265_v0  ;;  %v10285_v0 = vmov 0.0  }
  0x46   : > { %6666 = vmatmul.mubr.msk.f32.gmra.mrb[26].mxu0 %vm663_vm2, %v8234_v41  ;;  %6765 = vmatprep.mubr.msk.f32.mxu1 %vm663_vm2, %v8270_v1  ;;  %v8297_v47 = vrot.slane %v10285_v0, 7 }
  0x47   : > { %6668 = vmatprep.mubr.msk.f32.mxu0 %vm663_vm2, %v8253_v58 }
  0x48   : > { %10286 = vst [vmem:[#allocation36_spill] sm:$0xff] %v8297_v47  ;;  %v8315_v1 = vsel %vm478_vm3, 0.0, %v8297_v47 }
  0x49   : > { %6766 = vmatmul.mubr.msk.f32.gmra.mrb[26].mxu1 %vm663_vm2, %v8287_v35  ;;  %10289 = vst [vmem:[#allocation39_spill] sm:$0xff] %v8315_v1  ;;  %v482_v35 = vrot.slane %v7989_v9, 7 }
  0x4a   : > { %6669 = vmatmul.mubr.msk.f32.gmra.mrb[28].mxu0 %vm663_vm2, %v8256_v59  ;;  %6768 = vmatprep.mubr.msk.f32.mxu1 %vm663_vm2, %v8292_v52 }
  0x4b   : > { %6671 = vmatprep.mubr.msk.f32.mxu0 %vm663_vm2, %v8275_v34  ;;  %v8331_v52 = vsel %vm478_vm3, 0.0, %v482_v35  ;;  %v8349_v4 = vsel %vm478_vm3, %v482_v35, %v483_v6  ;;  %v489_v6 = vrot.slane %v8010_v17, 7 }
  0x4d   : > { %6769 = vmatmul.mubr.msk.f32.gmra.mrb[28].mxu1 %vm663_vm2, %v8306_v53  ;;  %v488_v53 = vrot.slane %v8007_v16, 7 }
  0x4e   : > { %6672 = vmatmul.mubr.msk.f32.gmra.mrb[30].mxu0 %vm663_vm2, %v8278_v2  ;;  %6771 = vmatprep.mubr.msk.f32.mxu1 %vm663_vm2, %v8311_v15  ;;  %v8339_v15 = vld [vmem:[%s10137_s3 + $0xc] sm:$0xf] }
  0x4f   : > { %6676 = vmatprep.mubr.msk.f32.mxu0 %vm663_vm2, %v8315_v1  ;;  %v486_v1 = vrot.slane %v8003_v14, 7 }
  0x51   : > { %6772 = vmatmul.mubr.msk.f32.gmra.mrb[30].mxu1 %vm663_vm2, %v8325_v18  ;;  %v8353_v18 = vsel %vm478_vm3, 0.0, %v485_v46  ;;  %v8371_v35 = vsel %vm478_vm3, %v485_v46, %v486_v1  ;;  %v492_v46 = vrot.slane %v8036_v25, 7 }
  0x52   : > { %6677 = vmatmul.mubr.msk.f32.vlgmr.msra.gmra.mrb[0].mxu0 %vm663_vm2, %v8297_v47  ;;  %6776 = vmatprep.mubr.f32.mxu1 %v10285_v0  ;;  %10291 = vst [vmem:[#allocation41_spill] sm:$0xff] %v8353_v18  ;;  %10292 = vst [vmem:[#allocation42_spill] sm:$0xff] %v8371_v35  ;;  %v8377_v47 = vsel %vm478_vm3, 0.0, %v488_v53 }
  0x53   : > { %6825 = vmatpush3.msk.msra.mxu0 %vm728_vm0, %v7966_v7  ;;  %6679 = vmatprep.mubr.msk.f32.mxu0 %vm663_vm2, %v8331_v52  ;;  %v8362_v7 = vld [vmem:[%s10137_s3 + $0x24] sm:$0xf]  ;;  %10293 = vst [vmem:[#allocation43_spill] sm:$0xff] %v8377_v47 }
  0x54   : > { %6874 = vmatprep.subr.msk.mxu0 %vm728_vm0, %v8339_v15 }
  0x55   : > { %6777 = vmatmul.mubr.f32.vlgmr.msra.gmra.mrb[0].mxu1 %v10285_v0  ;;  %v491_v0 = vrot.slane %v8033_v24, 7 }
  0x56   : > { %6680 = vmatmul.mubr.msk.f32.gmra.mrb[2].mxu0 %vm663_vm2, %v8349_v4  ;;  %6779 = vmatprep.mubr.msk.f32.mxu1 %vm663_vm2, %v7989_v9 }
  0x57   : > { %6682 = vmatprep.mubr.msk.f32.mxu0 %vm663_vm2, %v8353_v18  ;;  %6925 = vmatpush3.msk.msra.mxu1 %vm728_vm0, %v7977_v8  ;;  %v8391_v8 = vsel %vm478_vm3, %v488_v53, %v489_v6  ;;  %v8395_v1 = vsel %vm478_vm3, 0.0, %v491_v0  ;;  %v8407_v53 = vsel %vm478_vm3, %v491_v0, %v492_v46  ;;  %v495_v6 = vrot.slane %v8058_v31, 7 }
  0x58   : > { %6974 = vmatprep.subr.msk.mxu1 %vm728_vm0, %v8362_v7  ;;  %10294 = vst [vmem:[#allocation44_spill] sm:$0xff] %v8391_v8  ;;  %10295 = vst [vmem:[#allocation45_spill] sm:$0xff] %v8395_v1  ;;  %v498_v46 = vrot.slane %v8080_v37, 7 }
  0x59   : > { %6780 = vmatmul.mubr.msk.f32.gmra.mrb[2].mxu1 %vm663_vm2, %v7992_v10  ;;  %10296 = vst [vmem:[#allocation46_spill] sm:$0xff] %v8407_v53  ;;  %v8423_v0 = vsel %vm478_vm3, %v494_v29, %v495_v6  ;;  %v501_v6 = vrot.slane %v8102_v43, 7 }
  0x5a   : > { %6683 = vmatmul.mubr.msk.f32.gmra.mrb[4].mxu0 %vm663_vm2, %v8371_v35  ;;  %6782 = vmatprep.mubr.msk.f32.mxu1 %vm663_vm2, %v7995_v11  ;;  %10298 = vst [vmem:[#allocation48_spill] sm:$0xff] %v8423_v0  ;;  %v8439_v29 = vsel %vm478_vm3, %v497_v13, %v498_v46  ;;  %v504_v46 = vrot.slane %v8124_v49, 7 }
  0x5b   : > { %6685 = vmatprep.mubr.msk.f32.mxu0 %vm663_vm2, %v8377_v47  ;;  %10300 = vst [vmem:[#allocation50_spill] sm:$0xff] %v8439_v29  ;;  %v8455_v13 = vsel %vm478_vm3, %v500_v63, %v501_v6  ;;  %v507_v6 = vrot.slane %v8146_v55, 7 }
  0x5c   : > { %10302 = vst [vmem:[#allocation52_spill] sm:$0xff] %v8455_v13  ;;  %v8471_v63 = vsel %vm478_vm3, %v503_v57, %v504_v46  ;;  %v510_v46 = vrot.slane %v8168_v61, 7 }
  0x5d   : > { %6783 = vmatmul.mubr.msk.f32.gmra.mrb[4].mxu1 %vm663_vm2, %v8003_v14  ;;  %10304 = vst [vmem:[#allocation54_spill] sm:$0xff] %v8471_v63  ;;  %v8487_v57 = vsel %vm478_vm3, %v506_v51, %v507_v6  ;;  %v513_v6 = vrot.slane %v8190_v5, 7 }
  0x5e   : > { %6686 = vmatmul.mubr.msk.f32.gmra.mrb[6].mxu0 %vm663_vm2, %v8391_v8  ;;  %6785 = vmatprep.mubr.msk.f32.mxu1 %vm663_vm2, %v8007_v16  ;;  %10306 = vst [vmem:[#allocation56_spill] sm:$0xff] %v8487_v57  ;;  %v8503_v51 = vsel %vm478_vm3, %v509_v45, %v510_v46  ;;  %v516_v46 = vrot.slane %v8212_v22, 7 }
  0x5f   : > { %6688 = vmatprep.mubr.msk.f32.mxu0 %vm663_vm2, %v8395_v1  ;;  %10308 = vst [vmem:[#allocation58_spill] sm:$0xff] %v8503_v51  ;;  %v8519_v45 = vsel %vm478_vm3, %v512_v39, %v513_v6  ;;  %v519_v6 = vrot.slane %v8234_v41, 7 }
  0x60   : > { %10310 = vst [vmem:[#allocation60_spill] sm:$0xff] %v8519_v45  ;;  %v8535_v39 = vsel %vm478_vm3, %v515_v33, %v516_v46  ;;  %v522_v46 = vrot.slane %v8256_v59, 7 }
  0x61   : > { %6786 = vmatmul.mubr.msk.f32.gmra.mrb[6].mxu1 %vm663_vm2, %v8010_v17  ;;  %10312 = vst [vmem:[#allocation62_spill] sm:$0xff] %v8535_v39  ;;  %v8551_v33 = vsel %vm478_vm3, %v518_v27, %v519_v6  ;;  %v525_v6 = vrot.slane %v8278_v2, 7 }
  0x62   : > { %6689 = vmatmul.mubr.msk.f32.gmra.mrb[8].mxu0 %vm663_vm2, %v8407_v53  ;;  %6788 = vmatprep.mubr.msk.f32.mxu1 %vm663_vm2, %v8033_v24  ;;  %10314 = vst [vmem:[#allocation64_spill] sm:$0xff] %v8551_v33  ;;  %v8567_v27 = vsel %vm478_vm3, %v521_v23, %v522_v46  ;;  %v8614_v46 = vld [vmem:[%s10137_s3 + $0x20] sm:$0xf] }
  0x63   : > { %6691 = vmatprep.mubr.msk.f32.mxu0 %vm663_vm2, %v8411_v28  ;;  %10316 = vst [vmem:[#allocation66_spill] sm:$0xff] %v8567_v27  ;;  %v8582_v23 = vsel %vm478_vm3, %v524_v19, %v525_v6 }
  0x65   : > { %6789 = vmatmul.mubr.msk.f32.gmra.mrb[8].mxu1 %vm663_vm2, %v8036_v25 }
  0x66   : > { %6692 = vmatmul.mubr.msk.f32.gmra.mrb[10].mxu0 %vm663_vm2, %v8423_v0  ;;  %6791 = vmatprep.mubr.msk.f32.mxu1 %vm663_vm2, %v8055_v30 }
  0x67   : > { %6694 = vmatprep.mubr.msk.f32.mxu0 %vm663_vm2, %v8427_v12 }
  0x69   : > { %6792 = vmatmul.mubr.msk.f32.gmra.mrb[10].mxu1 %vm663_vm2, %v8058_v31 }
  0x6a   : > { %6695 = vmatmul.mubr.msk.f32.gmra.mrb[12].mxu0 %vm663_vm2, %v8439_v29  ;;  %6794 = vmatprep.mubr.msk.f32.mxu1 %vm663_vm2, %v8077_v36 }
  0x6b   : > { %6697 = vmatprep.mubr.msk.f32.mxu0 %vm663_vm2, %v8443_v62 }
  0x6d   : > { %6795 = vmatmul.mubr.msk.f32.gmra.mrb[12].mxu1 %vm663_vm2, %v8080_v37 }
  0x6e   : > { %6698 = vmatmul.mubr.msk.f32.gmra.mrb[14].mxu0 %vm663_vm2, %v8455_v13  ;;  %6797 = vmatprep.mubr.msk.f32.mxu1 %vm663_vm2, %v8099_v42 }
  0x6f   : > { %6700 = vmatprep.mubr.msk.f32.mxu0 %vm663_vm2, %v8459_v56 }
  0x71   : > { %6798 = vmatmul.mubr.msk.f32.gmra.mrb[14].mxu1 %vm663_vm2, %v8102_v43 }
  0x72   : > { %6701 = vmatmul.mubr.msk.f32.gmra.mrb[16].mxu0 %vm663_vm2, %v8471_v63  ;;  %6800 = vmatprep.mubr.msk.f32.mxu1 %vm663_vm2, %v8121_v48 }
  0x73   : > { %6703 = vmatprep.mubr.msk.f32.mxu0 %vm663_vm2, %v8475_v50 }
  0x75   : > { %6801 = vmatmul.mubr.msk.f32.gmra.mrb[16].mxu1 %vm663_vm2, %v8124_v49 }
  0x76   : > { %6704 = vmatmul.mubr.msk.f32.gmra.mrb[18].mxu0 %vm663_vm2, %v8487_v57  ;;  %6803 = vmatprep.mubr.msk.f32.mxu1 %vm663_vm2, %v8143_v54 }
  0x77   : > { %6706 = vmatprep.mubr.msk.f32.mxu0 %vm663_vm2, %v8491_v44 }
  0x79   : > { %6804 = vmatmul.mubr.msk.f32.gmra.mrb[18].mxu1 %vm663_vm2, %v8146_v55 }
  0x7a   : > { %6707 = vmatmul.mubr.msk.f32.gmra.mrb[20].mxu0 %vm663_vm2, %v8503_v51  ;;  %6806 = vmatprep.mubr.msk.f32.mxu1 %vm663_vm2, %v8165_v60 }
  0x7b   : > { %6709 = vmatprep.mubr.msk.f32.mxu0 %vm663_vm2, %v8507_v38 }
  0x7d   : > { %6807 = vmatmul.mubr.msk.f32.gmra.mrb[20].mxu1 %vm663_vm2, %v8168_v61 }
  0x7e   : > { %6710 = vmatmul.mubr.msk.f32.gmra.mrb[22].mxu0 %vm663_vm2, %v8519_v45  ;;  %6809 = vmatprep.mubr.msk.f32.mxu1 %vm663_vm2, %v8187_v3 }
  0x7f   : > { %6712 = vmatprep.mubr.msk.f32.mxu0 %vm663_vm2, %v8523_v32 }
  0x81   : > { %6810 = vmatmul.mubr.msk.f32.gmra.mrb[22].mxu1 %vm663_vm2, %v8190_v5 }
  0x82   : > { %6713 = vmatmul.mubr.msk.f32.gmra.mrb[24].mxu0 %vm663_vm2, %v8535_v39  ;;  %6812 = vmatprep.mubr.msk.f32.mxu1 %vm663_vm2, %v8209_v21 }
  0x83   : > { %6715 = vmatprep.mubr.msk.f32.mxu0 %vm663_vm2, %v8539_v26  ;;  %v8571_v26 = vsel %vm478_vm3, 0.0, %v524_v19  ;;  %v8597_v19 = vld [vmem:[%s10137_s3 + $0x34] sm:$0xf] }
  0x85   : > { %6813 = vmatmul.mubr.msk.f32.gmra.mrb[24].mxu1 %vm663_vm2, %v8212_v22 }
  0x86   : > { %6716 = vmatmul.mubr.msk.f32.gmra.mrb[26].mxu0 %vm663_vm2, %v8551_v33  ;;  %6815 = vmatprep.mubr.msk.f32.mxu1 %vm663_vm2, %v8231_v40 }
  0x87   : > { %6718 = vmatprep.mubr.msk.f32.mxu0 %vm663_vm2, %v8555_v20 }
  0x89   : > { %6816 = vmatmul.mubr.msk.f32.gmra.mrb[26].mxu1 %vm663_vm2, %v8234_v41 }
  0x8a   : > { %6719 = vmatmul.mubr.msk.f32.gmra.mrb[28].mxu0 %vm663_vm2, %v8567_v27  ;;  %6818 = vmatprep.mubr.msk.f32.mxu1 %vm663_vm2, %v8253_v58 }
  0x8b   : > { %6721 = vmatprep.mubr.msk.f32.mxu0 %vm663_vm2, %v8571_v26 }
  0x8d   : > { %6819 = vmatmul.mubr.msk.f32.gmra.mrb[28].mxu1 %vm663_vm2, %v8256_v59 }
  0x8e   : > { %6722 = vmatmul.mubr.msk.f32.gmra.mrb[30].mxu0 %vm663_vm2, %v8582_v23  ;;  %6821 = vmatprep.mubr.msk.f32.mxu1 %vm663_vm2, %v8275_v34 }
  0x8f   : > { %6826 = vmatprep.mubr.msk.f32.mxu0 %vm663_vm2, %v8331_v52 }
  0x91   : > { %6822 = vmatmul.mubr.msk.f32.gmra.mrb[30].mxu1 %vm663_vm2, %v8278_v2 }
  0x92   : > { %6827 = vmatmul.mubr.msk.f32.vlgmr.msra.gmra.mrb[0].mxu0 %vm663_vm2, %v8349_v4  ;;  %6926 = vmatprep.mubr.msk.f32.mxu1 %vm663_vm2, %v7989_v9 }
  0x93   : > { %6875 = vmatpush3.msk.msra.mxu0 %vm728_vm0, %v8339_v15  ;;  %6829 = vmatprep.mubr.msk.f32.mxu0 %vm663_vm2, %v8353_v18  ;;  %v10317_v15 = vld [vmem:[#allocation63_spill] sm:$0xff] }
  0x94   : > { %7124 = vmatprep.subr.msk.mxu0 %vm728_vm0, %v8597_v19 }
  0x95   : > { %6927 = vmatmul.mubr.msk.f32.vlgmr.msra.gmra.mrb[0].mxu1 %vm663_vm2, %v7992_v10 }
  0x96   : > { %6830 = vmatmul.mubr.msk.f32.gmra.mrb[2].mxu0 %vm663_vm2, %v8371_v35  ;;  %6929 = vmatprep.mubr.msk.f32.mxu1 %vm663_vm2, %v7995_v11 }
  0x97   : > { %6832 = vmatprep.mubr.msk.f32.mxu0 %vm663_vm2, %v8377_v47  ;;  %6975 = vmatpush3.msk.msra.mxu1 %vm728_vm0, %v8362_v7  ;;  %v8709_v7 = vld [vmem:[%s7982_s10 + $0xf0] sm:$0xff] }
  0x98   : > { %7024 = vmatprep.subr.msk.mxu1 %vm728_vm0, %v8614_v46  ;;  %10318 = vst [vmem:[#allocation67_spill] sm:$0xff] %v8709_v7  ;;  %v527_v6 = vrot.slane %v8709_v7, 7 }
  0x99   : > { %6930 = vmatmul.mubr.msk.f32.gmra.mrb[2].mxu1 %vm663_vm2, %v8003_v14 }
  0x9a   : > { %6833 = vmatmul.mubr.msk.f32.gmra.mrb[4].mxu0 %vm663_vm2, %v8391_v8  ;;  %6932 = vmatprep.mubr.msk.f32.mxu1 %vm663_vm2, %v8007_v16 }
  0x9b   : > { %6835 = vmatprep.mubr.msk.f32.mxu0 %vm663_vm2, %v8395_v1 }
  0x9d   : > { %6933 = vmatmul.mubr.msk.f32.gmra.mrb[4].mxu1 %vm663_vm2, %v8010_v17 }
  0x9e   : > { %6836 = vmatmul.mubr.msk.f32.gmra.mrb[6].mxu0 %vm663_vm2, %v8407_v53  ;;  %6935 = vmatprep.mubr.msk.f32.mxu1 %vm663_vm2, %v8033_v24 }
  0x9f   : > { %6838 = vmatprep.mubr.msk.f32.mxu0 %vm663_vm2, %v8411_v28 }
  0xa1   : > { %6936 = vmatmul.mubr.msk.f32.gmra.mrb[6].mxu1 %vm663_vm2, %v8036_v25 }
  0xa2   : > { %6839 = vmatmul.mubr.msk.f32.gmra.mrb[8].mxu0 %vm663_vm2, %v8423_v0  ;;  %6938 = vmatprep.mubr.msk.f32.mxu1 %vm663_vm2, %v8055_v30 }
  0xa3   : > { %6841 = vmatprep.mubr.msk.f32.mxu0 %vm663_vm2, %v8427_v12 }
  0xa5   : > { %6939 = vmatmul.mubr.msk.f32.gmra.mrb[8].mxu1 %vm663_vm2, %v8058_v31 }
  0xa6   : > { %6842 = vmatmul.mubr.msk.f32.gmra.mrb[10].mxu0 %vm663_vm2, %v8439_v29  ;;  %6941 = vmatprep.mubr.msk.f32.mxu1 %vm663_vm2, %v8077_v36 }
  0xa7   : > { %6844 = vmatprep.mubr.msk.f32.mxu0 %vm663_vm2, %v8443_v62 }
  0xa9   : > { %6942 = vmatmul.mubr.msk.f32.gmra.mrb[10].mxu1 %vm663_vm2, %v8080_v37 }
  0xaa   : > { %6845 = vmatmul.mubr.msk.f32.gmra.mrb[12].mxu0 %vm663_vm2, %v8455_v13  ;;  %6944 = vmatprep.mubr.msk.f32.mxu1 %vm663_vm2, %v8099_v42 }
  0xab   : > { %6847 = vmatprep.mubr.msk.f32.mxu0 %vm663_vm2, %v8459_v56 }
  0xad   : > { %6945 = vmatmul.mubr.msk.f32.gmra.mrb[12].mxu1 %vm663_vm2, %v8102_v43 }
  0xae   : > { %6848 = vmatmul.mubr.msk.f32.gmra.mrb[14].mxu0 %vm663_vm2, %v8471_v63  ;;  %6947 = vmatprep.mubr.msk.f32.mxu1 %vm663_vm2, %v8121_v48 }
  0xaf   : > { %6850 = vmatprep.mubr.msk.f32.mxu0 %vm663_vm2, %v8475_v50 }
  0xb1   : > { %6948 = vmatmul.mubr.msk.f32.gmra.mrb[14].mxu1 %vm663_vm2, %v8124_v49 }
  0xb2   : > { %6851 = vmatmul.mubr.msk.f32.gmra.mrb[16].mxu0 %vm663_vm2, %v8487_v57  ;;  %6950 = vmatprep.mubr.msk.f32.mxu1 %vm663_vm2, %v8143_v54 }
  0xb3   : > { %6853 = vmatprep.mubr.msk.f32.mxu0 %vm663_vm2, %v8491_v44 }
  0xb5   : > { %6951 = vmatmul.mubr.msk.f32.gmra.mrb[16].mxu1 %vm663_vm2, %v8146_v55 }
  0xb6   : > { %6854 = vmatmul.mubr.msk.f32.gmra.mrb[18].mxu0 %vm663_vm2, %v8503_v51  ;;  %6953 = vmatprep.mubr.msk.f32.mxu1 %vm663_vm2, %v8165_v60 }
  0xb7   : > { %6856 = vmatprep.mubr.msk.f32.mxu0 %vm663_vm2, %v8507_v38 }
  0xb9   : > { %6954 = vmatmul.mubr.msk.f32.gmra.mrb[18].mxu1 %vm663_vm2, %v8168_v61 }
  0xba   : > { %6857 = vmatmul.mubr.msk.f32.gmra.mrb[20].mxu0 %vm663_vm2, %v8519_v45  ;;  %6956 = vmatprep.mubr.msk.f32.mxu1 %vm663_vm2, %v8187_v3 }
  0xbb   : > { %6859 = vmatprep.mubr.msk.f32.mxu0 %vm663_vm2, %v8523_v32 }
  0xbd   : > { %6957 = vmatmul.mubr.msk.f32.gmra.mrb[20].mxu1 %vm663_vm2, %v8190_v5 }
  0xbe   : > { %6860 = vmatmul.mubr.msk.f32.gmra.mrb[22].mxu0 %vm663_vm2, %v8535_v39  ;;  %6959 = vmatprep.mubr.msk.f32.mxu1 %vm663_vm2, %v8209_v21  ;;  %v8719_v39 = vld [vmem:[%s7982_s10 + $0xf8] sm:$0xff] }
  0xbf   : > { %6862 = vmatprep.mubr.msk.f32.mxu0 %vm663_vm2, %v10317_v15 }
  0xc1   : > { %6960 = vmatmul.mubr.msk.f32.gmra.mrb[22].mxu1 %vm663_vm2, %v8212_v22 }
  0xc2   : > { %6863 = vmatmul.mubr.msk.f32.gmra.mrb[24].mxu0 %vm663_vm2, %v8551_v33  ;;  %6962 = vmatprep.mubr.msk.f32.mxu1 %vm663_vm2, %v8231_v40  ;;  %v528_v33 = vrot.slane %v8719_v39, 7 }
  0xc3   : > { %6865 = vmatprep.mubr.msk.f32.mxu0 %vm663_vm2, %v8555_v20  ;;  %v8731_v20 = vsel %vm478_vm3, 0.0, %v527_v6 }
  0xc5   : > { %6963 = vmatmul.mubr.msk.f32.gmra.mrb[24].mxu1 %vm663_vm2, %v8234_v41 }
  0xc6   : > { %6866 = vmatmul.mubr.msk.f32.gmra.mrb[26].mxu0 %vm663_vm2, %v8567_v27  ;;  %6965 = vmatprep.mubr.msk.f32.mxu1 %vm663_vm2, %v8253_v58  ;;  %v8742_v27 = vsel %vm478_vm3, %v527_v6, %v528_v33  ;;  %v8757_v33 = vld [vmem:[%s10137_s3 + $0x30] sm:$0xf]  ;;  %v8774_v6 = vld [vmem:[%s10137_s3 + $0x1c] sm:$0xf] }
  0xc7   : > { %6868 = vmatprep.mubr.msk.f32.mxu0 %vm663_vm2, %v8571_v26 }
  0xc9   : > { %6966 = vmatmul.mubr.msk.f32.gmra.mrb[26].mxu1 %vm663_vm2, %v8256_v59 }
  0xca   : > { %6869 = vmatmul.mubr.msk.f32.gmra.mrb[28].mxu0 %vm663_vm2, %v8582_v23  ;;  %6968 = vmatprep.mubr.msk.f32.mxu1 %vm663_vm2, %v8275_v34 }
  0xcb   : > { %6871 = vmatprep.mubr.msk.f32.mxu0 %vm663_vm2, %v8731_v20 }
  0xcd   : > { %6969 = vmatmul.mubr.msk.f32.gmra.mrb[28].mxu1 %vm663_vm2, %v8278_v2 }
  0xce   : > { %6872 = vmatmul.mubr.msk.f32.gmra.mrb[30].mxu0 %vm663_vm2, %v8742_v27  ;;  %6971 = vmatprep.mubr.msk.f32.mxu1 %vm663_vm2, %v8709_v7 }
  0xcf   : > { %6876 = vmatprep.mubr.msk.f32.mxu0 %vm663_vm2, %v7989_v9 }
  0xd1   : > { %6972 = vmatmul.mubr.msk.f32.gmra.mrb[30].mxu1 %vm663_vm2, %v8719_v39 }
  0xd2   : > { %6877 = vmatmul.mubr.msk.f32.vlgmr.msra.gmra.mrb[0].mxu0 %vm663_vm2, %v7992_v10  ;;  %6976 = vmatprep.mubr.msk.f32.mxu1 %vm663_vm2, %v7989_v9 }
  0xd3   : > { %7125 = vmatpush3.msk.msra.mxu0 %vm728_vm0, %v8597_v19  ;;  %6879 = vmatprep.mubr.msk.f32.mxu0 %vm663_vm2, %v7995_v11  ;;  %v10319_v19 = vld [vmem:[#allocation4_spill] sm:$0xff] }
  0xd4   : > { %7174 = vmatprep.subr.msk.mxu0 %vm728_vm0, %v8757_v33 }
  0xd5   : > { %6977 = vmatmul.mubr.msk.f32.vlgmr.msra.gmra.mrb[32].mxu1 %vm663_vm2, %v7992_v10 }
  0xd6   : > { %6880 = vmatmul.mubr.msk.f32.gmra.mrb[2].mxu0 %vm663_vm2, %v8003_v14  ;;  %6979 = vmatprep.mubr.msk.f32.mxu1 %vm663_vm2, %v7995_v11 }
  0xd7   : > { %6882 = vmatprep.mubr.msk.f32.mxu0 %vm663_vm2, %v8007_v16  ;;  %7025 = vmatpush3.msk.msra.mxu1 %vm728_vm0, %v8614_v46  ;;  %v8903_v46 = vld [vmem:[%s10137_s3 + $0x38] sm:$0xf] }
  0xd8   : > { %7074 = vmatprep.subr.msk.mxu1 %vm728_vm0, %v8774_v6 }
  0xd9   : > { %6980 = vmatmul.mubr.msk.f32.gmra.mrb[34].mxu1 %vm663_vm2, %v8003_v14 }
  0xda   : > { %6883 = vmatmul.mubr.msk.f32.gmra.mrb[4].mxu0 %vm663_vm2, %v8010_v17  ;;  %6982 = vmatprep.mubr.msk.f32.mxu1 %vm663_vm2, %v8007_v16 }
  0xdb   : > { %6885 = vmatprep.mubr.msk.f32.mxu0 %vm663_vm2, %v8033_v24 }
  0xdd   : > { %6983 = vmatmul.mubr.msk.f32.gmra.mrb[36].mxu1 %vm663_vm2, %v8010_v17 }
  0xde   : > { %6886 = vmatmul.mubr.msk.f32.gmra.mrb[6].mxu0 %vm663_vm2, %v8036_v25  ;;  %6985 = vmatprep.mubr.msk.f32.mxu1 %vm663_vm2, %v8033_v24 }
  0xdf   : > { %6888 = vmatprep.mubr.msk.f32.mxu0 %vm663_vm2, %v8055_v30 }
  0xe1   : > { %6986 = vmatmul.mubr.msk.f32.gmra.mrb[38].mxu1 %vm663_vm2, %v8036_v25 }
  0xe2   : > { %6889 = vmatmul.mubr.msk.f32.gmra.mrb[8].mxu0 %vm663_vm2, %v8058_v31  ;;  %6988 = vmatprep.mubr.msk.f32.mxu1 %vm663_vm2, %v8055_v30 }
  0xe3   : > { %6891 = vmatprep.mubr.msk.f32.mxu0 %vm663_vm2, %v8077_v36 }
  0xe5   : > { %6989 = vmatmul.mubr.msk.f32.gmra.mrb[40].mxu1 %vm663_vm2, %v8058_v31 }
  0xe6   : > { %6892 = vmatmul.mubr.msk.f32.gmra.mrb[10].mxu0 %vm663_vm2, %v8080_v37  ;;  %6991 = vmatprep.mubr.msk.f32.mxu1 %vm663_vm2, %v8077_v36 }
  0xe7   : > { %6894 = vmatprep.mubr.msk.f32.mxu0 %vm663_vm2, %v8099_v42 }
  0xe9   : > { %6992 = vmatmul.mubr.msk.f32.gmra.mrb[42].mxu1 %vm663_vm2, %v8080_v37 }
  0xea   : > { %6895 = vmatmul.mubr.msk.f32.gmra.mrb[12].mxu0 %vm663_vm2, %v8102_v43  ;;  %6994 = vmatprep.mubr.msk.f32.mxu1 %vm663_vm2, %v8099_v42 }
  0xeb   : > { %6897 = vmatprep.mubr.msk.f32.mxu0 %vm663_vm2, %v8121_v48 }
  0xed   : > { %6995 = vmatmul.mubr.msk.f32.gmra.mrb[44].mxu1 %vm663_vm2, %v8102_v43 }
  0xee   : > { %6898 = vmatmul.mubr.msk.f32.gmra.mrb[14].mxu0 %vm663_vm2, %v8124_v49  ;;  %6997 = vmatprep.mubr.msk.f32.mxu1 %vm663_vm2, %v8121_v48 }
  0xef   : > { %6900 = vmatprep.mubr.msk.f32.mxu0 %vm663_vm2, %v8143_v54 }
  0xf1   : > { %6998 = vmatmul.mubr.msk.f32.gmra.mrb[46].mxu1 %vm663_vm2, %v8124_v49 }
  0xf2   : > { %6901 = vmatmul.mubr.msk.f32.gmra.mrb[16].mxu0 %vm663_vm2, %v8146_v55  ;;  %7000 = vmatprep.mubr.msk.f32.mxu1 %vm663_vm2, %v8143_v54 }
  0xf3   : > { %6903 = vmatprep.mubr.msk.f32.mxu0 %vm663_vm2, %v8165_v60 }
  0xf5   : > { %7001 = vmatmul.mubr.msk.f32.gmra.mrb[48].mxu1 %vm663_vm2, %v8146_v55 }
  0xf6   : > { %6904 = vmatmul.mubr.msk.f32.gmra.mrb[18].mxu0 %vm663_vm2, %v8168_v61  ;;  %7003 = vmatprep.mubr.msk.f32.mxu1 %vm663_vm2, %v8165_v60 }
  0xf7   : > { %6906 = vmatprep.mubr.msk.f32.mxu0 %vm663_vm2, %v8187_v3 }
  0xf9   : > { %7004 = vmatmul.mubr.msk.f32.gmra.mrb[50].mxu1 %vm663_vm2, %v8168_v61 }
  0xfa   : > { %6907 = vmatmul.mubr.msk.f32.gmra.mrb[20].mxu0 %vm663_vm2, %v8190_v5  ;;  %7006 = vmatprep.mubr.msk.f32.mxu1 %vm663_vm2, %v8187_v3 }
  0xfb   : > { %6909 = vmatprep.mubr.msk.f32.mxu0 %vm663_vm2, %v8209_v21 }
  0xfd   : > { %7007 = vmatmul.mubr.msk.f32.gmra.mrb[52].mxu1 %vm663_vm2, %v8190_v5 }
  0xfe   : > { %6910 = vmatmul.mubr.msk.f32.gmra.mrb[22].mxu0 %vm663_vm2, %v8212_v22  ;;  %7009 = vmatprep.mubr.msk.f32.mxu1 %vm663_vm2, %v8209_v21 }
  0xff   : > { %6912 = vmatprep.mubr.msk.f32.mxu0 %vm663_vm2, %v8231_v40 }
 0x101   : > { %7010 = vmatmul.mubr.msk.f32.gmra.mrb[54].mxu1 %vm663_vm2, %v8212_v22 }
 0x102   : > { %6913 = vmatmul.mubr.msk.f32.gmra.mrb[24].mxu0 %vm663_vm2, %v8234_v41  ;;  %7012 = vmatprep.mubr.msk.f32.mxu1 %vm663_vm2, %v8231_v40 }
 0x103   : > { %6915 = vmatprep.mubr.msk.f32.mxu0 %vm663_vm2, %v8253_v58 }
 0x105   : > { %7013 = vmatmul.mubr.msk.f32.gmra.mrb[56].mxu1 %vm663_vm2, %v8234_v41  ;;  %v10345_v41 = vld [vmem:[#allocation34_spill] sm:$0xff] }
 0x106   : > { %6916 = vmatmul.mubr.msk.f32.gmra.mrb[26].mxu0 %vm663_vm2, %v8256_v59  ;;  %7015 = vmatprep.mubr.msk.f32.mxu1 %vm663_vm2, %v8253_v58  ;;  %v10322_v58 = vld [vmem:[#allocation7_spill] sm:$0xff] }
 0x107   : > { %6918 = vmatprep.mubr.msk.f32.mxu0 %vm663_vm2, %v8275_v34 }
 0x109   : > { %7016 = vmatmul.mubr.msk.f32.gmra.mrb[58].mxu1 %vm663_vm2, %v8256_v59  ;;  %v8920_v59 = vld [vmem:[%s10137_s3 + $0x28] sm:$0xf] }
 0x10a   : > { %6919 = vmatmul.mubr.msk.f32.gmra.mrb[28].mxu0 %vm663_vm2, %v8278_v2  ;;  %7018 = vmatprep.mubr.msk.f32.mxu1 %vm663_vm2, %v8275_v34  ;;  %v10320_v34 = vld [vmem:[#allocation5_spill] sm:$0xff] }
 0x10b   : > { %6921 = vmatprep.mubr.msk.f32.mxu0 %vm663_vm2, %v8709_v7 }
 0x10d   : > { %7019 = vmatmul.mubr.msk.f32.gmra.mrb[60].mxu1 %vm663_vm2, %v8278_v2  ;;  %v10321_v2 = vld [vmem:[#allocation6_spill] sm:$0xff] }
 0x10e   : > { %6922 = vmatmul.mubr.msk.f32.gmra.mrb[30].mxu0 %vm663_vm2, %v8719_v39  ;;  %7021 = vmatprep.mubr.msk.f32.mxu1 %vm663_vm2, %v8709_v7 }
 0x10f   : > { %7126 = vmatprep.mubr.msk.f32.mxu0 %vm663_vm2, %v10319_v19 }
 0x111   : > { %7022 = vmatmul.mubr.msk.f32.gmra.mrb[62].mxu1 %vm663_vm2, %v8719_v39 }
 0x112   : > { %7127 = vmatmul.mubr.msk.f32.vlgmr.msra.gmra.mrb[32].mxu0 %vm663_vm2, %v10320_v34  ;;  %7026 = vmatprep.mubr.msk.f32.mxu1 %vm663_vm2, %v8331_v52  ;;  %v10323_v52 = vld [vmem:[#allocation8_spill] sm:$0xff] }
 0x113   : > { %7175 = vmatpush3.msk.msra.mxu0 %vm728_vm0, %v8757_v33  ;;  %7129 = vmatprep.mubr.msk.f32.mxu0 %vm663_vm2, %v10321_v2  ;;  %v10325_v33 = vld [vmem:[#allocation10_spill] sm:$0xff] }
 0x114   : > { %7324 = vmatprep.subr.msk.mxu0 %vm728_vm0, %v8903_v46 }
 0x115   : > { %7027 = vmatmul.mubr.msk.f32.vlgmr.msra.gmra.mrb[32].mxu1 %vm663_vm2, %v8349_v4  ;;  %v10324_v4 = vld [vmem:[#allocation9_spill] sm:$0xff] }
 0x116   : > { %7130 = vmatmul.mubr.msk.f32.gmra.mrb[34].mxu0 %vm663_vm2, %v10322_v58  ;;  %7029 = vmatprep.mubr.msk.f32.mxu1 %vm663_vm2, %v8353_v18  ;;  %v10326_v18 = vld [vmem:[#allocation11_spill] sm:$0xff] }
 0x117   : > { %7132 = vmatprep.mubr.msk.f32.mxu0 %vm663_vm2, %v10323_v52  ;;  %7075 = vmatpush3.msk.msra.mxu1 %vm728_vm0, %v8774_v6  ;;  %v10327_v6 = vld [vmem:[#allocation12_spill] sm:$0xff] }
 0x118   : > { %7224 = vmatprep.subr.msk.mxu1 %vm728_vm0, %v8920_v59 }
 0x119   : > { %7030 = vmatmul.mubr.msk.f32.gmra.mrb[34].mxu1 %vm663_vm2, %v8371_v35  ;;  %v10328_v35 = vld [vmem:[#allocation13_spill] sm:$0xff] }
 0x11a   : > { %7133 = vmatmul.mubr.msk.f32.gmra.mrb[36].mxu0 %vm663_vm2, %v10324_v4  ;;  %7032 = vmatprep.mubr.msk.f32.mxu1 %vm663_vm2, %v8377_v47  ;;  %v10329_v47 = vld [vmem:[#allocation14_spill] sm:$0xff] }
 0x11b   : > { %7135 = vmatprep.mubr.msk.f32.mxu0 %vm663_vm2, %v10325_v33 }
 0x11d   : > { %7033 = vmatmul.mubr.msk.f32.gmra.mrb[36].mxu1 %vm663_vm2, %v8391_v8  ;;  %v10330_v8 = vld [vmem:[#allocation15_spill] sm:$0xff] }
 0x11e   : > { %7136 = vmatmul.mubr.msk.f32.gmra.mrb[38].mxu0 %vm663_vm2, %v10326_v18  ;;  %7035 = vmatprep.mubr.msk.f32.mxu1 %vm663_vm2, %v8395_v1  ;;  %v10331_v1 = vld [vmem:[#allocation16_spill] sm:$0xff] }
 0x11f   : > { %7138 = vmatprep.mubr.msk.f32.mxu0 %vm663_vm2, %v10327_v6 }
 0x121   : > { %7036 = vmatmul.mubr.msk.f32.gmra.mrb[38].mxu1 %vm663_vm2, %v8407_v53  ;;  %v10332_v53 = vld [vmem:[#allocation17_spill] sm:$0xff] }
 0x122   : > { %7139 = vmatmul.mubr.msk.f32.gmra.mrb[40].mxu0 %vm663_vm2, %v10328_v35  ;;  %7038 = vmatprep.mubr.msk.f32.mxu1 %vm663_vm2, %v8411_v28  ;;  %v10333_v28 = vld [vmem:[#allocation18_spill] sm:$0xff] }
 0x123   : > { %7141 = vmatprep.mubr.msk.f32.mxu0 %vm663_vm2, %v10329_v47 }
 0x125   : > { %7039 = vmatmul.mubr.msk.f32.gmra.mrb[40].mxu1 %vm663_vm2, %v8423_v0  ;;  %v10334_v0 = vld [vmem:[#allocation19_spill] sm:$0xff] }
 0x126   : > { %7142 = vmatmul.mubr.msk.f32.gmra.mrb[42].mxu0 %vm663_vm2, %v10330_v8  ;;  %7041 = vmatprep.mubr.msk.f32.mxu1 %vm663_vm2, %v8427_v12  ;;  %v10335_v12 = vld [vmem:[#allocation20_spill] sm:$0xff] }
 0x127   : > { %7144 = vmatprep.mubr.msk.f32.mxu0 %vm663_vm2, %v10331_v1 }
 0x129   : > { %7042 = vmatmul.mubr.msk.f32.gmra.mrb[42].mxu1 %vm663_vm2, %v8439_v29  ;;  %v10336_v29 = vld [vmem:[#allocation21_spill] sm:$0xff] }
 0x12a   : > { %7145 = vmatmul.mubr.msk.f32.gmra.mrb[44].mxu0 %vm663_vm2, %v10332_v53  ;;  %7044 = vmatprep.mubr.msk.f32.mxu1 %vm663_vm2, %v8443_v62  ;;  %v10337_v62 = vld [vmem:[#allocation22_spill] sm:$0xff] }
 0x12b   : > { %7147 = vmatprep.mubr.msk.f32.mxu0 %vm663_vm2, %v10333_v28 }
 0x12d   : > { %7045 = vmatmul.mubr.msk.f32.gmra.mrb[44].mxu1 %vm663_vm2, %v8455_v13  ;;  %v10338_v13 = vld [vmem:[#allocation23_spill] sm:$0xff] }
 0x12e   : > { %7148 = vmatmul.mubr.msk.f32.gmra.mrb[46].mxu0 %vm663_vm2, %v10334_v0  ;;  %7047 = vmatprep.mubr.msk.f32.mxu1 %vm663_vm2, %v8459_v56  ;;  %v10339_v56 = vld [vmem:[#allocation24_spill] sm:$0xff] }
 0x12f   : > { %7150 = vmatprep.mubr.msk.f32.mxu0 %vm663_vm2, %v10335_v12 }
 0x131   : > { %7048 = vmatmul.mubr.msk.f32.gmra.mrb[46].mxu1 %vm663_vm2, %v8471_v63  ;;  %v10340_v63 = vld [vmem:[#allocation26_spill] sm:$0xff] }
 0x132   : > { %7151 = vmatmul.mubr.msk.f32.gmra.mrb[48].mxu0 %vm663_vm2, %v10336_v29  ;;  %7050 = vmatprep.mubr.msk.f32.mxu1 %vm663_vm2, %v8475_v50  ;;  %v10341_v50 = vld [vmem:[#allocation27_spill] sm:$0xff] }
 0x133   : > { %7153 = vmatprep.mubr.msk.f32.mxu0 %vm663_vm2, %v10337_v62 }
 0x135   : > { %7051 = vmatmul.mubr.msk.f32.gmra.mrb[48].mxu1 %vm663_vm2, %v8487_v57  ;;  %v10342_v57 = vld [vmem:[#allocation30_spill] sm:$0xff] }
 0x136   : > { %7154 = vmatmul.mubr.msk.f32.gmra.mrb[50].mxu0 %vm663_vm2, %v10338_v13  ;;  %7053 = vmatprep.mubr.msk.f32.mxu1 %vm663_vm2, %v8491_v44  ;;  %v10343_v44 = vld [vmem:[#allocation31_spill] sm:$0xff] }
 0x137   : > { %7156 = vmatprep.mubr.msk.f32.mxu0 %vm663_vm2, %v10339_v56 }
 0x139   : > { %7054 = vmatmul.mubr.msk.f32.gmra.mrb[50].mxu1 %vm663_vm2, %v8503_v51  ;;  %v10344_v51 = vld [vmem:[#allocation62_spill] sm:$0xff] }
 0x13a   : > { %7157 = vmatmul.mubr.msk.f32.gmra.mrb[52].mxu0 %vm663_vm2, %v10340_v63  ;;  %7056 = vmatprep.mubr.msk.f32.mxu1 %vm663_vm2, %v8507_v38  ;;  %v10346_v38 = vld [vmem:[#allocation35_spill] sm:$0xff] }
 0x13b   : > { %7159 = vmatprep.mubr.msk.f32.mxu0 %vm663_vm2, %v10341_v50 }
 0x13d   : > { %7057 = vmatmul.mubr.msk.f32.gmra.mrb[52].mxu1 %vm663_vm2, %v8519_v45  ;;  %v618_v45 = vrot.slane %v8709_v7, 1  ;;  %v10353_v7 = vld [vmem:[#allocation40_spill] sm:$0xff] }
 0x13e   : > { %7160 = vmatmul.mubr.msk.f32.gmra.mrb[54].mxu0 %vm663_vm2, %v10342_v57  ;;  %7059 = vmatprep.mubr.msk.f32.mxu1 %vm663_vm2, %v8523_v32  ;;  %v619_v57 = vrot.slane %v8719_v39, 1  ;;  %v10347_v32 = vld [vmem:[#allocation64_spill] sm:$0xff] }
 0x13f   : > { %7162 = vmatprep.mubr.msk.f32.mxu0 %vm663_vm2, %v10343_v44  ;;  %v10348_v44 = vld [vmem:[#allocation37_spill] sm:$0xff] }
 0x141   : > { %7060 = vmatmul.mubr.msk.f32.gmra.mrb[54].mxu1 %vm663_vm2, %v10344_v51  ;;  %v10349_v51 = vld [vmem:[#allocation65_spill] sm:$0xff] }
 0x142   : > { %7163 = vmatmul.mubr.msk.f32.gmra.mrb[56].mxu0 %vm663_vm2, %v10345_v41  ;;  %7062 = vmatprep.mubr.msk.f32.mxu1 %vm663_vm2, %v10317_v15  ;;  %v10350_v41 = vld [vmem:[#allocation38_spill] sm:$0xff]  ;;  %v9031_v15 = vsel %vm569_vm1, %v618_v45, %v619_v57  ;;  %v10372_v45 = vld [vmem:[#allocation48_spill] sm:$0xff] }
 0x143   : > { %7165 = vmatprep.mubr.msk.f32.mxu0 %vm663_vm2, %v10346_v38  ;;  %10351 = vst [vmem:[#allocation4_spill] sm:$0xff] %v9031_v15  ;;  %v10352_v38 = vld [vmem:[#allocation66_spill] sm:$0xff] }
 0x145   : > { %7063 = vmatmul.mubr.msk.f32.gmra.mrb[56].mxu1 %vm663_vm2, %v10347_v32 }
 0x146   : > { %7166 = vmatmul.mubr.msk.f32.gmra.mrb[58].mxu0 %vm663_vm2, %v10348_v44  ;;  %7065 = vmatprep.mubr.msk.f32.mxu1 %vm663_vm2, %v10349_v51  ;;  %v9042_v51 = vsel %vm569_vm1, %v619_v57, 0.0  ;;  %v9057_v57 = vld [vmem:[%s10137_s3 + $0x3c] sm:$0xf] }
 0x147   : > { %7168 = vmatprep.mubr.msk.f32.mxu0 %vm663_vm2, %v10350_v41  ;;  %10354 = vst [vmem:[#allocation5_spill] sm:$0xff] %v9042_v51 }
 0x149   : > { %7066 = vmatmul.mubr.msk.f32.gmra.mrb[58].mxu1 %vm663_vm2, %v10352_v38 }
 0x14a   : > { %7169 = vmatmul.mubr.msk.f32.gmra.mrb[60].mxu0 %vm663_vm2, %v10353_v7  ;;  %7068 = vmatprep.mubr.msk.f32.mxu1 %vm663_vm2, %v8571_v26 }
 0x14b   : > { %7171 = vmatprep.mubr.msk.f32.mxu0 %vm663_vm2, %v9031_v15 }
 0x14d   : > { %7069 = vmatmul.mubr.msk.f32.gmra.mrb[60].mxu1 %vm663_vm2, %v8582_v23 }
 0x14e   : > { %7172 = vmatmul.mubr.msk.f32.gmra.mrb[62].mxu0 %vm663_vm2, %v9042_v51  ;;  %7071 = vmatprep.mubr.msk.f32.mxu1 %vm663_vm2, %v8731_v20 }
 0x14f   : > { %7176 = vmatprep.mubr.msk.f32.mxu0 %vm663_vm2, %v7989_v9  ;;  %v9074_v9 = vld [vmem:[%s10137_s3 + $0x2c] sm:$0xf] }
 0x151   : > { %7072 = vmatmul.mubr.msk.f32.gmra.mrb[62].mxu1 %vm663_vm2, %v8742_v27 }
 0x152   : > { %7177 = vmatmul.mubr.msk.f32.vlgmr.msra.gmra.mrb[32].mxu0 %vm663_vm2, %v7992_v10  ;;  %7076 = vmatprep.mubr.msk.f32.mxu1 %vm663_vm2, %v10319_v19  ;;  %v10355_v10 = vld [vmem:[#allocation30_spill] sm:$0xff]  ;;  %v9264_v19 = vld [vmem:[%s7982_s10 + $0x58] sm:$0xff] }
 0x153   : > { %7325 = vmatpush3.msk.msra.mxu0 %vm728_vm0, %v8903_v46  ;;  %7179 = vmatprep.mubr.msk.f32.mxu0 %vm663_vm2, %v7995_v11  ;;  %v10356_v11 = vld [vmem:[#allocation25_spill] sm:$0xff] }
 0x154   : > { %7374 = vmatprep.subr.msk.mxu0 %vm728_vm0, %v9057_v57  ;;  %v10373_v46 = vld [vmem:[#allocation49_spill] sm:$0xff] }
 0x155   : > { %7077 = vmatmul.mubr.msk.f32.vlgmr.msra.gmra.mrb[0].mxu1 %vm663_vm2, %v10320_v34  ;;  %v9257_v34 = vld [vmem:[%s7982_s10 + $0x50] sm:$0xff] }
 0x156   : > { %7180 = vmatmul.mubr.msk.f32.gmra.mrb[34].mxu0 %vm663_vm2, %v8003_v14  ;;  %7079 = vmatprep.mubr.msk.f32.mxu1 %vm663_vm2, %v10321_v2  ;;  %v10357_v14 = vld [vmem:[#allocation31_spill] sm:$0xff] }
 0x157   : > { %7182 = vmatprep.mubr.msk.f32.mxu0 %vm663_vm2, %v8007_v16  ;;  %7225 = vmatpush3.msk.msra.mxu1 %vm728_vm0, %v8920_v59  ;;  %v10358_v16 = vld [vmem:[#allocation28_spill] sm:$0xff]  ;;  %v10371_v59 = vld [vmem:[#allocation47_spill] sm:$0xff] }
 0x158   : > { %7274 = vmatprep.subr.msk.mxu1 %vm728_vm0, %v9074_v9 }
 0x159   : > { %7080 = vmatmul.mubr.msk.f32.gmra.mrb[2].mxu1 %vm663_vm2, %v10322_v58 }
 0x15a   : > { %7183 = vmatmul.mubr.msk.f32.gmra.mrb[36].mxu0 %vm663_vm2, %v8010_v17  ;;  %7082 = vmatprep.mubr.msk.f32.mxu1 %vm663_vm2, %v10323_v52  ;;  %v10359_v17 = vld [vmem:[#allocation34_spill] sm:$0xff] }
 0x15b   : > { %7185 = vmatprep.mubr.msk.f32.mxu0 %vm663_vm2, %v8033_v24  ;;  %v10360_v24 = vld [vmem:[#allocation29_spill] sm:$0xff] }
 0x15d   : > { %7083 = vmatmul.mubr.msk.f32.gmra.mrb[4].mxu1 %vm663_vm2, %v10324_v4 }
 0x15e   : > { %7186 = vmatmul.mubr.msk.f32.gmra.mrb[38].mxu0 %vm663_vm2, %v8036_v25  ;;  %7085 = vmatprep.mubr.msk.f32.mxu1 %vm663_vm2, %v10325_v33  ;;  %v10361_v25 = vld [vmem:[#allocation35_spill] sm:$0xff] }
 0x15f   : > { %7188 = vmatprep.mubr.msk.f32.mxu0 %vm663_vm2, %v8055_v30  ;;  %v10362_v30 = vld [vmem:[#allocation32_spill] sm:$0xff] }
 0x161   : > { %7086 = vmatmul.mubr.msk.f32.gmra.mrb[6].mxu1 %vm663_vm2, %v10326_v18 }
 0x162   : > { %7189 = vmatmul.mubr.msk.f32.gmra.mrb[40].mxu0 %vm663_vm2, %v8058_v31  ;;  %7088 = vmatprep.mubr.msk.f32.mxu1 %vm663_vm2, %v10327_v6  ;;  %v10363_v31 = vld [vmem:[#allocation33_spill] sm:$0xff] }
 0x163   : > { %7191 = vmatprep.mubr.msk.f32.mxu0 %vm663_vm2, %v8077_v36  ;;  %v10364_v36 = vld [vmem:[#allocation67_spill] sm:$0xff] }
 0x165   : > { %7089 = vmatmul.mubr.msk.f32.gmra.mrb[8].mxu1 %vm663_vm2, %v10328_v35 }
 0x166   : > { %7192 = vmatmul.mubr.msk.f32.gmra.mrb[42].mxu0 %vm663_vm2, %v8080_v37  ;;  %7091 = vmatprep.mubr.msk.f32.mxu1 %vm663_vm2, %v10329_v47  ;;  %v9197_v37 = vld [vmem:[%s7982_s10 + $0x10] sm:$0xff] }
 0x167   : > { %7194 = vmatprep.mubr.msk.f32.mxu0 %vm663_vm2, %v8099_v42  ;;  %v9204_v42 = vld [vmem:[%s7982_s10 + $0x18] sm:$0xff] }
 0x169   : > { %7092 = vmatmul.mubr.msk.f32.gmra.mrb[10].mxu1 %vm663_vm2, %v10330_v8 }
 0x16a   : > { %7195 = vmatmul.mubr.msk.f32.gmra.mrb[44].mxu0 %vm663_vm2, %v8102_v43  ;;  %7094 = vmatprep.mubr.msk.f32.mxu1 %vm663_vm2, %v10331_v1  ;;  %v10365_v43 = vld [vmem:[#allocation41_spill] sm:$0xff] }
 0x16b   : > { %7197 = vmatprep.mubr.msk.f32.mxu0 %vm663_vm2, %v8121_v48  ;;  %v9213_v48 = vld [vmem:[%s7982_s10 + $0x20] sm:$0xff] }
 0x16d   : > { %7095 = vmatmul.mubr.msk.f32.gmra.mrb[12].mxu1 %vm663_vm2, %v10332_v53 }
 0x16e   : > { %7198 = vmatmul.mubr.msk.f32.gmra.mrb[46].mxu0 %vm663_vm2, %v8124_v49  ;;  %7097 = vmatprep.mubr.msk.f32.mxu1 %vm663_vm2, %v10333_v28  ;;  %v10366_v49 = vld [vmem:[#allocation42_spill] sm:$0xff] }
 0x16f   : > { %7200 = vmatprep.mubr.msk.f32.mxu0 %vm663_vm2, %v8143_v54  ;;  %v9220_v54 = vld [vmem:[%s7982_s10 + $0x28] sm:$0xff] }
 0x171   : > { %7098 = vmatmul.mubr.msk.f32.gmra.mrb[14].mxu1 %vm663_vm2, %v10334_v0 }
 0x172   : > { %7201 = vmatmul.mubr.msk.f32.gmra.mrb[48].mxu0 %vm663_vm2, %v8146_v55  ;;  %7100 = vmatprep.mubr.msk.f32.mxu1 %vm663_vm2, %v10335_v12  ;;  %v10367_v55 = vld [vmem:[#allocation43_spill] sm:$0xff] }
 0x173   : > { %7203 = vmatprep.mubr.msk.f32.mxu0 %vm663_vm2, %v8165_v60  ;;  %v9227_v60 = vld [vmem:[%s7982_s10 + $0x30] sm:$0xff] }
 0x175   : > { %7101 = vmatmul.mubr.msk.f32.gmra.mrb[16].mxu1 %vm663_vm2, %v10336_v29 }
 0x176   : > { %7204 = vmatmul.mubr.msk.f32.gmra.mrb[50].mxu0 %vm663_vm2, %v8168_v61  ;;  %7103 = vmatprep.mubr.msk.f32.mxu1 %vm663_vm2, %v10337_v62  ;;  %v10368_v61 = vld [vmem:[#allocation44_spill] sm:$0xff] }
 0x177   : > { %7206 = vmatprep.mubr.msk.f32.mxu0 %vm663_vm2, %v8187_v3  ;;  %v9236_v3 = vld [vmem:[%s7982_s10 + $0x38] sm:$0xff] }
 0x179   : > { %7104 = vmatmul.mubr.msk.f32.gmra.mrb[18].mxu1 %vm663_vm2, %v10338_v13 }
 0x17a   : > { %7207 = vmatmul.mubr.msk.f32.gmra.mrb[52].mxu0 %vm663_vm2, %v8190_v5  ;;  %7106 = vmatprep.mubr.msk.f32.mxu1 %vm663_vm2, %v10339_v56  ;;  %v10369_v5 = vld [vmem:[#allocation45_spill] sm:$0xff] }
 0x17b   : > { %7209 = vmatprep.mubr.msk.f32.mxu0 %vm663_vm2, %v8209_v21  ;;  %v9243_v21 = vld [vmem:[%s7982_s10 + $0x40] sm:$0xff] }
 0x17d   : > { %7107 = vmatmul.mubr.msk.f32.gmra.mrb[20].mxu1 %vm663_vm2, %v10340_v63 }
 0x17e   : > { %7210 = vmatmul.mubr.msk.f32.gmra.mrb[54].mxu0 %vm663_vm2, %v8212_v22  ;;  %7109 = vmatprep.mubr.msk.f32.mxu1 %vm663_vm2, %v10341_v50  ;;  %v10370_v22 = vld [vmem:[#allocation46_spill] sm:$0xff] }
 0x17f   : > { %7212 = vmatprep.mubr.msk.f32.mxu0 %vm663_vm2, %v8231_v40  ;;  %v9250_v40 = vld [vmem:[%s7982_s10 + $0x48] sm:$0xff] }
 0x181   : > { %7110 = vmatmul.mubr.msk.f32.gmra.mrb[22].mxu1 %vm663_vm2, %v10355_v10 }
 0x182   : > { %7213 = vmatmul.mubr.msk.f32.gmra.mrb[56].mxu0 %vm663_vm2, %v10356_v11  ;;  %7112 = vmatprep.mubr.msk.f32.mxu1 %vm663_vm2, %v10357_v14  ;;  %v10375_v11 = vld [vmem:[#allocation50_spill] sm:$0xff] }
 0x183   : > { %7215 = vmatprep.mubr.msk.f32.mxu0 %vm663_vm2, %v10358_v16 }
 0x185   : > { %7113 = vmatmul.mubr.msk.f32.gmra.mrb[24].mxu1 %vm663_vm2, %v10359_v17 }
 0x186   : > { %7216 = vmatmul.mubr.msk.f32.gmra.mrb[58].mxu0 %vm663_vm2, %v10360_v24  ;;  %7115 = vmatprep.mubr.msk.f32.mxu1 %vm663_vm2, %v10361_v25  ;;  %v9282_v24 = vld [vmem:[%s7982_s10 + $0x68] sm:$0xff] }
 0x187   : > { %7218 = vmatprep.mubr.msk.f32.mxu0 %vm663_vm2, %v10362_v30  ;;  %v10377_v30 = vld [vmem:[#allocation51_spill] sm:$0xff] }
 0x189   : > { %7116 = vmatmul.mubr.msk.f32.gmra.mrb[26].mxu1 %vm663_vm2, %v10348_v44 }
 0x18a   : > { %7219 = vmatmul.mubr.msk.f32.gmra.mrb[60].mxu0 %vm663_vm2, %v10363_v31  ;;  %7118 = vmatprep.mubr.msk.f32.mxu1 %vm663_vm2, %v10350_v41  ;;  %v9289_v31 = vld [vmem:[%s7982_s10 + $0x70] sm:$0xff]  ;;  %v10404_v41 = vld [vmem:[#allocation65_spill] sm:$0xff] }
 0x18b   : > { %7221 = vmatprep.mubr.msk.f32.mxu0 %vm663_vm2, %v10364_v36 }
 0x18d   : > { %7119 = vmatmul.mubr.msk.f32.gmra.mrb[28].mxu1 %vm663_vm2, %v10353_v7  ;;  %v9397_v7 = vld [vmem:[%s7982_s10 + $0xd0] sm:$0xff] }
 0x18e   : > { %7222 = vmatmul.mubr.msk.f32.gmra.mrb[62].mxu0 %vm663_vm2, %v8719_v39  ;;  %7121 = vmatprep.mubr.msk.f32.mxu1 %vm663_vm2, %v9031_v15  ;;  %v9390_v15 = vld [vmem:[%s7982_s10 + $0xc8] sm:$0xff]  ;;  %10402 = vst [vmem:[#allocation20_spill] sm:$0xff] %v9397_v7 }
 0x18f   : > { %7326 = vmatprep.mubr.msk.f32.mxu0 %vm663_vm2, %v9197_v37 }
 0x191   : > { %7122 = vmatmul.mubr.msk.f32.gmra.mrb[30].mxu1 %vm663_vm2, %v9042_v51  ;;  %v9379_v51 = vld [vmem:[%s7982_s10 + $0xc0] sm:$0xff] }
 0x192   : > { %7327 = vmatmul.mubr.msk.f32.vlgmr.msra.gmra.mrb[32].mxu0 %vm663_vm2, %v9204_v42  ;;  %7226 = vmatprep.mubr.msk.f32.mxu1 %vm663_vm2, %v10365_v43 }
 0x193   : > { %7375 = vmatpush3.msk.msra.mxu0 %vm728_vm0, %v9057_v57  ;;  %7329 = vmatprep.mubr.msk.f32.mxu0 %vm663_vm2, %v9213_v48  ;;  %v9271_v57 = vld [vmem:[%s7982_s10 + $0x60] sm:$0xff] }
 0x195   : > { %7227 = vmatmul.mubr.msk.f32.vlgmr.msra.gmra.mrb[32].mxu1 %vm663_vm2, %v10366_v49  ;;  %v10379_v49 = vld [vmem:[#allocation52_spill] sm:$0xff] }
 0x196   : > { %7330 = vmatmul.mubr.msk.f32.gmra.mrb[34].mxu0 %vm663_vm2, %v9220_v54  ;;  %7229 = vmatprep.mubr.msk.f32.mxu1 %vm663_vm2, %v10367_v55 }
 0x197   : > { %7332 = vmatprep.mubr.msk.f32.mxu0 %vm663_vm2, %v9227_v60  ;;  %7275 = vmatpush3.msk.msra.mxu1 %vm728_vm0, %v9074_v9 }
 0x199   : > { %7230 = vmatmul.mubr.msk.f32.gmra.mrb[34].mxu1 %vm663_vm2, %v10368_v61  ;;  %v9300_v61 = vld [vmem:[%s7982_s10 + $0x78] sm:$0xff] }
 0x19a   : > { %7333 = vmatmul.mubr.msk.f32.gmra.mrb[36].mxu0 %vm663_vm2, %v9236_v3  ;;  %7232 = vmatprep.mubr.msk.f32.mxu1 %vm663_vm2, %v10369_v5  ;;  %v10381_v5 = vld [vmem:[#allocation53_spill] sm:$0xff] }
 0x19b   : > { %7335 = vmatprep.mubr.msk.f32.mxu0 %vm663_vm2, %v9243_v21 }
 0x19d   : > { %7233 = vmatmul.mubr.msk.f32.gmra.mrb[36].mxu1 %vm663_vm2, %v10370_v22  ;;  %v9307_v22 = vld [vmem:[%s7982_s10 + $0x80] sm:$0xff] }
 0x19e   : > { %7336 = vmatmul.mubr.msk.f32.gmra.mrb[38].mxu0 %vm663_vm2, %v9250_v40  ;;  %7235 = vmatprep.mubr.msk.f32.mxu1 %vm663_vm2, %v10371_v59 }
 0x19f   : > { %7338 = vmatprep.mubr.msk.f32.mxu0 %vm663_vm2, %v9257_v34 }
 0x1a1   : > { %7236 = vmatmul.mubr.msk.f32.gmra.mrb[38].mxu1 %vm663_vm2, %v10372_v45  ;;  %v10383_v45 = vld [vmem:[#allocation54_spill] sm:$0xff] }
 0x1a2   : > { %7339 = vmatmul.mubr.msk.f32.gmra.mrb[40].mxu0 %vm663_vm2, %v9264_v19  ;;  %7238 = vmatprep.mubr.msk.f32.mxu1 %vm663_vm2, %v10373_v46 }
 0x1a3   : > { %7341 = vmatprep.mubr.msk.f32.mxu0 %vm663_vm2, %v9271_v57 }
 0x1a5   : > { %v9275_v9 = vpop.f32.mrb[0].mxu0  ;;  %7239 = vmatmul.mubr.msk.f32.gmra.mrb[40].mxu1 %vm663_vm2, %v10375_v11  ;;  %v9318_v11 = vld [vmem:[%s7982_s10 + $0x88] sm:$0xff] }
 0x1a6   : > { %10374 = vst [vmem:[#allocation6_spill] sm:$0xff] %v9275_v9  ;;  %v9279_v16 = vpop.f32.mrb[1].mxu0  ;;  %7342 = vmatmul.mubr.msk.f32.gmra.mrb[42].mxu0 %vm663_vm2, %v9282_v24  ;;  %7241 = vmatprep.mubr.msk.f32.mxu1 %vm663_vm2, %v10377_v30  ;;  %v10385_v30 = vld [vmem:[#allocation55_spill] sm:$0xff]  ;;  %v9372_v9 = vld [vmem:[%s7982_s10 + $0xb8] sm:$0xff] }
 0x1a7   : > { %10376 = vst [vmem:[#allocation7_spill] sm:$0xff] %v9279_v16  ;;  %7344 = vmatprep.mubr.msk.f32.mxu0 %vm663_vm2, %v9289_v31  ;;  %v9361_v16 = vld [vmem:[%s7982_s10 + $0xb0] sm:$0xff] }
 0x1a9   : > { %v9293_v43 = vpop.f32.mrb[2].mxu0  ;;  %7242 = vmatmul.mubr.msk.f32.gmra.mrb[42].mxu1 %vm663_vm2, %v10379_v49  ;;  %v9325_v49 = vld [vmem:[%s7982_s10 + $0x90] sm:$0xff] }
 0x1aa   : > { %10378 = vst [vmem:[#allocation8_spill] sm:$0xff] %v9293_v43  ;;  %v9297_v55 = vpop.f32.mrb[3].mxu0  ;;  %7345 = vmatmul.mubr.msk.f32.gmra.mrb[44].mxu0 %vm663_vm2, %v9300_v61  ;;  %7244 = vmatprep.mubr.msk.f32.mxu1 %vm663_vm2, %v10381_v5  ;;  %v9354_v43 = vld [vmem:[%s7982_s10 + $0xa8] sm:$0xff] }
 0x1ab   : > { %10380 = vst [vmem:[#allocation9_spill] sm:$0xff] %v9297_v55  ;;  %7347 = vmatprep.mubr.msk.f32.mxu0 %vm663_vm2, %v9307_v22  ;;  %v9343_v55 = vld [vmem:[%s7982_s10 + $0xa0] sm:$0xff] }
 0x1ad   : > { %v9311_v59 = vpop.f32.mrb[4].mxu0  ;;  %7245 = vmatmul.mubr.msk.f32.gmra.mrb[44].mxu1 %vm663_vm2, %v10383_v45  ;;  %v10387_v45 = vld [vmem:[#allocation56_spill] sm:$0xff] }
 0x1ae   : > { %10382 = vst [vmem:[#allocation10_spill] sm:$0xff] %v9311_v59  ;;  %v9315_v46 = vpop.f32.mrb[5].mxu0  ;;  %7348 = vmatmul.mubr.msk.f32.gmra.mrb[46].mxu0 %vm663_vm2, %v9318_v11  ;;  %7247 = vmatprep.mubr.msk.f32.mxu1 %vm663_vm2, %v10385_v30  ;;  %v10389_v30 = vld [vmem:[#allocation57_spill] sm:$0xff] }
 0x1af   : > { %10384 = vst [vmem:[#allocation11_spill] sm:$0xff] %v9315_v46  ;;  %7350 = vmatprep.mubr.msk.f32.mxu0 %vm663_vm2, %v9325_v49  ;;  %v9336_v46 = vld [vmem:[%s7982_s10 + $0x98] sm:$0xff] }
 0x1b1   : > { %v9329_v5 = vpop.f32.mrb[6].mxu0  ;;  %7248 = vmatmul.mubr.msk.f32.gmra.mrb[46].mxu1 %vm663_vm2, %v10387_v45  ;;  %v10391_v45 = vld [vmem:[#allocation58_spill] sm:$0xff] }
 0x1b2   : > { %10386 = vst [vmem:[#allocation12_spill] sm:$0xff] %v9329_v5  ;;  %v9333_v59 = vpop.f32.mrb[7].mxu0  ;;  %7351 = vmatmul.mubr.msk.f32.gmra.mrb[48].mxu0 %vm663_vm2, %v9336_v46  ;;  %7250 = vmatprep.mubr.msk.f32.mxu1 %vm663_vm2, %v10389_v30  ;;  %v10393_v30 = vld [vmem:[#allocation59_spill] sm:$0xff] }
 0x1b3   : > { %10388 = vst [vmem:[#allocation13_spill] sm:$0xff] %v9333_v59  ;;  %7353 = vmatprep.mubr.msk.f32.mxu0 %vm663_vm2, %v9343_v55 }
 0x1b5   : > { %v9347_v5 = vpop.f32.mrb[8].mxu0  ;;  %7251 = vmatmul.mubr.msk.f32.gmra.mrb[48].mxu1 %vm663_vm2, %v10391_v45  ;;  %v10395_v45 = vld [vmem:[#allocation60_spill] sm:$0xff] }
 0x1b6   : > { %10390 = vst [vmem:[#allocation14_spill] sm:$0xff] %v9347_v5  ;;  %v9351_v59 = vpop.f32.mrb[9].mxu0  ;;  %7354 = vmatmul.mubr.msk.f32.gmra.mrb[50].mxu0 %vm663_vm2, %v9354_v43  ;;  %7253 = vmatprep.mubr.msk.f32.mxu1 %vm663_vm2, %v10393_v30  ;;  %v10397_v30 = vld [vmem:[#allocation61_spill] sm:$0xff] }
 0x1b7   : > { %10392 = vst [vmem:[#allocation15_spill] sm:$0xff] %v9351_v59  ;;  %7356 = vmatprep.mubr.msk.f32.mxu0 %vm663_vm2, %v9361_v16 }
 0x1b9   : > { %v9365_v5 = vpop.f32.mrb[10].mxu0  ;;  %7254 = vmatmul.mubr.msk.f32.gmra.mrb[50].mxu1 %vm663_vm2, %v10395_v45  ;;  %v10399_v45 = vld [vmem:[#allocation62_spill] sm:$0xff] }
 0x1ba   : > { %10394 = vst [vmem:[#allocation16_spill] sm:$0xff] %v9365_v5  ;;  %v9369_v59 = vpop.f32.mrb[11].mxu0  ;;  %7357 = vmatmul.mubr.msk.f32.gmra.mrb[52].mxu0 %vm663_vm2, %v9372_v9  ;;  %7256 = vmatprep.mubr.msk.f32.mxu1 %vm663_vm2, %v10397_v30  ;;  %v10401_v30 = vld [vmem:[#allocation63_spill] sm:$0xff] }
 0x1bb   : > { %10396 = vst [vmem:[#allocation17_spill] sm:$0xff] %v9369_v59  ;;  %7359 = vmatprep.mubr.msk.f32.mxu0 %vm663_vm2, %v9379_v51 }
 0x1bd   : > { %v9383_v5 = vpop.f32.mrb[12].mxu0  ;;  %7257 = vmatmul.mubr.msk.f32.gmra.mrb[52].mxu1 %vm663_vm2, %v10399_v45 }
 0x1be   : > { %10398 = vst [vmem:[#allocation18_spill] sm:$0xff] %v9383_v5  ;;  %v9387_v59 = vpop.f32.mrb[13].mxu0  ;;  %7360 = vmatmul.mubr.msk.f32.gmra.mrb[54].mxu0 %vm663_vm2, %v9390_v15  ;;  %7259 = vmatprep.mubr.msk.f32.mxu1 %vm663_vm2, %v10401_v30  ;;  %v9415_v30 = vld [vmem:[%s7982_s10 + $0xe0] sm:$0xff] }
 0x1bf   : > { %10400 = vst [vmem:[#allocation19_spill] sm:$0xff] %v9387_v59  ;;  %7362 = vmatprep.mubr.msk.f32.mxu0 %vm663_vm2, %v9397_v7  ;;  %v9408_v59 = vld [vmem:[%s7982_s10 + $0xd8] sm:$0xff] }
 0x1c1   : > { %v9401_v5 = vpop.f32.mrb[14].mxu0  ;;  %7260 = vmatmul.mubr.msk.f32.gmra.mrb[54].mxu1 %vm663_vm2, %v10347_v32 }
 0x1c2   : > { %10403 = vst [vmem:[#allocation21_spill] sm:$0xff] %v9401_v5  ;;  %v9405_v45 = vpop.f32.mrb[15].mxu0  ;;  %7363 = vmatmul.mubr.msk.f32.gmra.mrb[56].mxu0 %vm663_vm2, %v9408_v59  ;;  %7262 = vmatprep.mubr.msk.f32.mxu1 %vm663_vm2, %v10404_v41  ;;  %v9426_v5 = vld [vmem:[%s7982_s10 + $0xe8] sm:$0xff]  ;;  %s7887_s10 = smov 4  }
 0x1c3   : > { %7365 = vmatprep.mubr.msk.f32.mxu0 %vm663_vm2, %v9415_v30 }
 0x1c5   : > { %v9419_v7 = vpop.f32.mrb[16].mxu0  ;;  %7263 = vmatmul.mubr.msk.f32.gmra.mrb[56].mxu1 %vm663_vm2, %v10352_v38  ;;  %v10409_v38 = vmov 0.0  }
 0x1c6   : > { %10405 = vst [vmem:[#allocation22_spill] sm:$0xff] %v9419_v7  ;;  %v9423_v32 = vpop.f32.mrb[17].mxu0  ;;  %7366 = vmatmul.mubr.msk.f32.gmra.mrb[58].mxu0 %vm663_vm2, %v9426_v5  ;;  %7265 = vmatprep.mubr.msk.f32.mxu1 %vm663_vm2, %v8571_v26 }
 0x1c7   : > { %10406 = vst [vmem:[#allocation23_spill] sm:$0xff] %v9423_v32  ;;  %7368 = vmatprep.mubr.msk.f32.mxu0 %vm663_vm2, %v10364_v36 }
 0x1c9   : > { %v9434_v41 = vpop.f32.mrb[18].mxu0  ;;  %7266 = vmatmul.mubr.msk.f32.gmra.mrb[58].mxu1 %vm663_vm2, %v8582_v23  ;;  %v10410_v23 = vld [vmem:[#allocation39_spill] sm:$0xff] }
 0x1ca   : > { %10407 = vst [vmem:[#allocation24_spill] sm:$0xff] %v9434_v41  ;;  %v9438_v7 = vpop.f32.mrb[19].mxu0  ;;  %7369 = vmatmul.mubr.msk.f32.gmra.mrb[60].mxu0 %vm663_vm2, %v8719_v39  ;;  %7268 = vmatprep.mubr.msk.f32.mxu1 %vm663_vm2, %v8731_v20  ;;  %v10411_v20 = vld [vmem:[#allocation36_spill] sm:$0xff] }
 0x1cb   : > { %10408 = vst [vmem:[#allocation26_spill] sm:$0xff] %v9438_v7  ;;  %7371 = vmatprep.mubr.f32.mxu0 %v10409_v38 }
 0x1cd   : > { %v9445_v32 = vpop.f32.mrb[20].mxu0  ;;  %7269 = vmatmul.mubr.msk.f32.gmra.mrb[60].mxu1 %vm663_vm2, %v8742_v27 }
 0x1ce   : > { %v9449_v26 = vpop.f32.mrb[21].mxu0  ;;  %7372 = vmatmul.mubr.f32.gmra.mrb[62].mxu0 %v10409_v38  ;;  %7271 = vmatprep.mubr.msk.f32.mxu1 %vm663_vm2, %v10410_v23 }
 0x1cf   : > { %7376 = vmatprep.mubr.msk.f32.mxu0 %vm663_vm2, %v10321_v2 }
 0x1d1   : > { %v9456_v41 = vpop.f32.mrb[22].mxu0  ;;  %7272 = vmatmul.mubr.msk.f32.gmra.mrb[62].mxu1 %vm663_vm2, %v10411_v20 }
 0x1d2   : > { %v9460_v7 = vpop.f32.mrb[23].mxu0  ;;  %7377 = vmatmul.mubr.msk.f32.vlgmr.msra.gmra.mrb[32].mxu0 %vm663_vm2, %v10322_v58  ;;  %7276 = vmatprep.mubr.msk.f32.mxu1 %vm663_vm2, %v9197_v37 }
 0x1d3   : > { %7379 = vmatprep.mubr.msk.f32.mxu0 %vm663_vm2, %v10323_v52 }
 0x1d5   : > { %v9468_v27 = vpop.f32.mrb[24].mxu0  ;;  %7277 = vmatmul.mubr.msk.f32.vlgmr.msra.gmra.mrb[32].mxu1 %vm663_vm2, %v9204_v42 }
 0x1d6   : > { %v9472_v2 = vpop.f32.mrb[25].mxu0  ;;  %7380 = vmatmul.mubr.msk.f32.gmra.mrb[34].mxu0 %vm663_vm2, %v10324_v4  ;;  %7279 = vmatprep.mubr.msk.f32.mxu1 %vm663_vm2, %v9213_v48 }
 0x1d7   : > { %7382 = vmatprep.mubr.msk.f32.mxu0 %vm663_vm2, %v10325_v33 }
 0x1d9   : > { %v9480_v58 = vpop.f32.mrb[26].mxu0  ;;  %7280 = vmatmul.mubr.msk.f32.gmra.mrb[34].mxu1 %vm663_vm2, %v9220_v54 }
 0x1da   : > { %v9484_v52 = vpop.f32.mrb[27].mxu0  ;;  %7383 = vmatmul.mubr.msk.f32.gmra.mrb[36].mxu0 %vm663_vm2, %v10326_v18  ;;  %7282 = vmatprep.mubr.msk.f32.mxu1 %vm663_vm2, %v9227_v60 }
 0x1db   : > { %7385 = vmatprep.mubr.msk.f32.mxu0 %vm663_vm2, %v10327_v6 }
 0x1dd   : > { %v9492_v4 = vpop.f32.mrb[28].mxu0  ;;  %7283 = vmatmul.mubr.msk.f32.gmra.mrb[36].mxu1 %vm663_vm2, %v9236_v3 }
 0x1de   : > { %v9496_v33 = vpop.f32.mrb[29].mxu0  ;;  %7386 = vmatmul.mubr.msk.f32.gmra.mrb[38].mxu0 %vm663_vm2, %v10328_v35  ;;  %7285 = vmatprep.mubr.msk.f32.mxu1 %vm663_vm2, %v9243_v21  ;;  %v9605_v35 = vld [vmem:[%s10138_s4] ss:$0 sm:$0xff] }
 0x1df   : > { %7388 = vmatprep.mubr.msk.f32.mxu0 %vm663_vm2, %v10329_v47  ;;  %v10418_v47 = vld [vmem:[#allocation3_spill] sm:$0xff] }
 0x1e1   : > { %v9504_v18 = vpop.f32.mrb[30].mxu0  ;;  %7286 = vmatmul.mubr.msk.f32.gmra.mrb[38].mxu1 %vm663_vm2, %v9250_v40 }
 0x1e2   : > { %v9508_v6 = vpop.f32.mrb[31].mxu0  ;;  %7389 = vmatmul.mubr.msk.f32.gmra.mrb[40].mxu0 %vm663_vm2, %v10330_v8  ;;  %7288 = vmatprep.mubr.msk.f32.mxu1 %vm663_vm2, %v9257_v34 }
 0x1e3   : > { %7391 = vmatprep.mubr.msk.f32.mxu0 %vm663_vm2, %v10331_v1 }
 0x1e5   : > { %7289 = vmatmul.mubr.msk.f32.gmra.mrb[40].mxu1 %vm663_vm2, %v9264_v19 }
 0x1e6   : > { %7392 = vmatmul.mubr.msk.f32.gmra.mrb[42].mxu0 %vm663_vm2, %v10332_v53  ;;  %7291 = vmatprep.mubr.msk.f32.mxu1 %vm663_vm2, %v9271_v57 }
 0x1e7   : > { %7394 = vmatprep.mubr.msk.f32.mxu0 %vm663_vm2, %v10333_v28  ;;  %v10417_v28 = vld [vmem:[#allocation2_spill] sm:$0xff] }
 0x1e9   : > { %7292 = vmatmul.mubr.msk.f32.gmra.mrb[42].mxu1 %vm663_vm2, %v9282_v24 }
 0x1ea   : > { %7395 = vmatmul.mubr.msk.f32.gmra.mrb[44].mxu0 %vm663_vm2, %v10334_v0  ;;  %7294 = vmatprep.mubr.msk.f32.mxu1 %vm663_vm2, %v9289_v31 }
 0x1eb   : > { %7397 = vmatprep.mubr.msk.f32.mxu0 %vm663_vm2, %v10335_v12  ;;  %v10415_v12 = vld [vmem:[#allocation4_spill] sm:$0xff] }
 0x1ed   : > { %7295 = vmatmul.mubr.msk.f32.gmra.mrb[44].mxu1 %vm663_vm2, %v9300_v61 }
 0x1ee   : > { %7398 = vmatmul.mubr.msk.f32.gmra.mrb[46].mxu0 %vm663_vm2, %v10336_v29  ;;  %7297 = vmatprep.mubr.msk.f32.mxu1 %vm663_vm2, %v9307_v22 }
 0x1ef   : > { %7400 = vmatprep.mubr.msk.f32.mxu0 %vm663_vm2, %v10337_v62  ;;  %v10414_v62 = vld [vmem:[#allocation40_spill] sm:$0xff] }
 0x1f1   : > { %7298 = vmatmul.mubr.msk.f32.gmra.mrb[46].mxu1 %vm663_vm2, %v9318_v11 }
 0x1f2   : > { %7401 = vmatmul.mubr.msk.f32.gmra.mrb[48].mxu0 %vm663_vm2, %v10338_v13  ;;  %7300 = vmatprep.mubr.msk.f32.mxu1 %vm663_vm2, %v9325_v49 }
 0x1f3   : > { %7403 = vmatprep.mubr.msk.f32.mxu0 %vm663_vm2, %v10339_v56  ;;  %v10413_v56 = vld [vmem:[#allocation38_spill] sm:$0xff] }
 0x1f5   : > { %7301 = vmatmul.mubr.msk.f32.gmra.mrb[48].mxu1 %vm663_vm2, %v9336_v46 }
 0x1f6   : > { %7404 = vmatmul.mubr.msk.f32.gmra.mrb[50].mxu0 %vm663_vm2, %v10340_v63  ;;  %7303 = vmatprep.mubr.msk.f32.mxu1 %vm663_vm2, %v9343_v55 }
 0x1f7   : > { %7406 = vmatprep.mubr.msk.f32.mxu0 %vm663_vm2, %v10341_v50  ;;  %v10412_v50 = vld [vmem:[#allocation20_spill] sm:$0xff] }
 0x1f9   : > { %7304 = vmatmul.mubr.msk.f32.gmra.mrb[50].mxu1 %vm663_vm2, %v9354_v43 }
 0x1fa   : > { %7407 = vmatmul.mubr.msk.f32.gmra.mrb[52].mxu0 %vm663_vm2, %v10355_v10  ;;  %7306 = vmatprep.mubr.msk.f32.mxu1 %vm663_vm2, %v9361_v16 }
 0x1fb   : > { %7409 = vmatprep.mubr.msk.f32.mxu0 %vm663_vm2, %v10357_v14 }
 0x1fd   : > { %7307 = vmatmul.mubr.msk.f32.gmra.mrb[52].mxu1 %vm663_vm2, %v9372_v9 }
 0x1fe   : > { %7410 = vmatmul.mubr.msk.f32.gmra.mrb[54].mxu0 %vm663_vm2, %v10359_v17  ;;  %7309 = vmatprep.mubr.msk.f32.mxu1 %vm663_vm2, %v9379_v51 }
 0x1ff   : > { %7412 = vmatprep.mubr.msk.f32.mxu0 %vm663_vm2, %v10361_v25 }
 0x201   : > { %7310 = vmatmul.mubr.msk.f32.gmra.mrb[54].mxu1 %vm663_vm2, %v9390_v15 }
 0x202   : > { %7413 = vmatmul.mubr.msk.f32.gmra.mrb[56].mxu0 %vm663_vm2, %v10348_v44  ;;  %7312 = vmatprep.mubr.msk.f32.mxu1 %vm663_vm2, %v10412_v50  ;;  %v10416_v44 = vld [vmem:[#allocation5_spill] sm:$0xff] }
 0x203   : > { %7415 = vmatprep.mubr.msk.f32.mxu0 %vm663_vm2, %v10413_v56 }
 0x205   : > { %7313 = vmatmul.mubr.msk.f32.gmra.mrb[56].mxu1 %vm663_vm2, %v9408_v59 }
 0x206   : > { %7416 = vmatmul.mubr.msk.f32.gmra.mrb[58].mxu0 %vm663_vm2, %v10414_v62  ;;  %7315 = vmatprep.mubr.msk.f32.mxu1 %vm663_vm2, %v9415_v30 }
 0x207   : > { %7418 = vmatprep.mubr.msk.f32.mxu0 %vm663_vm2, %v10415_v12 }
 0x209   : > { %7316 = vmatmul.mubr.msk.f32.gmra.mrb[58].mxu1 %vm663_vm2, %v9426_v5 }
 0x20a   : > { %7419 = vmatmul.mubr.msk.f32.gmra.mrb[60].mxu0 %vm663_vm2, %v10416_v44  ;;  %7318 = vmatprep.mubr.msk.f32.mxu1 %vm663_vm2, %v10364_v36 }
 0x20b   : > { %7421 = vmatprep.mubr.msk.f32.mxu0 %vm663_vm2, %v10417_v28 }
 0x20d   : > { %7319 = vmatmul.mubr.msk.f32.gmra.mrb[60].mxu1 %vm663_vm2, %v8719_v39 }
 0x20e   : > { %7422 = vmatmul.mubr.msk.f32.gmra.mrb[62].mxu0 %vm663_vm2, %v10418_v47  ;;  %7321 = vmatprep.mubr.f32.mxu1 %v10409_v38 }
 0x211   : > { %7322 = vmatmul.mubr.f32.gmra.mrb[62].mxu1 %v10409_v38 }
 0x228   : > { %v7078_v8 = vpop.f32.mrb[0].mxu1 }
 0x229   : > { %v4889_v1 = vadd.f32 %v7078_v8, %v9605_v35  ;;  %v3138_v53 = vpop.f32.mrb[1].mxu1 }
 0x22a   : > { %v4888_v29 = vadd.f32 %v9605_v35, %v3138_v53 }
 0x22b   : > { %4954 = vrot.lane.b32.xlu0 %v4889_v1, %s7887_s10 }
 0x22c   : > { %v7081_v0 = vpop.f32.mrb[2].mxu1 }
 0x22d   : > { %v4891_v13 = vadd.f32 %v7081_v0, %v9605_v35  ;;  %v3148_v63 = vpop.f32.mrb[3].mxu1 }
 0x22e   : > { %v4890_v39 = vadd.f32 %v9605_v35, %v3148_v63 }
 0x22f   : > { %4952 = vrot.lane.b32.xlu0 %v4888_v29, %s7887_s10  ;;  %4958 = vrot.lane.b32.xlu1 %v4891_v13, %s7887_s10 }
 0x230   : > { %v7084_v51 = vpop.f32.mrb[4].mxu1 }
 0x231   : > { %v3158_v15 = vpop.f32.mrb[5].mxu1  ;;  %v4893_v17 = vadd.f32 %v7084_v51, %v9605_v35 }
 0x232   : > { %v4892_v10 = vadd.f32 %v9605_v35, %v3158_v15 }
 0x233   : > { %4956 = vrot.lane.b32.xlu1 %v4890_v39, %s7887_s10 }
 0x234   : > { %4960 = vrot.lane.b32.xlu0 %v4892_v10, %s7887_s10  ;;  %v7087_v14 = vpop.f32.mrb[6].mxu1 }
 0x235   : > { %v3168_v25 = vpop.f32.mrb[7].mxu1  ;;  %v4895_v42 = vadd.f32 %v7087_v14, %v9605_v35 }
 0x236   : > { %v4894_v36 = vadd.f32 %v9605_v35, %v3168_v25 }
 0x237   : > { %4962 = vrot.lane.b32.xlu1 %v4893_v17, %s7887_s10 }
 0x238   : > { %4964 = vrot.lane.b32.xlu0 %v4894_v36, %s7887_s10  ;;  %v7090_v37 = vpop.f32.mrb[8].mxu1  ;;  %v10419_v36 = vld [vmem:[#allocation6_spill] sm:$0xff] }
 0x239   : > { %v3178_v48 = vpop.f32.mrb[9].mxu1  ;;  %v4897_v3 = vadd.f32 %v7090_v37, %v9605_v35  ;;  %v4857_v37 = vadd.f32 %v10419_v36, %v9605_v35 }
 0x23a   : > { %v4896_v54 = vadd.f32 %v9605_v35, %v3178_v48 }
 0x23b   : > { %4966 = vrot.lane.b32.xlu1 %v4895_v42, %s7887_s10 }
 0x23c   : > { %4968 = vrot.lane.b32.xlu0 %v4896_v54, %s7887_s10  ;;  %v7093_v60 = vpop.f32.mrb[10].mxu1  ;;  %v10420_v54 = vld [vmem:[#allocation7_spill] sm:$0xff] }
 0x23d   : > { %v3188_v21 = vpop.f32.mrb[11].mxu1  ;;  %v4899_v19 = vadd.f32 %v7093_v60, %v9605_v35  ;;  %v4856_v60 = vadd.f32 %v9605_v35, %v10420_v54 }
 0x23e   : > { %v4898_v40 = vadd.f32 %v9605_v35, %v3188_v21 }
 0x23f   : > { %4970 = vrot.lane.b32.xlu1 %v4897_v3, %s7887_s10  ;;  %v10421_v3 = vld [vmem:[#allocation8_spill] sm:$0xff] }
 0x240   : > { %4972 = vrot.lane.b32.xlu0 %v4898_v40, %s7887_s10  ;;  %v7096_v34 = vpop.f32.mrb[12].mxu1  ;;  %v4859_v21 = vadd.f32 %v10421_v3, %v9605_v35 }
 0x241   : > { %v3198_v57 = vpop.f32.mrb[13].mxu1  ;;  %v4901_v24 = vadd.f32 %v7096_v34, %v9605_v35 }
 0x242   : > { %v4900_v9 = vadd.f32 %v9605_v35, %v3198_v57 }
 0x243   : > { %4974 = vrot.lane.b32.xlu1 %v4899_v19, %s7887_s10 }
 0x244   : > { %4976 = vrot.lane.b32.xlu0 %v4900_v9, %s7887_s10  ;;  %v7099_v16 = vpop.f32.mrb[14].mxu1  ;;  %v10422_v9 = vld [vmem:[#allocation9_spill] sm:$0xff] }
 0x245   : > { %v3208_v31 = vpop.f32.mrb[15].mxu1  ;;  %v4903_v61 = vadd.f32 %v7099_v16, %v9605_v35  ;;  %v4858_v16 = vadd.f32 %v9605_v35, %v10422_v9 }
 0x246   : > { %v4902_v43 = vadd.f32 %v9605_v35, %v3208_v31 }
 0x247   : > { %4978 = vrot.lane.b32.xlu1 %v4901_v24, %s7887_s10  ;;  %v10423_v24 = vld [vmem:[#allocation11_spill] sm:$0xff] }
 0x248   : > { %4980 = vrot.lane.b32.xlu0 %v4902_v43, %s7887_s10  ;;  %v7102_v55 = vpop.f32.mrb[16].mxu1  ;;  %v4860_v31 = vadd.f32 %v9605_v35, %v10423_v24 }
 0x249   : > { %v3218_v22 = vpop.f32.mrb[17].mxu1  ;;  %v4905_v11 = vadd.f32 %v7102_v55, %v9605_v35 }
 0x24a   : > { %v4904_v59 = vadd.f32 %v9605_v35, %v3218_v22 }
 0x24b   : > { %4982 = vrot.lane.b32.xlu1 %v4903_v61, %s7887_s10 }
 0x24c   : > { %4984 = vrot.lane.b32.xlu0 %v4904_v59, %s7887_s10  ;;  %v7105_v46 = vpop.f32.mrb[18].mxu1 }
 0x24d   : > { %v3228_v49 = vpop.f32.mrb[19].mxu1  ;;  %v4907_v38 = vadd.f32 %v7105_v46, %v9605_v35 }
 0x24e   : > { %v4906_v5 = vadd.f32 %v9605_v35, %v3228_v49 }
 0x24f   : > { %4986 = vrot.lane.b32.xlu1 %v4905_v11, %s7887_s10 }
 0x250   : > { %4988 = vrot.lane.b32.xlu0 %v4906_v5, %s7887_s10  ;;  %v7108_v30 = vpop.f32.mrb[20].mxu1  ;;  %v10424_v5 = vld [vmem:[#allocation10_spill] sm:$0xff] }
 0x251   : > { %v3238_v23 = vpop.f32.mrb[21].mxu1  ;;  %v4909_v56 = vadd.f32 %v7108_v30, %v9605_v35  ;;  %v4861_v30 = vadd.f32 %v10424_v5, %v9605_v35 }
 0x252   : > { %v4908_v20 = vadd.f32 %v9605_v35, %v3238_v23  ;;  %v10425_v23 = vld [vmem:[#allocation13_spill] sm:$0xff] }
 0x253   : > { %4990 = vrot.lane.b32.xlu1 %v4907_v38, %s7887_s10 }
 0x254   : > { %4992 = vrot.lane.b32.xlu0 %v4908_v20, %s7887_s10  ;;  %v7111_v50 = vpop.f32.mrb[22].mxu1  ;;  %v4862_v20 = vadd.f32 %v9605_v35, %v10425_v23 }
 0x255   : > { %v3248_v62 = vpop.f32.mrb[23].mxu1  ;;  %v4911_v28 = vadd.f32 %v7111_v50, %v9605_v35 }
 0x256   : > { %v4910_v12 = vadd.f32 %v9605_v35, %v3248_v62 }
 0x257   : > { %4994 = vrot.lane.b32.xlu1 %v4909_v56, %s7887_s10 }
 0x258   : > { %4996 = vrot.lane.b32.xlu0 %v4910_v12, %s7887_s10  ;;  %v7114_v44 = vpop.f32.mrb[24].mxu1 }
 0x259   : > { %v3258_v47 = vpop.f32.mrb[25].mxu1  ;;  %v4913_v53 = vadd.f32 %v7114_v44, %v9605_v35 }
 0x25a   : > { %v4912_v8 = vadd.f32 %v9605_v35, %v3258_v47 }
 0x25b   : > { %4998 = vrot.lane.b32.xlu1 %v4911_v28, %s7887_s10 }
 0x25c   : > { %5000 = vrot.lane.b32.xlu0 %v4912_v8, %s7887_s10  ;;  %v7117_v1 = vpop.f32.mrb[26].mxu1 }
 0x25d   : > { %v3268_v0 = vpop.f32.mrb[27].mxu1  ;;  %v4915_v63 = vadd.f32 %v7117_v1, %v9605_v35  ;;  %v10426_v1 = vld [vmem:[#allocation12_spill] sm:$0xff] }
 0x25e   : > { %v4914_v29 = vadd.f32 %v9605_v35, %v3268_v0 }
 0x25f   : > { %5002 = vrot.lane.b32.xlu1 %v4913_v53, %s7887_s10  ;;  %v4863_v53 = vadd.f32 %v10426_v1, %v9605_v35 }
 0x260   : > { %5004 = vrot.lane.b32.xlu0 %v4914_v29, %s7887_s10  ;;  %v7120_v13 = vpop.f32.mrb[28].mxu1 }
 0x261   : > { %v3278_v51 = vpop.f32.mrb[29].mxu1  ;;  %v4917_v10 = vadd.f32 %v7120_v13, %v9605_v35  ;;  %v10427_v13 = vld [vmem:[#allocation15_spill] sm:$0xff] }
 0x262   : > { %v4916_v39 = vadd.f32 %v9605_v35, %v3278_v51 }
 0x263   : > { %5006 = vrot.lane.b32.xlu1 %v4915_v63, %s7887_s10  ;;  %v4864_v63 = vadd.f32 %v9605_v35, %v10427_v13 }
 0x264   : > { %5008 = vrot.lane.b32.xlu0 %v4916_v39, %s7887_s10  ;;  %v7123_v15 = vpop.f32.mrb[30].mxu1 }
 0x265   : > { %v3288_v14 = vpop.f32.mrb[31].mxu1  ;;  %v4919_v25 = vadd.f32 %v7123_v15, %v9605_v35 }
 0x266   : > { %v4918_v17 = vadd.f32 %v9605_v35, %v3288_v14 }
 0x267   : > { %5010 = vrot.lane.b32.xlu1 %v4917_v10, %s7887_s10 }
 0x268   : > { %5012 = vrot.lane.b32.xlu0 %v4918_v17, %s7887_s10 }
 0x26b   : > { %5014 = vrot.lane.b32.xlu1 %v4919_v25, %s7887_s10 }
 0x29d   : > { %v4955_v42 = vpop.permute.xlu0 %4954 }
 0x29e   : > { %v5049_v48 = vsel %vm663_vm2, %v4857_v37, %v4955_v42  ;;  %v10428_v37 = vld [vmem:[#allocation14_spill] sm:$0xff] }
 0x29f   : > { %5082 = vst.msk [vmem:[%s9675_s14 + $0x8] sm:$0xff] %vm5080_vm4, %v5049_v48  ;;  %v4865_v42 = vadd.f32 %v10428_v37, %v9605_v35 }
 0x2a1   : > { %v4953_v40 = vpop.permute.xlu0 %4952  ;;  %v4959_v34 = vpop.permute.xlu1 %4958 }
 0x2a2   : > { %v5048_v19 = vsel %vm663_vm2, %v4856_v60, %v4953_v40  ;;  %v5051_v57 = vsel %vm663_vm2, %v4859_v21, %v4959_v34  ;;  %v10429_v60 = vld [vmem:[#allocation17_spill] sm:$0xff] }
 0x2a3   : > { %5081 = vst.msk [vmem:[%s9675_s14] sm:$0xff] %vm5080_vm4, %v5048_v19  ;;  %5084 = vst.msk [vmem:[%s9675_s14 + $0x28] sm:$0xff] %vm5080_vm4, %v5051_v57  ;;  %v4866_v3 = vadd.f32 %v9605_v35, %v10429_v60 }
 0x2a5   : > { %v4957_v43 = vpop.permute.xlu1 %4956  ;;  %v7378_v55 = vpop.f32.mrb[32].mxu0 }
 0x2a6   : > { %v5050_v61 = vsel %vm663_vm2, %v4858_v16, %v4957_v43  ;;  %v5146_v22 = vadd.f32 %v7378_v55, %v9605_v35  ;;  %v4961_v59 = vpop.permute.xlu0 %4960  ;;  %v4658_v46 = vpop.f32.mrb[33].mxu0 }
 0x2a7   : > { %5083 = vst.msk [vmem:[%s9675_s14 + $0x20] sm:$0xff] %vm5080_vm4, %v5050_v61  ;;  %v5052_v11 = vsel %vm663_vm2, %v4860_v31, %v4961_v59  ;;  %v5145_v49 = vadd.f32 %v9605_v35, %v4658_v46  ;;  %v10430_v31 = vld [vmem:[#allocation16_spill] sm:$0xff] }
 0x2a8   : > { %5085 = vst.msk [vmem:[%s9675_s14 + $0x40] sm:$0xff] %vm5080_vm4, %v5052_v11  ;;  %v9706_v38 = vpop.f32.mrb[32].mxu1  ;;  %5211 = vrot.lane.b32.xlu1 %v5146_v22, %s7887_s10  ;;  %v4867_v43 = vadd.f32 %v10430_v31, %v9605_v35  ;;  %v10431_v22 = vld [vmem:[#allocation19_spill] sm:$0xff]  ;;  %v10436_v31 = vld [vmem:[#allocation26_spill] sm:$0xff] }
 0x2a9   : > { %v4963_v50 = vpop.permute.xlu1 %4962  ;;  %v9711_v56 = vpop.f32.mrb[33].mxu1  ;;  %5209 = vrot.lane.b32.xlu0 %v5145_v49, %s7887_s10  ;;  %v4868_v59 = vadd.f32 %v9605_v35, %v10431_v22 }
 0x2aa   : > { %v5053_v62 = vsel %vm663_vm2, %v4861_v30, %v4963_v50  ;;  %v7381_v12 = vpop.f32.mrb[34].mxu0  ;;  %v4965_v44 = vpop.permute.xlu0 %4964 }
 0x2ab   : > { %5086 = vst.msk [vmem:[%s9675_s14 + $0x48] sm:$0xff] %vm5080_vm4, %v5053_v62  ;;  %v5148_v28 = vadd.f32 %v7381_v12, %v9605_v35  ;;  %v5054_v47 = vsel %vm663_vm2, %v4862_v20, %v4965_v44  ;;  %v4668_v8 = vpop.f32.mrb[35].mxu0  ;;  %v10432_v62 = vld [vmem:[#allocation18_spill] sm:$0xff] }
 0x2ac   : > { %5087 = vst.msk [vmem:[%s9675_s14 + $0x60] sm:$0xff] %vm5080_vm4, %v5054_v47  ;;  %v5147_v0 = vadd.f32 %v9605_v35, %v4668_v8  ;;  %v9724_v29 = vpop.f32.mrb[34].mxu1  ;;  %v4869_v12 = vadd.f32 %v10432_v62, %v9605_v35  ;;  %v4870_v47 = vadd.f32 %v9605_v35, %v9405_v45  ;;  %v10433_v45 = vld [vmem:[#allocation21_spill] sm:$0xff] }
 0x2ad   : > { %5215 = vrot.lane.b32.xlu1 %v5148_v28, %s7887_s10  ;;  %v4967_v51 = vpop.permute.xlu1 %4966  ;;  %v9729_v39 = vpop.f32.mrb[35].mxu1 }
 0x2ae   : > { %v5055_v15 = vsel %vm663_vm2, %v4863_v53, %v4967_v51  ;;  %5213 = vrot.lane.b32.xlu0 %v5147_v0, %s7887_s10  ;;  %v7384_v10 = vpop.f32.mrb[36].mxu0  ;;  %v4969_v14 = vpop.permute.xlu0 %4968 }
 0x2af   : > { %5088 = vst.msk [vmem:[%s9675_s14 + $0x68] sm:$0xff] %vm5080_vm4, %v5055_v15  ;;  %v5150_v17 = vadd.f32 %v7384_v10, %v9605_v35  ;;  %v5056_v25 = vsel %vm663_vm2, %v4864_v63, %v4969_v14  ;;  %v4678_v36 = vpop.f32.mrb[37].mxu0  ;;  %v4871_v10 = vadd.f32 %v10433_v45, %v9605_v35 }
 0x2b0   : > { %5089 = vst.msk [vmem:[%s9675_s14 + $0x80] sm:$0xff] %vm5080_vm4, %v5056_v25  ;;  %v5149_v48 = vadd.f32 %v9605_v35, %v4678_v36  ;;  %v9742_v54 = vpop.f32.mrb[36].mxu1  ;;  %v10434_v25 = vld [vmem:[#allocation23_spill] sm:$0xff] }
 0x2b1   : > { %5219 = vrot.lane.b32.xlu1 %v5150_v17, %s7887_s10  ;;  %v4971_v21 = vpop.permute.xlu1 %4970  ;;  %v9747_v40 = vpop.f32.mrb[37].mxu1  ;;  %v4872_v36 = vadd.f32 %v9605_v35, %v10434_v25 }
 0x2b2   : > { %v5057_v34 = vsel %vm663_vm2, %v4865_v42, %v4971_v21  ;;  %5217 = vrot.lane.b32.xlu0 %v5149_v48, %s7887_s10  ;;  %v7387_v19 = vpop.f32.mrb[38].mxu0  ;;  %v4973_v57 = vpop.permute.xlu0 %4972 }
 0x2b3   : > { %5090 = vst.msk [vmem:[%s9675_s14 + $0x88] sm:$0xff] %vm5080_vm4, %v5057_v34  ;;  %v5152_v9 = vadd.f32 %v7387_v19, %v9605_v35  ;;  %v5058_v16 = vsel %vm663_vm2, %v4866_v3, %v4973_v57  ;;  %v4688_v24 = vpop.f32.mrb[39].mxu0  ;;  %v10435_v57 = vld [vmem:[#allocation22_spill] sm:$0xff] }
 0x2b4   : > { %5091 = vst.msk [vmem:[%s9675_s14 + $0xa0] sm:$0xff] %vm5080_vm4, %v5058_v16  ;;  %v5151_v55 = vadd.f32 %v9605_v35, %v4688_v24  ;;  %v9760_v61 = vpop.f32.mrb[38].mxu1 }
 0x2b5   : > { %5223 = vrot.lane.b32.xlu1 %v5152_v9, %s7887_s10  ;;  %v4975_v46 = vpop.permute.xlu1 %4974  ;;  %v9765_v11 = vpop.f32.mrb[39].mxu1  ;;  %v4873_v9 = vadd.f32 %v10435_v57, %v9605_v35  ;;  %v4880_v57 = vadd.f32 %v9605_v35, %v9472_v2  ;;  %v4881_v2 = vadd.f32 %v9468_v27, %v9605_v35 }
 0x2b6   : > { %v5059_v49 = vsel %vm663_vm2, %v4867_v43, %v4975_v46  ;;  %5221 = vrot.lane.b32.xlu0 %v5151_v55, %s7887_s10  ;;  %v7390_v5 = vpop.f32.mrb[40].mxu0  ;;  %v4977_v30 = vpop.permute.xlu0 %4976  ;;  %v4874_v43 = vadd.f32 %v9605_v35, %v10436_v31 }
 0x2b7   : > { %5092 = vst.msk [vmem:[%s9675_s14 + $0xa8] sm:$0xff] %vm5080_vm4, %v5059_v49  ;;  %v5154_v23 = vadd.f32 %v7390_v5, %v9605_v35  ;;  %v5060_v20 = vsel %vm663_vm2, %v4868_v59, %v4977_v30  ;;  %v4698_v50 = vpop.f32.mrb[41].mxu0 }
 0x2b8   : > { %5093 = vst.msk [vmem:[%s9675_s14 + $0xc0] sm:$0xff] %vm5080_vm4, %v5060_v20  ;;  %v5153_v44 = vadd.f32 %v9605_v35, %v4698_v50  ;;  %v9778_v28 = vpop.f32.mrb[40].mxu1  ;;  %v10437_v20 = vld [vmem:[#allocation24_spill] sm:$0xff] }
 0x2b9   : > { %5227 = vrot.lane.b32.xlu1 %v5154_v23, %s7887_s10  ;;  %v4979_v8 = vpop.permute.xlu1 %4978  ;;  %v9783_v1 = vpop.f32.mrb[41].mxu1  ;;  %v4875_v50 = vadd.f32 %v10437_v20, %v9605_v35 }
 0x2ba   : > { %v5061_v53 = vsel %vm663_vm2, %v4869_v12, %v4979_v8  ;;  %5225 = vrot.lane.b32.xlu0 %v5153_v44, %s7887_s10  ;;  %v7393_v0 = vpop.f32.mrb[42].mxu0  ;;  %v4981_v13 = vpop.permute.xlu0 %4980  ;;  %v4876_v44 = vadd.f32 %v9605_v35, %v9449_v26  ;;  %v4877_v26 = vadd.f32 %v9445_v32, %v9605_v35 }
 0x2bb   : > { %5094 = vst.msk [vmem:[%s9675_s14 + $0xc8] sm:$0xff] %vm5080_vm4, %v5061_v53  ;;  %v5156_v63 = vadd.f32 %v7393_v0, %v9605_v35  ;;  %v5062_v51 = vsel %vm663_vm2, %v4870_v47, %v4981_v13  ;;  %v4708_v15 = vpop.f32.mrb[43].mxu0 }
 0x2bc   : > { %5095 = vst.msk [vmem:[%s9675_s14 + $0xe0] sm:$0xff] %vm5080_vm4, %v5062_v51  ;;  %v5155_v14 = vadd.f32 %v9605_v35, %v4708_v15  ;;  %v9796_v17 = vpop.f32.mrb[42].mxu1 }
 0x2bd   : > { %5231 = vrot.lane.b32.xlu1 %v5156_v63, %s7887_s10  ;;  %v4983_v37 = vpop.permute.xlu1 %4982  ;;  %v9801_v42 = vpop.f32.mrb[43].mxu1 }
 0x2be   : > { %v5063_v48 = vsel %vm663_vm2, %v4871_v10, %v4983_v37  ;;  %5229 = vrot.lane.b32.xlu0 %v5155_v14, %s7887_s10  ;;  %v7396_v60 = vpop.f32.mrb[44].mxu0  ;;  %v4985_v3 = vpop.permute.xlu0 %4984  ;;  %v4878_v14 = vadd.f32 %v9605_v35, %v9460_v7  ;;  %v4879_v7 = vadd.f32 %v9456_v41, %v9605_v35 }
 0x2bf   : > { %5096 = vst.msk [vmem:[%s9675_s14 + $0xe8] sm:$0xff] %vm5080_vm4, %v5063_v48  ;;  %v5158_v21 = vadd.f32 %v7396_v60, %v9605_v35  ;;  %v5064_v34 = vsel %vm663_vm2, %v4872_v36, %v4985_v3  ;;  %v4718_v19 = vpop.f32.mrb[45].mxu0 }
 0x2c0   : > { %5097 = vst.msk [vmem:[%s9675_s14 + $0x100] sm:$0xff] %vm5080_vm4, %v5064_v34  ;;  %v5157_v16 = vadd.f32 %v9605_v35, %v4718_v19  ;;  %v9814_v24 = vpop.f32.mrb[44].mxu1 }
 0x2c1   : > { %5235 = vrot.lane.b32.xlu1 %v5158_v21, %s7887_s10  ;;  %v4987_v55 = vpop.permute.xlu1 %4986  ;;  %v9819_v22 = vpop.f32.mrb[45].mxu1 }
 0x2c2   : > { %v5065_v59 = vsel %vm663_vm2, %v4873_v9, %v4987_v55  ;;  %5233 = vrot.lane.b32.xlu0 %v5157_v16, %s7887_s10  ;;  %v7399_v46 = vpop.f32.mrb[46].mxu0  ;;  %v4989_v49 = vpop.permute.xlu0 %4988 }
 0x2c3   : > { %5098 = vst.msk [vmem:[%s9675_s14 + $0x108] sm:$0xff] %vm5080_vm4, %v5065_v59  ;;  %v5160_v5 = vadd.f32 %v7399_v46, %v9605_v35  ;;  %v5066_v30 = vsel %vm663_vm2, %v4874_v43, %v4989_v49  ;;  %v4728_v23 = vpop.f32.mrb[47].mxu0 }
 0x2c4   : > { %5099 = vst.msk [vmem:[%s9675_s14 + $0x120] sm:$0xff] %vm5080_vm4, %v5066_v30  ;;  %v5159_v62 = vadd.f32 %v9605_v35, %v4728_v23  ;;  %v9832_v12 = vpop.f32.mrb[46].mxu1  ;;  %v4882_v30 = vadd.f32 %v9605_v35, %v9484_v52  ;;  %v4883_v52 = vadd.f32 %v9480_v58, %v9605_v35 }
 0x2c5   : > { %5239 = vrot.lane.b32.xlu1 %v5160_v5, %s7887_s10  ;;  %v4991_v47 = vpop.permute.xlu1 %4990  ;;  %v9837_v8 = vpop.f32.mrb[47].mxu1 }
 0x2c6   : > { %v5067_v53 = vsel %vm663_vm2, %v4875_v50, %v4991_v47  ;;  %5237 = vrot.lane.b32.xlu0 %v5159_v62, %s7887_s10  ;;  %v7402_v0 = vpop.f32.mrb[48].mxu0  ;;  %v4993_v13 = vpop.permute.xlu0 %4992 }
 0x2c7   : > { %5100 = vst.msk [vmem:[%s9675_s14 + $0x128] sm:$0xff] %vm5080_vm4, %v5067_v53  ;;  %v5162_v63 = vadd.f32 %v7402_v0, %v9605_v35  ;;  %v5068_v51 = vsel %vm663_vm2, %v4876_v44, %v4993_v13  ;;  %v4738_v15 = vpop.f32.mrb[49].mxu0 }
 0x2c8   : > { %5101 = vst.msk [vmem:[%s9675_s14 + $0x140] sm:$0xff] %vm5080_vm4, %v5068_v51  ;;  %v5161_v45 = vadd.f32 %v9605_v35, %v4738_v15  ;;  %v9850_v10 = vpop.f32.mrb[48].mxu1 }
 0x2c9   : > { %5243 = vrot.lane.b32.xlu1 %v5162_v63, %s7887_s10  ;;  %v4995_v25 = vpop.permute.xlu1 %4994  ;;  %v9855_v36 = vpop.f32.mrb[49].mxu1  ;;  %v4884_v63 = vadd.f32 %v9605_v35, %v9496_v33  ;;  %v4885_v33 = vadd.f32 %v9492_v4, %v9605_v35 }
 0x2ca   : > { %v5069_v37 = vsel %vm663_vm2, %v4877_v26, %v4995_v25  ;;  %5241 = vrot.lane.b32.xlu0 %v5161_v45, %s7887_s10  ;;  %v7405_v32 = vpop.f32.mrb[50].mxu0  ;;  %v4997_v48 = vpop.permute.xlu0 %4996 }
 0x2cb   : > { %5102 = vst.msk [vmem:[%s9675_s14 + $0x148] sm:$0xff] %vm5080_vm4, %v5069_v37  ;;  %v5164_v60 = vadd.f32 %v7405_v32, %v9605_v35  ;;  %v5070_v3 = vsel %vm663_vm2, %v4878_v14, %v4997_v48  ;;  %v4748_v21 = vpop.f32.mrb[51].mxu0 }
 0x2cc   : > { %5103 = vst.msk [vmem:[%s9675_s14 + $0x160] sm:$0xff] %vm5080_vm4, %v5070_v3  ;;  %v5163_v34 = vadd.f32 %v9605_v35, %v4748_v21  ;;  %v9868_v19 = vpop.f32.mrb[50].mxu1 }
 0x2cd   : > { %5247 = vrot.lane.b32.xlu1 %v5164_v60, %s7887_s10  ;;  %v4999_v9 = vpop.permute.xlu1 %4998  ;;  %v9873_v16 = vpop.f32.mrb[51].mxu1  ;;  %v4886_v60 = vadd.f32 %v9605_v35, %v9508_v6  ;;  %v4887_v6 = vadd.f32 %v9504_v18, %v9605_v35 }
 0x2ce   : > { %v5071_v31 = vsel %vm663_vm2, %v4879_v7, %v4999_v9  ;;  %5245 = vrot.lane.b32.xlu0 %v5163_v34, %s7887_s10  ;;  %v7408_v41 = vpop.f32.mrb[52].mxu0  ;;  %v5001_v43 = vpop.permute.xlu0 %5000 }
 0x2cf   : > { %5104 = vst.msk [vmem:[%s9675_s14 + $0x168] sm:$0xff] %vm5080_vm4, %v5071_v31  ;;  %v5166_v55 = vadd.f32 %v7408_v41, %v9605_v35  ;;  %v5072_v59 = vsel %vm663_vm2, %v4880_v57, %v5001_v43  ;;  %v4758_v46 = vpop.f32.mrb[53].mxu0 }
 0x2d0   : > { %5105 = vst.msk [vmem:[%s9675_s14 + $0x180] sm:$0xff] %vm5080_vm4, %v5072_v59  ;;  %v5165_v49 = vadd.f32 %v9605_v35, %v4758_v46  ;;  %v9886_v5 = vpop.f32.mrb[52].mxu1 }
 0x2d1   : > { %5251 = vrot.lane.b32.xlu1 %v5166_v55, %s7887_s10  ;;  %v5003_v23 = vpop.permute.xlu1 %5002  ;;  %v9891_v20 = vpop.f32.mrb[53].mxu1 }
 0x2d2   : > { %v5073_v50 = vsel %vm663_vm2, %v4881_v2, %v5003_v23  ;;  %5249 = vrot.lane.b32.xlu0 %v5165_v49, %s7887_s10  ;;  %v7411_v27 = vpop.f32.mrb[54].mxu0  ;;  %v5005_v62 = vpop.permute.xlu0 %5004 }
 0x2d3   : > { %5106 = vst.msk [vmem:[%s9675_s14 + $0x188] sm:$0xff] %vm5080_vm4, %v5073_v50  ;;  %v5168_v44 = vadd.f32 %v7411_v27, %v9605_v35  ;;  %v5074_v47 = vsel %vm663_vm2, %v4882_v30, %v5005_v62  ;;  %v4768_v53 = vpop.f32.mrb[55].mxu0 }
 0x2d4   : > { %5107 = vst.msk [vmem:[%s9675_s14 + $0x1a0] sm:$0xff] %vm5080_vm4, %v5074_v47  ;;  %v5167_v0 = vadd.f32 %v9605_v35, %v4768_v53  ;;  %v9904_v13 = vpop.f32.mrb[54].mxu1 }
 0x2d5   : > { %5255 = vrot.lane.b32.xlu1 %v5168_v44, %s7887_s10  ;;  %v5007_v51 = vpop.permute.xlu1 %5006  ;;  %v9909_v15 = vpop.f32.mrb[55].mxu1 }
 0x2d6   : > { %v5075_v26 = vsel %vm663_vm2, %v4883_v52, %v5007_v51  ;;  %5253 = vrot.lane.b32.xlu0 %v5167_v0, %s7887_s10  ;;  %v7414_v58 = vpop.f32.mrb[56].mxu0  ;;  %v5009_v45 = vpop.permute.xlu0 %5008  ;;  %v5114_v0 = vadd.f32 %v9706_v38, %v9605_v35  ;;  %v5115_v38 = vadd.f32 %v9605_v35, %v9729_v39 }
 0x2d7   : > { %5108 = vst.msk [vmem:[%s9675_s14 + $0x1a8] sm:$0xff] %vm5080_vm4, %v5075_v26  ;;  %v5170_v14 = vadd.f32 %v7414_v58, %v9605_v35  ;;  %v5076_v25 = vsel %vm663_vm2, %v4884_v63, %v5009_v45  ;;  %v4778_v37 = vpop.f32.mrb[57].mxu0  ;;  %v5113_v63 = vadd.f32 %v9605_v35, %v9711_v56 }
 0x2d8   : > { %5109 = vst.msk [vmem:[%s9675_s14 + $0x1c0] sm:$0xff] %vm5080_vm4, %v5076_v25  ;;  %v5169_v32 = vadd.f32 %v9605_v35, %v4778_v37  ;;  %v9922_v48 = vpop.f32.mrb[56].mxu1 }
 0x2d9   : > { %5259 = vrot.lane.b32.xlu1 %v5170_v14, %s7887_s10  ;;  %v5011_v3 = vpop.permute.xlu1 %5010  ;;  %v9927_v21 = vpop.f32.mrb[57].mxu1  ;;  %v5116_v14 = vadd.f32 %v9724_v29, %v9605_v35  ;;  %v5117_v29 = vadd.f32 %v9605_v35, %v9747_v40 }
 0x2da   : > { %v5077_v7 = vsel %vm663_vm2, %v4885_v33, %v5011_v3  ;;  %5257 = vrot.lane.b32.xlu0 %v5169_v32, %s7887_s10  ;;  %v7417_v4 = vpop.f32.mrb[58].mxu0  ;;  %v5013_v34 = vpop.permute.xlu0 %5012  ;;  %v5118_v32 = vadd.f32 %v9742_v54, %v9605_v35  ;;  %v5119_v54 = vadd.f32 %v9605_v35, %v9765_v11 }
 0x2db   : > { %5110 = vst.msk [vmem:[%s9675_s14 + $0x1c8] sm:$0xff] %vm5080_vm4, %v5077_v7  ;;  %v5172_v57 = vadd.f32 %v7417_v4, %v9605_v35  ;;  %v5078_v9 = vsel %vm663_vm2, %v4886_v60, %v5013_v34  ;;  %v4788_v31 = vpop.f32.mrb[59].mxu0  ;;  %v5120_v4 = vadd.f32 %v9760_v61, %v9605_v35  ;;  %v5121_v61 = vadd.f32 %v9605_v35, %v9783_v1 }
 0x2dc   : > { %5111 = vst.msk [vmem:[%s9675_s14 + $0x1e0] sm:$0xff] %vm5080_vm4, %v5078_v9  ;;  %v5171_v41 = vadd.f32 %v9605_v35, %v4788_v31  ;;  %v9940_v43 = vpop.f32.mrb[58].mxu1  ;;  %v5122_v31 = vadd.f32 %v9778_v28, %v9605_v35  ;;  %v5123_v28 = vadd.f32 %v9605_v35, %v9801_v42 }
 0x2dd   : > { %5263 = vrot.lane.b32.xlu1 %v5172_v57, %s7887_s10  ;;  %v5015_v55 = vpop.permute.xlu1 %5014  ;;  %v9943_v59 = vpop.f32.mrb[59].mxu1 }
 0x2de   : > { %v5079_v46 = vsel %vm663_vm2, %v4887_v6, %v5015_v55  ;;  %5261 = vrot.lane.b32.xlu0 %v5171_v41, %s7887_s10  ;;  %v7420_v2 = vpop.f32.mrb[60].mxu0 }
 0x2df   : > { %5112 = vst.msk [vmem:[%s9675_s14 + $0x1e8] sm:$0xff] %vm5080_vm4, %v5079_v46  ;;  %v5174_v18 = vadd.f32 %v7420_v2, %v9605_v35  ;;  %v4798_v49 = vpop.f32.mrb[61].mxu0  ;;  %v5124_v46 = vadd.f32 %v9796_v17, %v9605_v35  ;;  %v5125_v17 = vadd.f32 %v9605_v35, %v9819_v22 }
 0x2e0   : > { %v5173_v30 = vadd.f32 %v9605_v35, %v4798_v49  ;;  %v9951_v23 = vpop.f32.mrb[60].mxu1 }
 0x2e1   : > { %5267 = vrot.lane.b32.xlu1 %v5174_v18, %s7887_s10  ;;  %v9954_v50 = vpop.f32.mrb[61].mxu1  ;;  %v7423_v27 = vpop.f32.mrb[62].mxu0 }
 0x2e2   : > { %5265 = vrot.lane.b32.xlu0 %v5173_v30, %s7887_s10  ;;  %v5176_v62 = vadd.f32 %v7423_v27, %v9605_v35  ;;  %v4808_v44 = vpop.f32.mrb[63].mxu0  ;;  %v5126_v30 = vadd.f32 %v9814_v24, %v9605_v35  ;;  %v5127_v24 = vadd.f32 %v9605_v35, %v9837_v8 }
 0x2e3   : > { %v5175_v47 = vadd.f32 %v9605_v35, %v4808_v44 }
 0x2e4   : > { %v9959_v53 = vpop.f32.mrb[62].mxu1 }
 0x2e5   : > { %5271 = vrot.lane.b32.xlu1 %v5176_v62, %s7887_s10  ;;  %v9962_v52 = vpop.f32.mrb[63].mxu1 }
 0x2e6   : > { %5269 = vrot.lane.b32.xlu0 %v5175_v47, %s7887_s10  ;;  %v5128_v47 = vadd.f32 %v9832_v12, %v9605_v35  ;;  %v5129_v12 = vadd.f32 %v9605_v35, %v9855_v36 }
 0x31a   : > { %v5212_v51 = vpop.permute.xlu1 %5211 }
 0x31b   : > { %v5306_v26 = vsel %vm663_vm2, %v5114_v0, %v5212_v51  ;;  %v5210_v58 = vpop.permute.xlu0 %5209 }
 0x31c   : > { %6058 = vst.msk [vmem:[%s9675_s14 + $0x18] sm:$0xff] %vm5080_vm4, %v5306_v26  ;;  %v5305_v45 = vsel %vm663_vm2, %v5113_v63, %v5210_v58  ;;  %v5130_v26 = vadd.f32 %v9850_v10, %v9605_v35  ;;  %v5131_v10 = vadd.f32 %v9605_v35, %v9873_v16 }
 0x31d   : > { %6057 = vst.msk [vmem:[%s9675_s14 + $0x10] sm:$0xff] %vm5080_vm4, %v5305_v45 }
 0x31f   : > { %v5216_v25 = vpop.permute.xlu1 %5215 }
 0x320   : > { %v5308_v56 = vsel %vm663_vm2, %v5116_v14, %v5216_v25  ;;  %v5214_v37 = vpop.permute.xlu0 %5213 }
 0x321   : > { %6060 = vst.msk [vmem:[%s9675_s14 + $0x38] sm:$0xff] %vm5080_vm4, %v5308_v56  ;;  %v5307_v33 = vsel %vm663_vm2, %v5115_v38, %v5214_v37  ;;  %v5132_v38 = vadd.f32 %v9868_v19, %v9605_v35  ;;  %v5133_v19 = vadd.f32 %v9605_v35, %v9891_v20 }
 0x322   : > { %6059 = vst.msk [vmem:[%s9675_s14 + $0x30] sm:$0xff] %vm5080_vm4, %v5307_v33  ;;  %v5134_v33 = vadd.f32 %v9886_v5, %v9605_v35  ;;  %v5135_v5 = vadd.f32 %v9605_v35, %v9909_v15 }
 0x323   : > { %v5220_v60 = vpop.permute.xlu1 %5219 }
 0x324   : > { %v5310_v39 = vsel %vm663_vm2, %v5118_v32, %v5220_v60  ;;  %v5218_v3 = vpop.permute.xlu0 %5217 }
 0x325   : > { %6062 = vst.msk [vmem:[%s9675_s14 + $0x58] sm:$0xff] %vm5080_vm4, %v5310_v39  ;;  %v5309_v7 = vsel %vm663_vm2, %v5117_v29, %v5218_v3  ;;  %v5136_v39 = vadd.f32 %v9904_v13, %v9605_v35  ;;  %v5137_v13 = vadd.f32 %v9605_v35, %v9927_v21 }
 0x326   : > { %6061 = vst.msk [vmem:[%s9675_s14 + $0x50] sm:$0xff] %vm5080_vm4, %v5309_v7 }
 0x327   : > { %v5224_v34 = vpop.permute.xlu1 %5223 }
 0x328   : > { %v5312_v40 = vsel %vm663_vm2, %v5120_v4, %v5224_v34  ;;  %v5222_v57 = vpop.permute.xlu0 %5221 }
 0x329   : > { %6064 = vst.msk [vmem:[%s9675_s14 + $0x78] sm:$0xff] %vm5080_vm4, %v5312_v40  ;;  %v5311_v9 = vsel %vm663_vm2, %v5119_v54, %v5222_v57  ;;  %v5138_v54 = vadd.f32 %v9922_v48, %v9605_v35  ;;  %v5139_v48 = vadd.f32 %v9605_v35, %v9943_v59 }
 0x32a   : > { %6063 = vst.msk [vmem:[%s9675_s14 + $0x70] sm:$0xff] %vm5080_vm4, %v5311_v9  ;;  %v5140_v9 = vadd.f32 %v9940_v43, %v9605_v35  ;;  %v5141_v43 = vadd.f32 %v9605_v35, %v9954_v50 }
 0x32b   : > { %v5228_v6 = vpop.permute.xlu1 %5227 }
 0x32c   : > { %v5314_v11 = vsel %vm663_vm2, %v5122_v31, %v5228_v6  ;;  %v5226_v41 = vpop.permute.xlu0 %5225 }
 0x32d   : > { %6066 = vst.msk [vmem:[%s9675_s14 + $0x98] sm:$0xff] %vm5080_vm4, %v5314_v11  ;;  %v5313_v55 = vsel %vm663_vm2, %v5121_v61, %v5226_v41  ;;  %v5142_v11 = vadd.f32 %v9951_v23, %v9605_v35  ;;  %v5143_v23 = vadd.f32 %v9605_v35, %v9962_v52 }
 0x32e   : > { %6065 = vst.msk [vmem:[%s9675_s14 + $0x90] sm:$0xff] %vm5080_vm4, %v5313_v55 }
 0x32f   : > { %v5232_v2 = vpop.permute.xlu1 %5231 }
 0x330   : > { %v5316_v1 = vsel %vm663_vm2, %v5124_v46, %v5232_v2  ;;  %v5230_v18 = vpop.permute.xlu0 %5229 }
 0x331   : > { %6068 = vst.msk [vmem:[%s9675_s14 + $0xb8] sm:$0xff] %vm5080_vm4, %v5316_v1  ;;  %v5315_v49 = vsel %vm663_vm2, %v5123_v28, %v5230_v18  ;;  %v5144_v28 = vadd.f32 %v9959_v53, %v9605_v35 }
 0x332   : > { %6067 = vst.msk [vmem:[%s9675_s14 + $0xb0] sm:$0xff] %vm5080_vm4, %v5315_v49 }
 0x333   : > { %v5236_v27 = vpop.permute.xlu1 %5235 }
 0x334   : > { %v5318_v42 = vsel %vm663_vm2, %v5126_v30, %v5236_v27  ;;  %v5234_v62 = vpop.permute.xlu0 %5233 }
 0x335   : > { %6070 = vst.msk [vmem:[%s9675_s14 + $0xd8] sm:$0xff] %vm5080_vm4, %v5318_v42  ;;  %v5317_v44 = vsel %vm663_vm2, %v5125_v17, %v5234_v62 }
 0x336   : > { %6069 = vst.msk [vmem:[%s9675_s14 + $0xd0] sm:$0xff] %vm5080_vm4, %v5317_v44 }
 0x337   : > { %v5240_v0 = vpop.permute.xlu1 %5239 }
 0x338   : > { %v5320_v22 = vsel %vm663_vm2, %v5128_v47, %v5240_v0  ;;  %v5238_v63 = vpop.permute.xlu0 %5237 }
 0x339   : > { %6072 = vst.msk [vmem:[%s9675_s14 + $0xf8] sm:$0xff] %vm5080_vm4, %v5320_v22  ;;  %v5319_v51 = vsel %vm663_vm2, %v5127_v24, %v5238_v63 }
 0x33a   : > { %6071 = vst.msk [vmem:[%s9675_s14 + $0xf0] sm:$0xff] %vm5080_vm4, %v5319_v51 }
 0x33b   : > { %v5244_v58 = vpop.permute.xlu1 %5243 }
 0x33c   : > { %v5322_v8 = vsel %vm663_vm2, %v5130_v26, %v5244_v58  ;;  %v5242_v45 = vpop.permute.xlu0 %5241 }
 0x33d   : > { %6074 = vst.msk [vmem:[%s9675_s14 + $0x118] sm:$0xff] %vm5080_vm4, %v5322_v8  ;;  %v5321_v14 = vsel %vm663_vm2, %v5129_v12, %v5242_v45 }
 0x33e   : > { %6073 = vst.msk [vmem:[%s9675_s14 + $0x110] sm:$0xff] %vm5080_vm4, %v5321_v14 }
 0x33f   : > { %v5248_v25 = vpop.permute.xlu1 %5247 }
 0x340   : > { %v5324_v36 = vsel %vm663_vm2, %v5132_v38, %v5248_v25  ;;  %v5246_v56 = vpop.permute.xlu0 %5245 }
 0x341   : > { %6076 = vst.msk [vmem:[%s9675_s14 + $0x138] sm:$0xff] %vm5080_vm4, %v5324_v36  ;;  %v5323_v37 = vsel %vm663_vm2, %v5131_v10, %v5246_v56 }
 0x342   : > { %6075 = vst.msk [vmem:[%s9675_s14 + $0x130] sm:$0xff] %vm5080_vm4, %v5323_v37 }
 0x343   : > { %v5252_v32 = vpop.permute.xlu1 %5251 }
 0x344   : > { %v5326_v16 = vsel %vm663_vm2, %v5134_v33, %v5252_v32  ;;  %v5250_v29 = vpop.permute.xlu0 %5249 }
 0x345   : > { %6078 = vst.msk [vmem:[%s9675_s14 + $0x158] sm:$0xff] %vm5080_vm4, %v5326_v16  ;;  %v5325_v60 = vsel %vm663_vm2, %v5133_v19, %v5250_v29 }
 0x346   : > { %6077 = vst.msk [vmem:[%s9675_s14 + $0x150] sm:$0xff] %vm5080_vm4, %v5325_v60 }
 0x347   : > { %v5256_v3 = vpop.permute.xlu1 %5255 }
 0x348   : > { %v5328_v20 = vsel %vm663_vm2, %v5136_v39, %v5256_v3  ;;  %v5254_v7 = vpop.permute.xlu0 %5253 }
 0x349   : > { %6080 = vst.msk [vmem:[%s9675_s14 + $0x178] sm:$0xff] %vm5080_vm4, %v5328_v20  ;;  %v5327_v4 = vsel %vm663_vm2, %v5135_v5, %v5254_v7 }
 0x34a   : > { %6079 = vst.msk [vmem:[%s9675_s14 + $0x170] sm:$0xff] %vm5080_vm4, %v5327_v4 }
 0x34b   : > { %v5260_v34 = vpop.permute.xlu1 %5259 }
 0x34c   : > { %v5330_v15 = vsel %vm663_vm2, %v5138_v54, %v5260_v34  ;;  %v5258_v40 = vpop.permute.xlu0 %5257 }
 0x34d   : > { %6082 = vst.msk [vmem:[%s9675_s14 + $0x198] sm:$0xff] %vm5080_vm4, %v5330_v15  ;;  %v5329_v57 = vsel %vm663_vm2, %v5137_v13, %v5258_v40 }
 0x34e   : > { %6081 = vst.msk [vmem:[%s9675_s14 + $0x190] sm:$0xff] %vm5080_vm4, %v5329_v57 }
 0x34f   : > { %v5264_v31 = vpop.permute.xlu1 %5263 }
 0x350   : > { %v5332_v21 = vsel %vm663_vm2, %v5140_v9, %v5264_v31  ;;  %v5262_v61 = vpop.permute.xlu0 %5261 }
 0x351   : > { %6084 = vst.msk [vmem:[%s9675_s14 + $0x1b8] sm:$0xff] %vm5080_vm4, %v5332_v21  ;;  %v5331_v6 = vsel %vm663_vm2, %v5139_v48, %v5262_v61 }
 0x352   : > { %6083 = vst.msk [vmem:[%s9675_s14 + $0x1b0] sm:$0xff] %vm5080_vm4, %v5331_v6 }
 0x353   : > { %v5268_v41 = vpop.permute.xlu1 %5267 }
 0x354   : > { %v5334_v59 = vsel %vm663_vm2, %v5142_v11, %v5268_v41  ;;  %v5266_v55 = vpop.permute.xlu0 %5265 }
 0x355   : > { %6086 = vst.msk [vmem:[%s9675_s14 + $0x1d8] sm:$0xff] %vm5080_vm4, %v5334_v59  ;;  %v5333_v46 = vsel %vm663_vm2, %v5141_v43, %v5266_v55 }
 0x356   : > { %6085 = vst.msk [vmem:[%s9675_s14 + $0x1d0] sm:$0xff] %vm5080_vm4, %v5333_v46 }
 0x357   : > { %v5272_v2 = vpop.permute.xlu1 %5271 }
 0x358   : > { %v5336_v1 = vsel %vm663_vm2, %v5144_v28, %v5272_v2  ;;  %v5270_v50 = vpop.permute.xlu0 %5269 }
 0x359   : > { %6088 = vst.msk [vmem:[%s9675_s14 + $0x1f8] sm:$0xff] %vm5080_vm4, %v5336_v1  ;;  %v5335_v18 = vsel %vm663_vm2, %v5143_v23, %v5270_v50 }
 0x35a   : > { %6087 = vst.msk [vmem:[%s9675_s14 + $0x1f0] sm:$0xff] %vm5080_vm4, %v5335_v18 }
 0x35b PF: > { %s15_s0 = sadd.s32 1, %s7884_s0   ;;  %s10438_s18 = smov %s7880_s19 }
 0x35c   : > { %p12_p5 = scmp.ge.s32.totalorder %s15_s0, 4   ;;  %s10439_s19 = smov %s10441_s2 }
 0x35e   :  { %14 = sbr.rel (!%p12_p5) target bundleno = 2 (0x2), region = 92 }

</bundles_post_ra>
